<compile_context>
chip_gen: v5e
topology: v5e:2x2
jax: 0.10.0
libtpu: 0.0.40
codegen_flags: <defaults>
</compile_context>

<pallas_src>
import numpy as np

import jax
import jax.numpy as jnp
from jax.experimental import pallas as pl
from jax.experimental.pallas import tpu as pltpu

# ----------------------------- model config ---------------------------------
IN_CH = 1            # input_dims is an int -> 'Conv' encoder, in_channels = 1
IMG = 16             # input_size = sqrt(input_dims / in_channels) = 16
C1 = 16              # conv1 output channels
C2 = 32              # conv2 output channels
H1 = 8               # conv1 spatial output (16 -> 8, stride 2, pad 1)
H2 = 4               # conv2 spatial output (8 -> 4)
N_IN = IMG * IMG * IN_CH      # 256   flattened input
N_H1 = H1 * H1 * C1           # 1024  conv1 activations (lane dense)
N_H2 = H2 * H2 * C2           # 512   conv2 activations (lane dense)
ENC_OUT = 128        # encoder_out_dims
PRO_DIM = 512        # pro_head hidden dim (from the module)
LATENT = 2           # latent_dim (from the module)
EMB_PAD = 128        # lane-dense padded width for the (., LATENT) embedding output


def _round_up(n, m):
    return ((n + m - 1) // m) * m


# --------------------------- fused Pallas kernel -----------------------------
def _fused_forward_kernel(x_ref, t1_ref, b1_ref, t2_ref, b2_ref,
                          wfc_ref, bfc_ref, wp1_ref, bp1_ref, wp2_ref, bp2_ref,
                          reps_ref, emb_ref):
    """conv1 -> ReLU -> conv2 -> ReLU -> fc -> ReLU -> pro_head, all in VMEM.

    Both convs were pre-lowered to dense (Toeplitz) matmuls (exact same linear
    map), so the forward is five bf16 MXU matmuls with f32 accumulation and
    f32 bias+ReLU epilogues; no intermediate ever touches HBM.
    """
    f32, bf16 = jnp.float32, jnp.bfloat16
    # conv1 (3x3, stride 2, pad 1) as one dense matmul: (tm,256)@(256,1024)
    h1 = jnp.dot(x_ref[...], t1_ref[...], preferred_element_type=f32) + b1_ref[...]
    h1 = jnp.maximum(h1, 0.0).astype(bf16)
    # conv2 (3x3, stride 2, pad 1) as one dense matmul: (tm,1024)@(1024,512)
    h2 = jnp.dot(h1, t2_ref[...], preferred_element_type=f32) + b2_ref[...]
    h2 = jnp.maximum(h2, 0.0).astype(bf16)
    # encoder fc -> reps : (tm,512)@(512,128)
    reps = jnp.dot(h2, wfc_ref[...], preferred_element_type=f32) + bfc_ref[...]
    reps = jnp.maximum(reps, 0.0)
    reps_ref[...] = reps.astype(reps_ref.dtype)
    # pro_head: Linear(128,512) -> ReLU -> Linear(512,2 padded to 128)
    p = jnp.dot(reps.astype(bf16), wp1_ref[...], preferred_element_type=f32) + bp1_ref[...]
    p = jnp.maximum(p, 0.0).astype(bf16)
    emb = jnp.dot(p, wp2_ref[...], preferred_element_type=f32) + bp2_ref[...]
    emb_ref[...] = emb.astype(emb_ref.dtype)


def fused_encode(fp, x_flat):
    """Run the fused encoder on a flattened (M, 256) batch. Returns (reps, emb)."""
    M = x_flat.shape[0]

    # Batch tiling:
    #   * M < 512  : a single block (weight-DMA bound regime, splitting would
    #                only duplicate the weight DMA on v7x's two cores).
    #   * M >= 512 : >=2 blocks of ~512 rows so the "parallel" batch axis can be
    #                sharded across TensorCores; batch padded up to exact tiling.
    if M < 512:
        n_blk = 1
    else:
        n_blk = max(2, -(-M // 512))
    tm = _round_up(-(-M // n_blk), 16)       # multiple of 16 (bf16 sublane tile)
    m_pad = n_blk * tm

    x_bf = x_flat.astype(jnp.bfloat16)       # bf16 input -> half the input DMA
    if m_pad != M:
        x_bf = jnp.pad(x_bf, ((0, m_pad - M), (0, 0)))

    def batch(i):   # activations / outputs: tile over the batch axis
        return (i, 0)

    def fixed(i):   # weights: same (only) block every step -> stays resident
        return (0, 0)

    w_args = (fp["t1"], fp["b1"], fp["t2"], fp["b2"],
              fp["fc_w"], fp["fc_b"], fp["ph1_w"], fp["ph1_b"],
              fp["ph2_w"], fp["ph2_b"])
    in_specs = [pl.BlockSpec((tm, N_IN), batch)]
    # Constant (0,0) index_map: Pallas does not re-issue the weight DMA across
    # grid steps, so the ~1.9 MiB of bf16 weights is fetched once per launch.
    # TODO(synk): pipeline_mode=pl.Buffered(1) would drop the redundant second
    # buffer for these constant blocks; omitted for lowering portability (VMEM
    # headroom is ample: <~12 MiB total vs the 32 MiB scoped limit).
    in_specs += [pl.BlockSpec(w.shape, fixed) for w in w_args]

    flops = 2 * m_pad * (N_IN * N_H1 + N_H1 * N_H2 + N_H2 * ENC_OUT
                         + ENC_OUT * PRO_DIM + PRO_DIM * EMB_PAD)
    bytes_accessed = (int(x_bf.size) * 2
                      + sum(int(w.size) * int(w.dtype.itemsize) for w in w_args)
                      + m_pad * (ENC_OUT + EMB_PAD) * 4)

    reps, emb = pl.pallas_call(
        _fused_forward_kernel,
        out_shape=(jax.ShapeDtypeStruct((m_pad, ENC_OUT), jnp.float32),
                   jax.ShapeDtypeStruct((m_pad, EMB_PAD), jnp.float32)),
        grid=(n_blk,),
        in_specs=in_specs,
        out_specs=(pl.BlockSpec((tm, ENC_OUT), batch),
                   pl.BlockSpec((tm, EMB_PAD), batch)),
        compiler_params=pltpu.CompilerParams(
            dimension_semantics=("parallel",),
            vmem_limit_bytes=32 * 1024 * 1024),
        cost_estimate=pl.CostEstimate(flops=flops, transcendentals=0,
                                      bytes_accessed=bytes_accessed),
    )(x_bf, *w_args)
    # Strip batch padding; recover the true latent_dim = 2 from the lane-dense tile.
    return reps[:M], emb[:M, :LATENT]


# ------------------- conv -> dense (Toeplitz) lowering ----------------------
def _conv_to_dense(w_oihw, b, in_h, in_w, stride, pad):
    """Lower a small Conv2d to an exact dense matrix.

    Flatten order on BOTH sides is channel-first, i.e. exactly what
    `tensor.reshape(batch, -1)` yields for an NCHW tensor:
        input  index = ci * (in_h * in_w)   + r * in_w  + c
        output index = co * (out_h * out_w) + i * out_w + j
    """
    w = np.asarray(w_oihw, np.float32)
    bias = np.asarray(b, np.float32)
    c_out, c_in, k_h, k_w = w.shape
    out_h = (in_h + 2 * pad - k_h) // stride + 1
    out_w = (in_w + 2 * pad - k_w) // stride + 1
    t = np.zeros((c_in * in_h * in_w, c_out * out_h * out_w), np.float32)
    ci_off = np.arange(c_in) * (in_h * in_w)
    co_off = np.arange(c_out) * (out_h * out_w)
    for i in range(out_h):
        for j in range(out_w):
            cols = co_off + (i * out_w + j)
            for dy in range(k_h):
                r = i * stride + dy - pad
                if r < 0 or r >= in_h:
                    continue
                for dx in range(k_w):
                    c = j * stride + dx - pad
                    if c < 0 or c >= in_w:
                        continue
                    rows = ci_off + (r * in_w + c)
                    t[np.ix_(rows, cols)] += w[:, :, dy, dx].T   # (c_in, c_out)
    b_exp = np.repeat(bias, out_h * out_w)                       # channel-first bias
    return t, b_exp, (out_h, out_w)


# ------------------------------- parameters ---------------------------------
def init_params(key):
    ks = jax.random.split(key, 10)

    def dense(k, fan_in, shape):
        return jax.random.normal(k, shape, jnp.float32) / jnp.sqrt(float(fan_in))

    return {
        # encoder (Conv path)
        "conv1_w": dense(ks[0], IN_CH * 9, (C1, IN_CH, 3, 3)),
        "conv1_b": 0.1 * jax.random.normal(ks[1], (C1,), jnp.float32),
        "conv2_w": dense(ks[2], C1 * 9, (C2, C1, 3, 3)),
        "conv2_b": 0.1 * jax.random.normal(ks[3], (C2,), jnp.float32),
        "fc_w": dense(ks[4], N_H2, (N_H2, ENC_OUT)),
        "fc_b": 0.1 * jax.random.normal(ks[5], (ENC_OUT,), jnp.float32),
        # pro_head (exactly as in the module)
        "ph1_w": dense(ks[6], ENC_OUT, (ENC_OUT, PRO_DIM)),
        "ph1_b": 0.1 * jax.random.normal(ks[7], (PRO_DIM,), jnp.float32),
        "ph2_w": dense(ks[8], PRO_DIM, (PRO_DIM, LATENT)),
        "ph2_b": 0.1 * jax.random.normal(ks[9], (LATENT,), jnp.float32),
    }


def prepare_fused_params(params):
    """One-time (outside jit) lowering: conv->dense, bf16 weights, lane-dense pro_head."""
    t1, b1, (h1, w1) = _conv_to_dense(params["conv1_w"], params["conv1_b"],
                                      IMG, IMG, stride=2, pad=1)
    t2, b2, (h2, w2) = _conv_to_dense(params["conv2_w"], params["conv2_b"],
                                      h1, w1, stride=2, pad=1)
    assert t1.shape == (N_IN, N_H1) and t2.shape == (N_H1, N_H2)
    assert (h2, w2) == (H2, H2)

    # Zero-pad the final head to 128 output lanes (lane-dense store in the kernel).
    ph2_w = np.zeros((PRO_DIM, EMB_PAD), np.float32)
    ph2_w[:, :LATENT] = np.asarray(params["ph2_w"], np.float32)
    ph2_b = np.zeros((EMB_PAD,), np.float32)
    ph2_b[:LATENT] = np.asarray(params["ph2_b"], np.float32)

    bf16, f32 = jnp.bfloat16, jnp.float32
    return {
        "t1": jnp.asarray(t1, bf16), "b1": jnp.asarray(b1, f32).reshape(1, -1),
        "t2": jnp.asarray(t2, bf16), "b2": jnp.asarray(b2, f32).reshape(1, -1),
        "fc_w": jnp.asarray(params["fc_w"], bf16),
        "fc_b": jnp.asarray(params["fc_b"], f32).reshape(1, -1),
        "ph1_w": jnp.asarray(params["ph1_w"], bf16),
        "ph1_b": jnp.asarray(params["ph1_b"], f32).reshape(1, -1),
        "ph2_w": jnp.asarray(ph2_w, bf16),
        "ph2_b": jnp.asarray(ph2_b, f32).reshape(1, -1),
    }


# --------------------------------- forward ----------------------------------
def _squeeze_like_torch(reps, emb):
    # torch `.squeeze()` collapses a size-1 batch dim; mirror that exactly.
    if reps.shape[0] == 1:
        return reps[0], emb[0]
    return reps, emb


def encode(fparams, x):
    """NX_CDRModel.encode for a single view (NCHW input)."""
    if x is None:
        return None, None
    b = x.shape[0]
    reps, emb = fused_encode(fparams, x.reshape(b, N_IN))   # channel-first flatten
    return _squeeze_like_torch(reps, emb)


def nx_cdr_forward(fparams, x, x_sim):
    """NX_CDRModel.forward: both views encoded in one fused kernel launch."""
    if x is None or x_sim is None:
        x_reps, x_emb = encode(fparams, x)
        xs_reps, xs_emb = encode(fparams, x_sim)
        return x_reps, x_emb, xs_reps, xs_emb
    b = x.shape[0]
    # TODO(synk): for very large batches feed x / x_sim as two inputs with a
    # half-grid index_map instead of this concatenate (saves one HBM pass).
    both = jnp.concatenate([x, x_sim], axis=0).reshape(2 * b, N_IN)
    reps, emb = fused_encode(fparams, both)
    x_reps, x_emb = _squeeze_like_torch(reps[:b], emb[:b])
    xs_reps, xs_emb = _squeeze_like_torch(reps[b:], emb[b:])
    return x_reps, x_emb, xs_reps, xs_emb


# ------------------------- pure-JAX reference (check) ------------------------
def reference_forward(params, x_nchw):
    """Same model in plain JAX, with the kernel's bf16 weight/activation
    quantization reproduced so the comparison tolerance can be tight."""
    bf = lambda a: a.astype(jnp.bfloat16).astype(jnp.float32)
    hi = jax.lax.Precision.HIGHEST
    h = jax.lax.conv_general_dilated(
        bf(x_nchw), bf(params["conv1_w"]), (2, 2), ((1, 1), (1, 1)),
        dimension_numbers=("NCHW", "OIHW", "NCHW"), precision=hi)
    h = jax.nn.relu(h + params["conv1_b"][None, :, None, None])
    h = jax.lax.conv_general_dilated(
        bf(h), bf(params["conv2_w"]), (2, 2), ((1, 1), (1, 1)),
        dimension_numbers=("NCHW", "OIHW", "NCHW"), precision=hi)
    h = jax.nn.relu(h + params["conv2_b"][None, :, None, None])
    h = h.reshape(h.shape[0], -1)                     # channel-first (NCHW) flatten
    reps = jax.nn.relu(jnp.dot(bf(h), bf(params["fc_w"]), precision=hi)
                       + params["fc_b"])
    p = jax.nn.relu(jnp.dot(bf(reps), bf(params["ph1_w"]), precision=hi)
                    + params["ph1_b"])
    emb = jnp.dot(bf(p), bf(params["ph2_w"]), precision=hi) + params["ph2_b"]
    return reps, emb


# ----------------------------------- main ------------------------------------
if __name__ == "__main__":
    key = jax.random.PRNGKey(0)
    kx, ksim, kp = jax.random.split(key, 3)
    B = 2
    x = jax.random.normal(kx, (B, IN_CH, IMG, IMG), jnp.float32)
    x_sim = jax.random.normal(ksim, (B, IN_CH, IMG, IMG), jnp.float32)

    params = init_params(kp)
    fparams = prepare_fused_params(params)     # one-time conv->dense lowering (host)

    fwd = jax.jit(nx_cdr_forward)
    out = jax.block_until_ready(fwd(fparams, x, x_sim))
    x_reps, x_emb, xs_reps, xs_emb = out

    assert x_reps.shape == (B, ENC_OUT) and xs_reps.shape == (B, ENC_OUT)
    assert x_emb.shape == (B, LATENT) and xs_emb.shape == (B, LATENT)

    # Numerical check against a pure-JAX/XLA reference of the same model
    # (bf16-quantized the same way), so the tolerance stays tight.
    r_reps, r_emb = reference_forward(params, jnp.concatenate([x, x_sim], 0))
    np.testing.assert_allclose(np.asarray(jnp.concatenate([x_reps, xs_reps], 0)),
                               np.asarray(r_reps), rtol=5e-3, atol=5e-3)
    np.testing.assert_allclose(np.asarray(jnp.concatenate([x_emb, xs_emb], 0)),
                               np.asarray(r_emb), rtol=5e-3, atol=5e-3)

    print("KERNEL_OK")
</pallas_src>

<mosaic_0001>
module attributes {stable_mosaic.version = 11 : i64} {
  func.func @_fused_forward_kernel(%arg0: i32, %arg1: memref<16x256xbf16, #tpu.memory_space<vmem>>, %arg2: memref<256x1024xbf16, #tpu.memory_space<vmem>>, %arg3: memref<1x1024xf32, #tpu.memory_space<vmem>>, %arg4: memref<1024x512xbf16, #tpu.memory_space<vmem>>, %arg5: memref<1x512xf32, #tpu.memory_space<vmem>>, %arg6: memref<512x128xbf16, #tpu.memory_space<vmem>>, %arg7: memref<1x128xf32, #tpu.memory_space<vmem>>, %arg8: memref<128x512xbf16, #tpu.memory_space<vmem>>, %arg9: memref<1x512xf32, #tpu.memory_space<vmem>>, %arg10: memref<512x128xbf16, #tpu.memory_space<vmem>>, %arg11: memref<1x128xf32, #tpu.memory_space<vmem>>, %arg12: memref<16x128xf32, #tpu.memory_space<vmem>>, %arg13: memref<16x128xf32, #tpu.memory_space<vmem>>) attributes {dimension_semantics = [#tpu.dimension_semantics<parallel>], iteration_bounds = array<i64: 1>, scalar_prefetch = 0 : i64, scratch_operands = 0 : i64, tpu.core_type = #tpu.core_type<tc>, window_params = [{transform_indices = @transform_0, window_bounds = array<i64: 16, 256>}, {pipeline_mode = #tpu.pipeline_mode<synchronous>, transform_indices = @transform_1, window_bounds = array<i64: 256, 1024>}, {pipeline_mode = #tpu.pipeline_mode<synchronous>, transform_indices = @transform_2, window_bounds = array<i64: 1, 1024>}, {pipeline_mode = #tpu.pipeline_mode<synchronous>, transform_indices = @transform_3, window_bounds = array<i64: 1024, 512>}, {pipeline_mode = #tpu.pipeline_mode<synchronous>, transform_indices = @transform_4, window_bounds = array<i64: 1, 512>}, {pipeline_mode = #tpu.pipeline_mode<synchronous>, transform_indices = @transform_5, window_bounds = array<i64: 512, 128>}, {pipeline_mode = #tpu.pipeline_mode<synchronous>, transform_indices = @transform_6, window_bounds = array<i64: 1, 128>}, {pipeline_mode = #tpu.pipeline_mode<synchronous>, transform_indices = @transform_7, window_bounds = array<i64: 128, 512>}, {pipeline_mode = #tpu.pipeline_mode<synchronous>, transform_indices = @transform_8, window_bounds = array<i64: 1, 512>}, {pipeline_mode = #tpu.pipeline_mode<synchronous>, transform_indices = @transform_9, window_bounds = array<i64: 512, 128>}, {pipeline_mode = #tpu.pipeline_mode<synchronous>, transform_indices = @transform_10, window_bounds = array<i64: 1, 128>}, {transform_indices = @transform_11, window_bounds = array<i64: 16, 128>}, {transform_indices = @transform_12, window_bounds = array<i64: 16, 128>}]} {
    %c0 = arith.constant 0 : index
    %c0_0 = arith.constant 0 : index
    %0 = vector.load %arg1[%c0, %c0_0] : memref<16x256xbf16, #tpu.memory_space<vmem>>, vector<16x256xbf16>
    %c0_1 = arith.constant 0 : index
    %c0_2 = arith.constant 0 : index
    %1 = vector.load %arg2[%c0_1, %c0_2] : memref<256x1024xbf16, #tpu.memory_space<vmem>>, vector<256x1024xbf16>
    %cst = arith.constant dense<0.000000e+00> : vector<16x1024xf32>
    %2 = tpu.matmul %0, %1, %cst {dimension_numbers = #tpu.dot_dimension_numbers<[1], [0], [0], [1], [0, 0, 1, 1], [], []>} : vector<16x256xbf16>, vector<256x1024xbf16>, vector<16x1024xf32> -> vector<16x1024xf32>
    %c0_3 = arith.constant 0 : index
    %c0_4 = arith.constant 0 : index
    %3 = vector.load %arg3[%c0_3, %c0_4] : memref<1x1024xf32, #tpu.memory_space<vmem>>, vector<1x1024xf32>
    %4 = vector.broadcast %3 : vector<1x1024xf32> to vector<16x1024xf32>
    %5 = arith.addf %2, %4 : vector<16x1024xf32>
    %cst_5 = arith.constant 0.000000e+00 : f32
    %6 = vector.broadcast %cst_5 : f32 to vector<16x1024xf32>
    %7 = arith.maximumf %5, %6 : vector<16x1024xf32>
    %8 = arith.truncf %7 : vector<16x1024xf32> to vector<16x1024xbf16>
    %c0_6 = arith.constant 0 : index
    %c0_7 = arith.constant 0 : index
    %9 = vector.load %arg4[%c0_6, %c0_7] : memref<1024x512xbf16, #tpu.memory_space<vmem>>, vector<1024x512xbf16>
    %cst_8 = arith.constant dense<0.000000e+00> : vector<16x512xf32>
    %10 = tpu.matmul %8, %9, %cst_8 {dimension_numbers = #tpu.dot_dimension_numbers<[1], [0], [0], [1], [0, 0, 1, 1], [], []>} : vector<16x1024xbf16>, vector<1024x512xbf16>, vector<16x512xf32> -> vector<16x512xf32>
    %c0_9 = arith.constant 0 : index
    %c0_10 = arith.constant 0 : index
    %11 = vector.load %arg5[%c0_9, %c0_10] : memref<1x512xf32, #tpu.memory_space<vmem>>, vector<1x512xf32>
    %12 = vector.broadcast %11 : vector<1x512xf32> to vector<16x512xf32>
    %13 = arith.addf %10, %12 : vector<16x512xf32>
    %cst_11 = arith.constant 0.000000e+00 : f32
    %14 = vector.broadcast %cst_11 : f32 to vector<16x512xf32>
    %15 = arith.maximumf %13, %14 : vector<16x512xf32>
    %16 = arith.truncf %15 : vector<16x512xf32> to vector<16x512xbf16>
    %c0_12 = arith.constant 0 : index
    %c0_13 = arith.constant 0 : index
    %17 = vector.load %arg6[%c0_12, %c0_13] : memref<512x128xbf16, #tpu.memory_space<vmem>>, vector<512x128xbf16>
    %cst_14 = arith.constant dense<0.000000e+00> : vector<16x128xf32>
    %18 = tpu.matmul %16, %17, %cst_14 {dimension_numbers = #tpu.dot_dimension_numbers<[1], [0], [0], [1], [0, 0, 1, 1], [], []>} : vector<16x512xbf16>, vector<512x128xbf16>, vector<16x128xf32> -> vector<16x128xf32>
    %c0_15 = arith.constant 0 : index
    %c0_16 = arith.constant 0 : index
    %19 = vector.load %arg7[%c0_15, %c0_16] : memref<1x128xf32, #tpu.memory_space<vmem>>, vector<1x128xf32>
    %20 = vector.broadcast %19 : vector<1x128xf32> to vector<16x128xf32>
    %21 = arith.addf %18, %20 : vector<16x128xf32>
    %cst_17 = arith.constant 0.000000e+00 : f32
    %22 = vector.broadcast %cst_17 : f32 to vector<16x128xf32>
    %23 = arith.maximumf %21, %22 : vector<16x128xf32>
    %c0_18 = arith.constant 0 : index
    %c0_19 = arith.constant 0 : index
    %24 = vector.load %arg12[%c0_18, %c0_19] : memref<16x128xf32, #tpu.memory_space<vmem>>, vector<16x128xf32>
    tpu.vector_store %arg12[%c0_18, %c0_19], %23 {strides = array<i32>} : memref<16x128xf32, #tpu.memory_space<vmem>>, vector<16x128xf32>,
    %25 = arith.truncf %23 : vector<16x128xf32> to vector<16x128xbf16>
    %c0_20 = arith.constant 0 : index
    %c0_21 = arith.constant 0 : index
    %26 = vector.load %arg8[%c0_20, %c0_21] : memref<128x512xbf16, #tpu.memory_space<vmem>>, vector<128x512xbf16>
    %cst_22 = arith.constant dense<0.000000e+00> : vector<16x512xf32>
    %27 = tpu.matmul %25, %26, %cst_22 {dimension_numbers = #tpu.dot_dimension_numbers<[1], [0], [0], [1], [0, 0, 1, 1], [], []>} : vector<16x128xbf16>, vector<128x512xbf16>, vector<16x512xf32> -> vector<16x512xf32>
    %c0_23 = arith.constant 0 : index
    %c0_24 = arith.constant 0 : index
    %28 = vector.load %arg9[%c0_23, %c0_24] : memref<1x512xf32, #tpu.memory_space<vmem>>, vector<1x512xf32>
    %29 = vector.broadcast %28 : vector<1x512xf32> to vector<16x512xf32>
    %30 = arith.addf %27, %29 : vector<16x512xf32>
    %cst_25 = arith.constant 0.000000e+00 : f32
    %31 = vector.broadcast %cst_25 : f32 to vector<16x512xf32>
    %32 = arith.maximumf %30, %31 : vector<16x512xf32>
    %33 = arith.truncf %32 : vector<16x512xf32> to vector<16x512xbf16>
    %c0_26 = arith.constant 0 : index
    %c0_27 = arith.constant 0 : index
    %34 = vector.load %arg10[%c0_26, %c0_27] : memref<512x128xbf16, #tpu.memory_space<vmem>>, vector<512x128xbf16>
    %cst_28 = arith.constant dense<0.000000e+00> : vector<16x128xf32>
    %35 = tpu.matmul %33, %34, %cst_28 {dimension_numbers = #tpu.dot_dimension_numbers<[1], [0], [0], [1], [0, 0, 1, 1], [], []>} : vector<16x512xbf16>, vector<512x128xbf16>, vector<16x128xf32> -> vector<16x128xf32>
    %c0_29 = arith.constant 0 : index
    %c0_30 = arith.constant 0 : index
    %36 = vector.load %arg11[%c0_29, %c0_30] : memref<1x128xf32, #tpu.memory_space<vmem>>, vector<1x128xf32>
    %37 = vector.broadcast %36 : vector<1x128xf32> to vector<16x128xf32>
    %38 = arith.addf %35, %37 : vector<16x128xf32>
    %c0_31 = arith.constant 0 : index
    %c0_32 = arith.constant 0 : index
    %39 = vector.load %arg13[%c0_31, %c0_32] : memref<16x128xf32, #tpu.memory_space<vmem>>, vector<16x128xf32>
    tpu.vector_store %arg13[%c0_31, %c0_32], %38 {strides = array<i32>} : memref<16x128xf32, #tpu.memory_space<vmem>>, vector<16x128xf32>,
    return
  }
  func.func @transform_0(%arg0: i32) -> (i32, i32) {
    %c0_i32 = arith.constant 0 : i32
    %c0_i32_0 = arith.constant 0 : i32
    return %arg0, %c0_i32 : i32, i32
  }
  func.func @transform_1(%arg0: i32) -> (i32, i32) {
    %c0_i32 = arith.constant 0 : i32
    %c0_i32_0 = arith.constant 0 : i32
    %c0_i32_1 = arith.constant 0 : i32
    return %c0_i32, %c0_i32_0 : i32, i32
  }
  func.func @transform_2(%arg0: i32) -> (i32, i32) {
    %c0_i32 = arith.constant 0 : i32
    %c0_i32_0 = arith.constant 0 : i32
    %c0_i32_1 = arith.constant 0 : i32
    return %c0_i32, %c0_i32_0 : i32, i32
  }
  func.func @transform_3(%arg0: i32) -> (i32, i32) {
    %c0_i32 = arith.constant 0 : i32
    %c0_i32_0 = arith.constant 0 : i32
    %c0_i32_1 = arith.constant 0 : i32
    return %c0_i32, %c0_i32_0 : i32, i32
  }
  func.func @transform_4(%arg0: i32) -> (i32, i32) {
    %c0_i32 = arith.constant 0 : i32
    %c0_i32_0 = arith.constant 0 : i32
    %c0_i32_1 = arith.constant 0 : i32
    return %c0_i32, %c0_i32_0 : i32, i32
  }
  func.func @transform_5(%arg0: i32) -> (i32, i32) {
    %c0_i32 = arith.constant 0 : i32
    %c0_i32_0 = arith.constant 0 : i32
    %c0_i32_1 = arith.constant 0 : i32
    return %c0_i32, %c0_i32_0 : i32, i32
  }
  func.func @transform_6(%arg0: i32) -> (i32, i32) {
    %c0_i32 = arith.constant 0 : i32
    %c0_i32_0 = arith.constant 0 : i32
    %c0_i32_1 = arith.constant 0 : i32
    return %c0_i32, %c0_i32_0 : i32, i32
  }
  func.func @transform_7(%arg0: i32) -> (i32, i32) {
    %c0_i32 = arith.constant 0 : i32
    %c0_i32_0 = arith.constant 0 : i32
    %c0_i32_1 = arith.constant 0 : i32
    return %c0_i32, %c0_i32_0 : i32, i32
  }
  func.func @transform_8(%arg0: i32) -> (i32, i32) {
    %c0_i32 = arith.constant 0 : i32
    %c0_i32_0 = arith.constant 0 : i32
    %c0_i32_1 = arith.constant 0 : i32
    return %c0_i32, %c0_i32_0 : i32, i32
  }
  func.func @transform_9(%arg0: i32) -> (i32, i32) {
    %c0_i32 = arith.constant 0 : i32
    %c0_i32_0 = arith.constant 0 : i32
    %c0_i32_1 = arith.constant 0 : i32
    return %c0_i32, %c0_i32_0 : i32, i32
  }
  func.func @transform_10(%arg0: i32) -> (i32, i32) {
    %c0_i32 = arith.constant 0 : i32
    %c0_i32_0 = arith.constant 0 : i32
    %c0_i32_1 = arith.constant 0 : i32
    return %c0_i32, %c0_i32_0 : i32, i32
  }
  func.func @transform_11(%arg0: i32) -> (i32, i32) {
    %c0_i32 = arith.constant 0 : i32
    %c0_i32_0 = arith.constant 0 : i32
    return %arg0, %c0_i32 : i32, i32
  }
  func.func @transform_12(%arg0: i32) -> (i32, i32) {
    %c0_i32 = arith.constant 0 : i32
    %c0_i32_0 = arith.constant 0 : i32
    return %arg0, %c0_i32 : i32, i32
  }
}

</mosaic_0001>

<bundles_post_ra>
// kernel: nx_cdr_forward.1
= control target key start
LH: loop header
LB: loop body
LE: loop exit
PB: predicated region body
PF: predicated region fallthrough
CT: control target
= control target key end

     0   :  { %18 = vsyncpa [#allocation3], 0  ;;  %s6877_s0 = inlined_call_operand.vmem [shape: bf16[16,256], index: 0, kind: input, shape index: {}]   ;;  %s6878_s1 = inlined_call_operand.hbm [shape: bf16[256,1024], index: 1, kind: input, shape index: {}]   ;;  %s6879_s2 = inlined_call_operand.vmem [shape: f32[1,1024], index: 2, kind: input, shape index: {}]   ;;  %s6880_s3 = inlined_call_operand.hbm [shape: bf16[1024,512], index: 3, kind: input, shape index: {}]   ;;  %s6881_s4 = inlined_call_operand.vmem [shape: f32[1,512], index: 4, kind: input, shape index: {}]   ;;  %s6882_s5 = inlined_call_operand.hbm [shape: bf16[512,128], index: 5, kind: input, shape index: {}]   ;;  %s6883_s6 = inlined_call_operand.vmem [shape: f32[1,128], index: 6, kind: input, shape index: {}]   ;;  %s6884_s7 = inlined_call_operand.hbm [shape: bf16[128,512], index: 7, kind: input, shape index: {}]   ;;  %s6885_s8 = inlined_call_operand.vmem [shape: f32[1,512], index: 8, kind: input, shape index: {}]   ;;  %s6886_s9 = inlined_call_operand.hbm [shape: bf16[512,128], index: 9, kind: input, shape index: {}]   ;;  %s6887_s10 = inlined_call_operand.vmem [shape: f32[1,128], index: 10, kind: input, shape index: {}]   ;;  %s6888_s11 = inlined_call_operand.vmem [shape: f32[16,128], index: 11, kind: output, shape index: {0}]   ;;  %s6889_s12 = inlined_call_operand.vmem [shape: f32[16,128], index: 12, kind: output, shape index: {1}]  }
   0x1   :  { %19 = vsyncpa [#allocation5], 0  ;;  %s42_s23 = sshll.u32 %s6880_s3, 4  ;;  %s43_s23 = int_to_ptr.hbm [resolvable:$true] %s42_s23 }
   0x2   :  { %20 = vsyncpa [#allocation8], 0  ;;  %s6639_s24 = smov [#allocation4]   ;;  %s72_s28 = sshll.u32 %s6884_s7, 4  ;;  %s73_s28 = int_to_ptr.hbm [resolvable:$true] %s72_s28 }
   0x3   :  { %s44_s25 = sshll.u32 %s6639_s24, 4  ;;  %s6640_s29 = smov 256   ;;  %s45_s25 = int_to_ptr.vmem [resolvable:$true] %s44_s25 }
   0x4   :  { %s6641_s30 = smov 16   ;;  %s6642_s13 = smov [#allocation7]  }
   0x5   :  { %50 = dma.hbm_to_vmem [thread:$0]  %s43_s23, 32768, %s45_s25, [#allocation5], %s6640_s29, %s6640_s29, %s6641_s30  }
   0x6   :  { %s74_s14 = sshll.u32 %s6642_s13, 4  ;;  %s27_s17 = sshll.u32 %s6878_s1, 4  ;;  %s75_s14 = int_to_ptr.vmem [resolvable:$true] %s74_s14  ;;  %s28_s17 = int_to_ptr.hbm [resolvable:$true] %s27_s17 }
   0x7   :  { %80 = dma.hbm_to_vmem [thread:$0]  %s73_s28, 4096, %s75_s14, [#allocation8], %s6640_s29, %s6640_s29, %s6641_s30  }
   0x8   :  { %s6643_s3 = smov [#allocation2]   ;;  %s57_s7 = sshll.u32 %s6882_s5, 4  ;;  %s58_s7 = int_to_ptr.hbm [resolvable:$true] %s57_s7 }
   0x9   :  { %s29_s18 = sshll.u32 %s6643_s3, 4  ;;  %s6644_s21 = smov 512   ;;  %s30_s18 = int_to_ptr.vmem [resolvable:$true] %s29_s18 }
   0xa   :  { %s6645_s22 = smov 32   ;;  %s6646_s23 = smov [#allocation6]  }
   0xb   :  { %35 = dma.hbm_to_vmem [thread:$0]  %s28_s17, 16384, %s30_s18, [#allocation3], %s6644_s21, %s6644_s21, %s6645_s22  }
   0xc   :  { %s59_s24 = sshll.u32 %s6646_s23, 4  ;;  %s6647_s25 = smov 64   ;;  %s60_s24 = int_to_ptr.vmem [resolvable:$true] %s59_s24 }
   0xd   :  { %s6648_s26 = smov 4   ;;  %s87_s28 = sshll.u32 %s6886_s9, 4  ;;  %s88_s28 = int_to_ptr.hbm [resolvable:$true] %s87_s28 }
   0xe   :  { %65 = dma.hbm_to_vmem [thread:$0]  %s58_s7, 4096, %s60_s24, [#allocation5], %s6647_s25, %s6647_s25, %s6648_s26  }
   0xf   :  { %s6649_s29 = smov [#allocation9]  }
  0x10   :  { %s89_s30 = sshll.u32 %s6649_s29, 4  ;;  %s90_s30 = int_to_ptr.vmem [resolvable:$true] %s89_s30 }
  0x11   :  { %95 = dma.hbm_to_vmem [thread:$0]  %s88_s28, 4096, %s90_s30, [#allocation8], %s6647_s25, %s6647_s25, %s6648_s26  }
  0x12   :  { %6633 = dma.done.wait [#allocation3], 16384  }
  0x13   :  { %6634 = vsyncadd [#allocation3], 4294950912 }
  0x14   :  { %6635 = dma.done.wait [#allocation5], 36864  }
  0x15   :  { %6636 = vsyncadd [#allocation5], 4294930432 }
  0x16   :  { %6637 = dma.done.wait [#allocation8], 8192  }
  0x17   :  { %6638 = vsyncadd [#allocation8], 4294959104  ;;  %v4324_v0 = vld [vmem:[#allocation2 + $0x1c0] sm:$0xf]  ;;  %v6076_v5 = vld [vmem:[#allocation2 + $0x1c4] sm:$0xf] }
  0x18   :  { %v6080_v1 = vld [vmem:[#allocation2 + $0x1dc] sm:$0xf0]  ;;  %v4326_v6 = vld [vmem:[#allocation2 + $0x1e0] sm:$0xf0] }
  0x19   :  { %v4580_v2 = vld [vmem:[#allocation2 + $0x3c0] sm:$0xf]  ;;  %v4325_v3 = vor.u32 %v6080_v1, %v4324_v0  ;;  %v4329_v8 = vor.u32 %v6076_v5, %v4326_v6  ;;  %v6140_v9 = vld [vmem:[#allocation2 + $0x3c4] sm:$0xf] }
  0x1a   :  { %v6144_v4 = vld [vmem:[#allocation2 + $0x3dc] sm:$0xf0]  ;;  %v4582_v10 = vld [vmem:[#allocation2 + $0x3e0] sm:$0xf0] }
  0x1b   :  { %v4581_v7 = vor.u32 %v6144_v4, %v4580_v2  ;;  %v4292_v11 = vld [vmem:[#allocation2 + $0x180] sm:$0xf]  ;;  %916 = vmatpush.bf16.msra.mxu0 %v4325_v3  ;;  %v4585_v12 = vor.u32 %v6140_v9, %v4582_v10  ;;  %944 = vmatpush.bf16.msra.mxu2 %v4329_v8  ;;  %v6068_v18 = vld [vmem:[#allocation2 + $0x184] sm:$0xf] }
  0x1c   :  { %v6072_v13 = vld [vmem:[#allocation2 + $0x19c] sm:$0xf0]  ;;  %v4294_v19 = vld [vmem:[#allocation2 + $0x1a0] sm:$0xf0] }
  0x1d   :  { %v4548_v14 = vld [vmem:[#allocation2 + $0x380] sm:$0xf]  ;;  %930 = vmatpush.bf16.msra.mxu1 %v4581_v7  ;;  %v4293_v16 = vor.u32 %v6072_v13, %v4292_v11  ;;  %v6132_v20 = vld [vmem:[#allocation2 + $0x384] sm:$0xf]  ;;  %958 = vmatpush.bf16.msra.mxu3 %v4585_v12  ;;  %v4297_v21 = vor.u32 %v6068_v18, %v4294_v19 }
  0x1e   :  { %v6136_v15 = vld [vmem:[#allocation2 + $0x39c] sm:$0xf0]  ;;  %v4550_v22 = vld [vmem:[#allocation2 + $0x3a0] sm:$0xf0] }
  0x1f   :  { %v4549_v17 = vor.u32 %v6136_v15, %v4548_v14  ;;  %v4260_v23 = vld [vmem:[#allocation2 + $0x140] sm:$0xf]  ;;  %v4553_v25 = vor.u32 %v6132_v20, %v4550_v22  ;;  %v6060_v28 = vld [vmem:[#allocation2 + $0x144] sm:$0xf]  ;;  %917 = vmatpush.bf16.msra.mxu0 %v4293_v16  ;;  %945 = vmatpush.bf16.msra.mxu2 %v4297_v21 }
  0x20   :  { %v6064_v24 = vld [vmem:[#allocation2 + $0x15c] sm:$0xf0]  ;;  %v4262_v30 = vld [vmem:[#allocation2 + $0x160] sm:$0xf0] }
  0x21   :  { %v4516_v26 = vld [vmem:[#allocation2 + $0x340] sm:$0xf]  ;;  %v4261_v29 = vor.u32 %v6064_v24, %v4260_v23  ;;  %v6124_v31 = vld [vmem:[#allocation2 + $0x344] sm:$0xf]  ;;  %931 = vmatpush.bf16.msra.mxu1 %v4549_v17  ;;  %v4265_v34 = vor.u32 %v6060_v28, %v4262_v30  ;;  %959 = vmatpush.bf16.msra.mxu3 %v4553_v25  ;;  %v4332_v28 = vld [vmem:[#allocation2 + $0x1c8] sm:$0xf] }
  0x22   :  { %v6128_v27 = vld [vmem:[#allocation2 + $0x35c] sm:$0xf0]  ;;  %v4518_v32 = vld [vmem:[#allocation2 + $0x360] sm:$0xf0]  ;;  %v4588_v30 = vld [vmem:[#allocation2 + $0x3c8] sm:$0xf] }
  0x23   :  { %v4517_v33 = vor.u32 %v6128_v27, %v4516_v26  ;;  %v4228_v35 = vld [vmem:[#allocation2 + $0x100] sm:$0xf]  ;;  %v4521_v38 = vor.u32 %v6124_v31, %v4518_v32  ;;  %v6052_v40 = vld [vmem:[#allocation2 + $0x104] sm:$0xf]  ;;  %918 = vmatpush.bf16.msra.mxu0 %v4261_v29  ;;  %946 = vmatpush.bf16.msra.mxu2 %v4265_v34  ;;  %v6081_v29 = vld [vmem:[#allocation2 + $0x1e4] sm:$0xf0] }
  0x24   :  { %v6056_v36 = vld [vmem:[#allocation2 + $0x11c] sm:$0xf0]  ;;  %v4230_v41 = vld [vmem:[#allocation2 + $0x120] sm:$0xf0]  ;;  %v6145_v32 = vld [vmem:[#allocation2 + $0x3e4] sm:$0xf0] }
  0x25   :  { %v4484_v37 = vld [vmem:[#allocation2 + $0x300] sm:$0xf]  ;;  %v6116_v42 = vld [vmem:[#allocation2 + $0x304] sm:$0xf]  ;;  %v4229_v44 = vor.u32 %v6056_v36, %v4228_v35  ;;  %932 = vmatpush.bf16.msra.mxu1 %v4517_v33  ;;  %v4233_v46 = vor.u32 %v6052_v40, %v4230_v41  ;;  %960 = vmatpush.bf16.msra.mxu3 %v4521_v38  ;;  %v6077_v33 = vld [vmem:[#allocation2 + $0x1cc] sm:$0xf]  ;;  %v4333_v40 = vor.u32 %v6081_v29, %v4332_v28 }
  0x26   :  { %v6120_v39 = vld [vmem:[#allocation2 + $0x31c] sm:$0xf0]  ;;  %v4486_v43 = vld [vmem:[#allocation2 + $0x320] sm:$0xf0]  ;;  %v4334_v34 = vld [vmem:[#allocation2 + $0x1e8] sm:$0xf0] }
  0x27   :  { %v4485_v45 = vor.u32 %v6120_v39, %v4484_v37  ;;  %v4196_v47 = vld [vmem:[#allocation2 + $0xc0] sm:$0xf]  ;;  %v4489_v50 = vor.u32 %v6116_v42, %v4486_v43  ;;  %v6044_v52 = vld [vmem:[#allocation2 + $0xc4] sm:$0xf]  ;;  %919 = vmatpush.bf16.msra.mxu0 %v4229_v44  ;;  %947 = vmatpush.bf16.msra.mxu2 %v4233_v46  ;;  %v6141_v37 = vld [vmem:[#allocation2 + $0x3cc] sm:$0xf]  ;;  %v4589_v43 = vor.u32 %v6145_v32, %v4588_v30 }
  0x28   :  { %v6048_v48 = vld [vmem:[#allocation2 + $0xdc] sm:$0xf0]  ;;  %v4198_v53 = vld [vmem:[#allocation2 + $0xe0] sm:$0xf0]  ;;  %v4590_v38 = vld [vmem:[#allocation2 + $0x3e8] sm:$0xf0]  ;;  %v4337_v44 = vor.u32 %v6077_v33, %v4334_v34 }
  0x29   :  { %v4452_v49 = vld [vmem:[#allocation2 + $0x2c0] sm:$0xf]  ;;  %v6108_v54 = vld [vmem:[#allocation2 + $0x2c4] sm:$0xf]  ;;  %v4197_v56 = vor.u32 %v6048_v48, %v4196_v47  ;;  %933 = vmatpush.bf16.msra.mxu1 %v4485_v45  ;;  %v4201_v58 = vor.u32 %v6044_v52, %v4198_v53  ;;  %961 = vmatpush.bf16.msra.mxu3 %v4489_v50  ;;  %v4300_v41 = vld [vmem:[#allocation2 + $0x188] sm:$0xf]  ;;  %v4593_v48 = vor.u32 %v6141_v37, %v4590_v38 }
  0x2a   :  { %v6112_v51 = vld [vmem:[#allocation2 + $0x2dc] sm:$0xf0]  ;;  %v4454_v55 = vld [vmem:[#allocation2 + $0x2e0] sm:$0xf0]  ;;  %v6073_v42 = vld [vmem:[#allocation2 + $0x1a4] sm:$0xf0] }
  0x2b   :  { %v4453_v57 = vor.u32 %v6112_v51, %v4452_v49  ;;  %v4164_v59 = vld [vmem:[#allocation2 + $0x80] sm:$0xf]  ;;  %v4457_v62 = vor.u32 %v6108_v54, %v4454_v55  ;;  %v6036_v0 = vld [vmem:[#allocation2 + $0x84] sm:$0xf]  ;;  %920 = vmatpush.bf16.msra.mxu0 %v4197_v56  ;;  %948 = vmatpush.bf16.msra.mxu2 %v4201_v58  ;;  %v4556_v45 = vld [vmem:[#allocation2 + $0x388] sm:$0xf]  ;;  %v4301_v55 = vor.u32 %v6073_v42, %v4300_v41 }
  0x2c   :  { %v6040_v60 = vld [vmem:[#allocation2 + $0x9c] sm:$0xf0]  ;;  %v4166_v1 = vld [vmem:[#allocation2 + $0xa0] sm:$0xf0]  ;;  %v6137_v46 = vld [vmem:[#allocation2 + $0x3a4] sm:$0xf0] }
  0x2d   :  { %v4420_v61 = vld [vmem:[#allocation2 + $0x280] sm:$0xf]  ;;  %v6100_v2 = vld [vmem:[#allocation2 + $0x284] sm:$0xf]  ;;  %v4165_v4 = vor.u32 %v6040_v60, %v4164_v59  ;;  %934 = vmatpush.bf16.msra.mxu1 %v4453_v57  ;;  %v4169_v6 = vor.u32 %v6036_v0, %v4166_v1  ;;  %962 = vmatpush.bf16.msra.mxu3 %v4457_v62  ;;  %v6069_v47 = vld [vmem:[#allocation2 + $0x18c] sm:$0xf]  ;;  %v4557_v58 = vor.u32 %v6137_v46, %v4556_v45 }
  0x2e   :  { %v6104_v63 = vld [vmem:[#allocation2 + $0x29c] sm:$0xf0]  ;;  %v4422_v3 = vld [vmem:[#allocation2 + $0x2a0] sm:$0xf0]  ;;  %v4302_v49 = vld [vmem:[#allocation2 + $0x1a8] sm:$0xf0] }
  0x2f   :  { %v4421_v5 = vor.u32 %v6104_v63, %v4420_v61  ;;  %v4132_v7 = vld [vmem:[#allocation2 + $0x40] sm:$0xf]  ;;  %v4425_v10 = vor.u32 %v6100_v2, %v4422_v3  ;;  %v6028_v12 = vld [vmem:[#allocation2 + $0x44] sm:$0xf]  ;;  %921 = vmatpush.bf16.msra.mxu0 %v4165_v4  ;;  %949 = vmatpush.bf16.msra.mxu2 %v4169_v6  ;;  %v6133_v50 = vld [vmem:[#allocation2 + $0x38c] sm:$0xf]  ;;  %v4305_v59 = vor.u32 %v6069_v47, %v4302_v49 }
  0x30   :  { %v6032_v8 = vld [vmem:[#allocation2 + $0x5c] sm:$0xf0]  ;;  %v4134_v13 = vld [vmem:[#allocation2 + $0x60] sm:$0xf0]  ;;  %v4558_v51 = vld [vmem:[#allocation2 + $0x3a8] sm:$0xf0] }
  0x31   :  { %v4388_v9 = vld [vmem:[#allocation2 + $0x240] sm:$0xf]  ;;  %v6092_v14 = vld [vmem:[#allocation2 + $0x244] sm:$0xf]  ;;  %v4133_v16 = vor.u32 %v6032_v8, %v4132_v7  ;;  %935 = vmatpush.bf16.msra.mxu1 %v4421_v5  ;;  %v4137_v20 = vor.u32 %v6028_v12, %v4134_v13  ;;  %963 = vmatpush.bf16.msra.mxu3 %v4425_v10  ;;  %v6019_v53 = vld [vmem:[%s6877_s0 + $0x4] sm:$0xf0]  ;;  %v4561_v0 = vor.u32 %v6133_v50, %v4558_v51 }
  0x32   :  { %v6096_v11 = vld [vmem:[#allocation2 + $0x25c] sm:$0xf0]  ;;  %v4390_v15 = vld [vmem:[#allocation2 + $0x260] sm:$0xf0]  ;;  %v4094_v57 = vld [vmem:[%s6877_s0 + $0x8] sm:$0xf0] }
  0x33   :  { %v4100_v17 = vld [vmem:[#allocation2] sm:$0xf]  ;;  %v4389_v19 = vor.u32 %v6096_v11, %v4388_v9  ;;  %v6020_v23 = vld [vmem:[#allocation2 + $0x4] sm:$0xf]  ;;  %v4393_v24 = vor.u32 %v6092_v14, %v4390_v15  ;;  %922 = vmatpush.bf16.msra.mxu0 %v4133_v16  ;;  %950 = vmatpush.bf16.msra.mxu2 %v4137_v20  ;;  %v4268_v60 = vld [vmem:[#allocation2 + $0x148] sm:$0xf] }
  0x34   :  { %v6024_v18 = vld [vmem:[#allocation2 + $0x1c] sm:$0xf0]  ;;  %v4102_v25 = vld [vmem:[#allocation2 + $0x20] sm:$0xf0]  ;;  %v6065_v61 = vld [vmem:[#allocation2 + $0x164] sm:$0xf0] }
  0x35   :  { %v4356_v21 = vld [vmem:[#allocation2 + $0x200] sm:$0xf]  ;;  %v6084_v26 = vld [vmem:[#allocation2 + $0x204] sm:$0xf]  ;;  %v4101_v31 = vor.u32 %v6024_v18, %v4100_v17  ;;  %936 = vmatpush.bf16.msra.mxu1 %v4389_v19  ;;  %v4105_v36 = vor.u32 %v6020_v23, %v4102_v25  ;;  %964 = vmatpush.bf16.msra.mxu3 %v4393_v24  ;;  %v4524_v62 = vld [vmem:[#allocation2 + $0x348] sm:$0xf]  ;;  %v4269_v6 = vor.u32 %v6065_v61, %v4268_v60 }
  0x36   :  { %v6088_v22 = vld [vmem:[#allocation2 + $0x21c] sm:$0xf0]  ;;  %v4358_v27 = vld [vmem:[#allocation2 + $0x220] sm:$0xf0]  ;;  %v6129_v1 = vld [vmem:[#allocation2 + $0x364] sm:$0xf0] }
  0x37   :  { %v4357_v35 = vor.u32 %v6088_v22, %v4356_v21  ;;  %v4361_v39 = vor.u32 %v6084_v26, %v4358_v27  ;;  %923 = vmatpush.bf16.msra.mxu0 %v4101_v31  ;;  %951 = vmatpush.bf16.msra.mxu2 %v4105_v36  ;;  %v4092_v52 = vld [vmem:[%s6877_s0] sm:$0xf]  ;;  %v6018_v54 = vld [vmem:[%s6877_s0 + $0x4] sm:$0xf]  ;;  %v6061_v2 = vld [vmem:[#allocation2 + $0x14c] sm:$0xf]  ;;  %v4525_v7 = vor.u32 %v6129_v1, %v4524_v62 }
  0x38   :  { %v6739_v56 = vor.u32 %v6019_v53, %v4092_v52  ;;  %v6744_v63 = vor.u32 %v6018_v54, %v4094_v57  ;;  %v4270_v3 = vld [vmem:[#allocation2 + $0x168] sm:$0xf0]  ;;  %v4236_v9 = vld [vmem:[#allocation2 + $0x108] sm:$0xf] }
  0x39   :  { %937 = vmatpush.bf16.msra.mxu1 %v4357_v35  ;;  %965 = vmatpush.bf16.msra.mxu3 %v4361_v39  ;;  %v6125_v4 = vld [vmem:[#allocation2 + $0x34c] sm:$0xf]  ;;  %v4273_v8 = vor.u32 %v6061_v2, %v4270_v3  ;;  %v6057_v10 = vld [vmem:[#allocation2 + $0x124] sm:$0xf0] }
  0x3a   :  { %952 = vmatmul.bf16.vlgmr.msra.gmra.mxu2 %v6739_v56  ;;  %v4526_v5 = vld [vmem:[#allocation2 + $0x368] sm:$0xf0]  ;;  %924 = vmatmul.bf16.vlgmr.msra.gmra.mxu0 %v6739_v56  ;;  %v4492_v11 = vld [vmem:[#allocation2 + $0x308] sm:$0xf]  ;;  %v4237_v18 = vor.u32 %v6057_v10, %v4236_v9  ;;  %v6078_v9 = vld [vmem:[#allocation2 + $0x1d4] sm:$0xf] }
  0x3b   :  { %972 = vmatpush.bf16.msrb.mxu0 %v4333_v40  ;;  %1000 = vmatpush.bf16.msrb.mxu2 %v4337_v44  ;;  %v4529_v12 = vor.u32 %v6125_v4, %v4526_v5  ;;  %v6121_v13 = vld [vmem:[#allocation2 + $0x324] sm:$0xf0]  ;;  %v6053_v14 = vld [vmem:[#allocation2 + $0x10c] sm:$0xf]  ;;  %v4340_v4 = vld [vmem:[#allocation2 + $0x1d0] sm:$0xf] }
  0x3c   :  { %966 = vmatmul.bf16.vlgmr.msra.gmra.mxu3 %v6744_v63  ;;  %938 = vmatmul.bf16.vlgmr.msra.gmra.mxu1 %v6744_v63  ;;  %v4238_v15 = vld [vmem:[#allocation2 + $0x128] sm:$0xf0]  ;;  %v4493_v19 = vor.u32 %v6121_v13, %v4492_v11  ;;  %v4204_v21 = vld [vmem:[#allocation2 + $0xc8] sm:$0xf]  ;;  %v6082_v5 = vld [vmem:[#allocation2 + $0x1ec] sm:$0xf0] }
  0x3d   :  { %986 = vmatpush.bf16.msrb.mxu1 %v4589_v43  ;;  %1014 = vmatpush.bf16.msrb.mxu3 %v4593_v48  ;;  %v6117_v16 = vld [vmem:[#allocation2 + $0x30c] sm:$0xf]  ;;  %v4241_v20 = vor.u32 %v6053_v14, %v4238_v15  ;;  %v6049_v22 = vld [vmem:[#allocation2 + $0xe4] sm:$0xf0]  ;;  %v4342_v10 = vld [vmem:[#allocation2 + $0x1f0] sm:$0xf0] }
  0x3e   :  { %v4494_v17 = vld [vmem:[#allocation2 + $0x328] sm:$0xf0]  ;;  %v4460_v23 = vld [vmem:[#allocation2 + $0x2c8] sm:$0xf]  ;;  %v4205_v30 = vor.u32 %v6049_v22, %v4204_v21  ;;  %v6142_v13 = vld [vmem:[#allocation2 + $0x3d4] sm:$0xf] }
  0x3f   :  { %973 = vmatpush.bf16.msrb.mxu0 %v4301_v55  ;;  %1001 = vmatpush.bf16.msrb.mxu2 %v4305_v59  ;;  %v4497_v24 = vor.u32 %v6117_v16, %v4494_v17  ;;  %v6113_v25 = vld [vmem:[#allocation2 + $0x2e4] sm:$0xf0]  ;;  %v6045_v26 = vld [vmem:[#allocation2 + $0xcc] sm:$0xf]  ;;  %v4598_v14 = vld [vmem:[#allocation2 + $0x3f0] sm:$0xf0]  ;;  %v4341_v16 = vor.u32 %v6082_v5, %v4340_v4 }
  0x40   :  { %v4206_v27 = vld [vmem:[#allocation2 + $0xe8] sm:$0xf0]  ;;  %v4461_v31 = vor.u32 %v6113_v25, %v4460_v23  ;;  %v4172_v33 = vld [vmem:[#allocation2 + $0x88] sm:$0xf]  ;;  %v4564_v21 = vld [vmem:[#allocation2 + $0x390] sm:$0xf]  ;;  %v4601_v22 = vor.u32 %v6142_v13, %v4598_v14 }
  0x41   :  { %987 = vmatpush.bf16.msrb.mxu1 %v4557_v58  ;;  %1015 = vmatpush.bf16.msrb.mxu3 %v4561_v0  ;;  %v6109_v28 = vld [vmem:[#allocation2 + $0x2cc] sm:$0xf]  ;;  %v4209_v32 = vor.u32 %v6045_v26, %v4206_v27  ;;  %v6041_v34 = vld [vmem:[#allocation2 + $0xa4] sm:$0xf0]  ;;  %v6138_v23 = vld [vmem:[#allocation2 + $0x3ac] sm:$0xf0] }
  0x42   :  { %v4462_v29 = vld [vmem:[#allocation2 + $0x2e8] sm:$0xf0]  ;;  %v4428_v35 = vld [vmem:[#allocation2 + $0x288] sm:$0xf]  ;;  %v4173_v42 = vor.u32 %v6041_v34, %v4172_v33  ;;  %v4310_v25 = vld [vmem:[#allocation2 + $0x1b0] sm:$0xf0] }
  0x43   :  { %974 = vmatpush.bf16.msrb.mxu0 %v4269_v6  ;;  %1002 = vmatpush.bf16.msrb.mxu2 %v4273_v8  ;;  %v4465_v36 = vor.u32 %v6109_v28, %v4462_v29  ;;  %v6105_v37 = vld [vmem:[#allocation2 + $0x2a4] sm:$0xf0]  ;;  %v6037_v38 = vld [vmem:[#allocation2 + $0x8c] sm:$0xf]  ;;  %v4596_v6 = vld [vmem:[#allocation2 + $0x3d0] sm:$0xf]  ;;  %v4565_v29 = vor.u32 %v6138_v23, %v4564_v21 }
  0x44   :  { %v4174_v39 = vld [vmem:[#allocation2 + $0xa8] sm:$0xf0]  ;;  %v4429_v43 = vor.u32 %v6105_v37, %v4428_v35  ;;  %v4140_v45 = vld [vmem:[#allocation2 + $0x48] sm:$0xf]  ;;  %v6146_v8 = vld [vmem:[#allocation2 + $0x3ec] sm:$0xf0] }
  0x45   :  { %988 = vmatpush.bf16.msrb.mxu1 %v4525_v7  ;;  %1016 = vmatpush.bf16.msrb.mxu3 %v4529_v12  ;;  %v6101_v40 = vld [vmem:[#allocation2 + $0x28c] sm:$0xf]  ;;  %v4177_v44 = vor.u32 %v6037_v38, %v4174_v39  ;;  %v6033_v46 = vld [vmem:[#allocation2 + $0x64] sm:$0xf0]  ;;  %v4597_v17 = vor.u32 %v6146_v8, %v4596_v6  ;;  %v6134_v26 = vld [vmem:[#allocation2 + $0x394] sm:$0xf] }
  0x46   :  { %v4430_v41 = vld [vmem:[#allocation2 + $0x2a8] sm:$0xf0]  ;;  %v4396_v47 = vld [vmem:[#allocation2 + $0x248] sm:$0xf]  ;;  %v4141_v54 = vor.u32 %v6033_v46, %v4140_v45  ;;  %v4566_v27 = vld [vmem:[#allocation2 + $0x3b0] sm:$0xf0] }
  0x47   :  { %975 = vmatpush.bf16.msrb.mxu0 %v4237_v18  ;;  %1003 = vmatpush.bf16.msrb.mxu2 %v4241_v20  ;;  %v4433_v48 = vor.u32 %v6101_v40, %v4430_v41  ;;  %v6097_v49 = vld [vmem:[#allocation2 + $0x264] sm:$0xf0]  ;;  %v6029_v50 = vld [vmem:[#allocation2 + $0x4c] sm:$0xf]  ;;  %v4345_v18 = vor.u32 %v6078_v9, %v4342_v10  ;;  %v6074_v20 = vld [vmem:[#allocation2 + $0x1ac] sm:$0xf0]  ;;  %v4569_v34 = vor.u32 %v6134_v26, %v4566_v27 }
  0x48   :  { %v4142_v51 = vld [vmem:[#allocation2 + $0x68] sm:$0xf0]  ;;  %v4108_v55 = vld [vmem:[#allocation2 + $0x8] sm:$0xf]  ;;  %v4397_v58 = vor.u32 %v6097_v49, %v4396_v47  ;;  %v4532_v33 = vld [vmem:[#allocation2 + $0x350] sm:$0xf] }
  0x49   :  { %989 = vmatpush.bf16.msrb.mxu1 %v4493_v19  ;;  %1017 = vmatpush.bf16.msrb.mxu3 %v4497_v24  ;;  %v6093_v52 = vld [vmem:[#allocation2 + $0x24c] sm:$0xf]  ;;  %v6025_v57 = vld [vmem:[#allocation2 + $0x24] sm:$0xf0]  ;;  %v4145_v59 = vor.u32 %v6029_v50, %v4142_v51  ;;  %v4308_v19 = vld [vmem:[#allocation2 + $0x190] sm:$0xf] }
  0x4a   :  { %v4398_v53 = vld [vmem:[#allocation2 + $0x268] sm:$0xf0]  ;;  %v4364_v60 = vld [vmem:[#allocation2 + $0x208] sm:$0xf]  ;;  %v4109_v7 = vor.u32 %v6025_v57, %v4108_v55  ;;  %v6070_v24 = vld [vmem:[#allocation2 + $0x194] sm:$0xf]  ;;  %v4309_v28 = vor.u32 %v6074_v20, %v4308_v19 }
  0x4b   :  { %976 = vmatpush.bf16.msrb.mxu0 %v4205_v30  ;;  %1004 = vmatpush.bf16.msrb.mxu2 %v4209_v32  ;;  %v6089_v61 = vld [vmem:[#allocation2 + $0x224] sm:$0xf0]  ;;  %v6021_v62 = vld [vmem:[#allocation2 + $0xc] sm:$0xf]  ;;  %v4401_v0 = vor.u32 %v6093_v52, %v4398_v53  ;;  %v4313_v30 = vor.u32 %v6070_v24, %v4310_v25  ;;  %v6066_v32 = vld [vmem:[#allocation2 + $0x16c] sm:$0xf0] }
  0x4c   :  { %v4110_v1 = vld [vmem:[#allocation2 + $0x28] sm:$0xf0]  ;;  %v4365_v11 = vor.u32 %v6089_v61, %v4364_v60  ;;  %v6130_v35 = vld [vmem:[#allocation2 + $0x36c] sm:$0xf0]  ;;  %v4278_v37 = vld [vmem:[#allocation2 + $0x170] sm:$0xf0] }
  0x4d   :  { %990 = vmatpush.bf16.msrb.mxu1 %v4461_v31  ;;  %1018 = vmatpush.bf16.msrb.mxu3 %v4465_v36  ;;  %v6085_v2 = vld [vmem:[#allocation2 + $0x20c] sm:$0xf]  ;;  %v4113_v12 = vor.u32 %v6021_v62, %v4110_v1  ;;  %v4276_v31 = vld [vmem:[#allocation2 + $0x150] sm:$0xf]  ;;  %v6062_v36 = vld [vmem:[#allocation2 + $0x154] sm:$0xf]  ;;  %v4533_v41 = vor.u32 %v6130_v35, %v4532_v33 }
  0x4e   :  { %v4366_v3 = vld [vmem:[#allocation2 + $0x228] sm:$0xf0]  ;;  %v6126_v38 = vld [vmem:[#allocation2 + $0x354] sm:$0xf]  ;;  %v4277_v40 = vor.u32 %v6066_v32, %v4276_v31  ;;  %v4500_v45 = vld [vmem:[#allocation2 + $0x310] sm:$0xf] }
  0x4f   :  { %977 = vmatpush.bf16.msrb.mxu0 %v4173_v42  ;;  %1005 = vmatpush.bf16.msrb.mxu2 %v4177_v44  ;;  %v4369_v15 = vor.u32 %v6085_v2, %v4366_v3  ;;  %v4534_v39 = vld [vmem:[#allocation2 + $0x370] sm:$0xf0]  ;;  %v4281_v42 = vor.u32 %v6062_v36, %v4278_v37  ;;  %v6058_v44 = vld [vmem:[#allocation2 + $0x12c] sm:$0xf0] }
  0x50   :  { %v4537_v46 = vor.u32 %v6126_v38, %v4534_v39  ;;  %v6122_v47 = vld [vmem:[#allocation2 + $0x32c] sm:$0xf0]  ;;  %v4246_v49 = vld [vmem:[#allocation2 + $0x130] sm:$0xf0]  ;;  %v4348_v38 = vld [vmem:[#allocation2 + $0x1d8] sm:$0xf] }
  0x51   :  { %991 = vmatpush.bf16.msrb.mxu1 %v4429_v43  ;;  %1019 = vmatpush.bf16.msrb.mxu3 %v4433_v48  ;;  %v4244_v43 = vld [vmem:[#allocation2 + $0x110] sm:$0xf]  ;;  %v6054_v48 = vld [vmem:[#allocation2 + $0x114] sm:$0xf]  ;;  %v4501_v53 = vor.u32 %v6122_v47, %v4500_v45  ;;  %v6083_v39 = vld [vmem:[#allocation2 + $0x1f4] sm:$0xf0] }
  0x52   :  { %v6118_v50 = vld [vmem:[#allocation2 + $0x314] sm:$0xf]  ;;  %v4245_v52 = vor.u32 %v6058_v44, %v4244_v43  ;;  %v4212_v55 = vld [vmem:[#allocation2 + $0xd0] sm:$0xf]  ;;  %v6079_v43 = vld [vmem:[#allocation2 + $0x1dc] sm:$0xf] }
  0x53   :  { %978 = vmatpush.bf16.msrb.mxu0 %v4141_v54  ;;  %1006 = vmatpush.bf16.msrb.mxu2 %v4145_v59  ;;  %v4502_v51 = vld [vmem:[#allocation2 + $0x330] sm:$0xf0]  ;;  %v4249_v54 = vor.u32 %v6054_v48, %v4246_v49  ;;  %v6050_v57 = vld [vmem:[#allocation2 + $0xec] sm:$0xf0]  ;;  %v4350_v44 = vld [vmem:[#allocation2 + $0x1f8] sm:$0xf0] }
  0x54   :  { %v4505_v59 = vor.u32 %v6118_v50, %v4502_v51  ;;  %v6114_v60 = vld [vmem:[#allocation2 + $0x2ec] sm:$0xf0]  ;;  %v6046_v61 = vld [vmem:[#allocation2 + $0xd4] sm:$0xf]  ;;  %v4213_v2 = vor.u32 %v6050_v57, %v4212_v55  ;;  %v6143_v47 = vld [vmem:[#allocation2 + $0x3dc] sm:$0xf]  ;;  %v4349_v50 = vor.u32 %v6083_v39, %v4348_v38 }
  0x55   :  { %992 = vmatpush.bf16.msrb.mxu1 %v4397_v58  ;;  %1020 = vmatpush.bf16.msrb.mxu3 %v4401_v0  ;;  %v4468_v58 = vld [vmem:[#allocation2 + $0x2d0] sm:$0xf]  ;;  %v4214_v62 = vld [vmem:[#allocation2 + $0xf0] sm:$0xf0]  ;;  %v4606_v48 = vld [vmem:[#allocation2 + $0x3f8] sm:$0xf0] }
  0x56   :  { %v6110_v0 = vld [vmem:[#allocation2 + $0x2d4] sm:$0xf]  ;;  %v4469_v3 = vor.u32 %v6114_v60, %v4468_v58  ;;  %v4217_v4 = vor.u32 %v6046_v61, %v4214_v62  ;;  %v4180_v5 = vld [vmem:[#allocation2 + $0x90] sm:$0xf]  ;;  %v4572_v55 = vld [vmem:[#allocation2 + $0x398] sm:$0xf]  ;;  %v4609_v57 = vor.u32 %v6143_v47, %v4606_v48 }
  0x57   :  { %979 = vmatpush.bf16.msrb.mxu0 %v4109_v7  ;;  %1007 = vmatpush.bf16.msrb.mxu2 %v4113_v12  ;;  %v4470_v1 = vld [vmem:[#allocation2 + $0x2f0] sm:$0xf0]  ;;  %v6042_v6 = vld [vmem:[#allocation2 + $0xac] sm:$0xf0]  ;;  %v6139_v58 = vld [vmem:[#allocation2 + $0x3b4] sm:$0xf0] }
  0x58   :  { %v4436_v7 = vld [vmem:[#allocation2 + $0x290] sm:$0xf]  ;;  %v4473_v8 = vor.u32 %v6110_v0, %v4470_v1  ;;  %v6038_v10 = vld [vmem:[#allocation2 + $0x94] sm:$0xf]  ;;  %v4181_v14 = vor.u32 %v6042_v6, %v4180_v5  ;;  %v4318_v60 = vld [vmem:[#allocation2 + $0x1b8] sm:$0xf0]  ;;  %v4573_v1 = vor.u32 %v6139_v58, %v4572_v55 }
  0x59   :  { %993 = vmatpush.bf16.msrb.mxu1 %v4365_v11  ;;  %1021 = vmatpush.bf16.msrb.mxu3 %v4369_v15  ;;  %v6106_v9 = vld [vmem:[#allocation2 + $0x2ac] sm:$0xf0]  ;;  %v4182_v11 = vld [vmem:[#allocation2 + $0xb0] sm:$0xf0]  ;;  %v6135_v61 = vld [vmem:[#allocation2 + $0x39c] sm:$0xf] }
  0x5a   :  { %980 = vmatmul.bf16.vlgmr.msrb.gmra.mxu0 %v6739_v56  ;;  %1008 = vmatmul.bf16.vlgmr.msrb.gmra.mxu2 %v6739_v56  ;;  %v6102_v12 = vld [vmem:[#allocation2 + $0x294] sm:$0xf]  ;;  %v4437_v15 = vor.u32 %v6106_v9, %v4436_v7  ;;  %v4404_v19 = vld [vmem:[#allocation2 + $0x250] sm:$0xf]  ;;  %v4574_v62 = vld [vmem:[#allocation2 + $0x3b8] sm:$0xf0] }
  0x5b   :  { %1028 = vmatpush.bf16.msra.mxu0 %v4341_v16  ;;  %1056 = vmatpush.bf16.msra.mxu2 %v4345_v18  ;;  %v4438_v13 = vld [vmem:[#allocation2 + $0x2b0] sm:$0xf0]  ;;  %v4185_v16 = vor.u32 %v6038_v10, %v4182_v11  ;;  %v6034_v18 = vld [vmem:[#allocation2 + $0x6c] sm:$0xf0]  ;;  %v4540_v5 = vld [vmem:[#allocation2 + $0x358] sm:$0xf]  ;;  %v4577_v6 = vor.u32 %v6135_v61, %v4574_v62 }
  0x5c   :  { %994 = vmatmul.bf16.vlgmr.msrb.gmra.mxu1 %v6744_v63  ;;  %1022 = vmatmul.bf16.vlgmr.msrb.gmra.mxu3 %v6744_v63  ;;  %v4441_v20 = vor.u32 %v6102_v12, %v4438_v13  ;;  %v6098_v21 = vld [vmem:[#allocation2 + $0x26c] sm:$0xf0]  ;;  %v4150_v23 = vld [vmem:[#allocation2 + $0x70] sm:$0xf0]  ;;  %v6131_v7 = vld [vmem:[#allocation2 + $0x374] sm:$0xf0] }
  0x5d   :  { %1042 = vmatpush.bf16.msra.mxu1 %v4597_v17  ;;  %1070 = vmatpush.bf16.msra.mxu3 %v4601_v22  ;;  %v4148_v17 = vld [vmem:[#allocation2 + $0x50] sm:$0xf]  ;;  %v6030_v22 = vld [vmem:[#allocation2 + $0x54] sm:$0xf]  ;;  %v4286_v9 = vld [vmem:[#allocation2 + $0x178] sm:$0xf0]  ;;  %v4541_v13 = vor.u32 %v6131_v7, %v4540_v5 }
  0x5e   :  { %v6094_v24 = vld [vmem:[#allocation2 + $0x254] sm:$0xf]  ;;  %v4149_v26 = vor.u32 %v6034_v18, %v4148_v17  ;;  %v4116_v27 = vld [vmem:[#allocation2 + $0x10] sm:$0xf]  ;;  %v6127_v10 = vld [vmem:[#allocation2 + $0x35c] sm:$0xf] }
  0x5f   :  { %1029 = vmatpush.bf16.msra.mxu0 %v4309_v28  ;;  %1057 = vmatpush.bf16.msra.mxu2 %v4313_v30  ;;  %v4406_v25 = vld [vmem:[#allocation2 + $0x270] sm:$0xf0]  ;;  %v6026_v28 = vld [vmem:[#allocation2 + $0x2c] sm:$0xf0]  ;;  %v4153_v30 = vor.u32 %v6030_v22, %v4150_v23  ;;  %v4542_v11 = vld [vmem:[#allocation2 + $0x378] sm:$0xf0] }
  0x60   :  { %v4372_v31 = vld [vmem:[#allocation2 + $0x210] sm:$0xf]  ;;  %v6022_v33 = vld [vmem:[#allocation2 + $0x14] sm:$0xf]  ;;  %v4508_v17 = vld [vmem:[#allocation2 + $0x318] sm:$0xf]  ;;  %v4545_v18 = vor.u32 %v6127_v10, %v4542_v11 }
  0x61   :  { %1043 = vmatpush.bf16.msra.mxu1 %v4565_v29  ;;  %1071 = vmatpush.bf16.msra.mxu3 %v4569_v34  ;;  %v4405_v29 = vor.u32 %v6098_v21, %v4404_v19  ;;  %v6090_v32 = vld [vmem:[#allocation2 + $0x22c] sm:$0xf0]  ;;  %v4409_v34 = vor.u32 %v6094_v24, %v4406_v25  ;;  %v4118_v35 = vld [vmem:[#allocation2 + $0x30] sm:$0xf0]  ;;  %v6123_v19 = vld [vmem:[#allocation2 + $0x334] sm:$0xf0] }
  0x62   :  { %v6086_v36 = vld [vmem:[#allocation2 + $0x214] sm:$0xf]  ;;  %v4373_v45 = vor.u32 %v6090_v32, %v4372_v31  ;;  %v4254_v21 = vld [vmem:[#allocation2 + $0x138] sm:$0xf0]  ;;  %v4509_v25 = vor.u32 %v6123_v19, %v4508_v17  ;;  %v6115_v31 = vld [vmem:[#allocation2 + $0x2f4] sm:$0xf0] }
  0x63   :  { %1030 = vmatpush.bf16.msra.mxu0 %v4277_v40  ;;  %1058 = vmatpush.bf16.msra.mxu2 %v4281_v42  ;;  %v4374_v37 = vld [vmem:[#allocation2 + $0x230] sm:$0xf0]  ;;  %v4604_v40 = vld [vmem:[#allocation2 + $0x3d8] sm:$0xf]  ;;  %v6119_v22 = vld [vmem:[#allocation2 + $0x31c] sm:$0xf] }
  0x64   :  { %v6147_v42 = vld [vmem:[#allocation2 + $0x3f4] sm:$0xf0]  ;;  %v4377_v49 = vor.u32 %v6086_v36, %v4374_v37  ;;  %v4510_v23 = vld [vmem:[#allocation2 + $0x338] sm:$0xf0]  ;;  %v4724_v10 = vld [vmem:[#allocation4 + $0xe0] sm:$0xf] }
  0x65   :  { %1044 = vmatpush.bf16.msra.mxu1 %v4533_v41  ;;  %1072 = vmatpush.bf16.msra.mxu3 %v4537_v46  ;;  %v4117_v41 = vor.u32 %v6026_v28, %v4116_v27  ;;  %v4121_v46 = vor.u32 %v6022_v33, %v4118_v35  ;;  %v4605_v51 = vor.u32 %v6147_v42, %v4604_v40  ;;  %v4220_v27 = vld [vmem:[#allocation2 + $0xd8] sm:$0xf]  ;;  %v6047_v32 = vld [vmem:[#allocation2 + $0xdc] sm:$0xf]  ;;  %v6178_v11 = vld [vmem:[#allocation4 + $0xec] sm:$0xf0] }
  0x66   :  { %v6051_v28 = vld [vmem:[#allocation2 + $0xf4] sm:$0xf0]  ;;  %v4222_v33 = vld [vmem:[#allocation2 + $0xf8] sm:$0xf0]  ;;  %v4708_v19 = vld [vmem:[#allocation4 + $0xc0] sm:$0xf] }
  0x67   :  { %1031 = vmatpush.bf16.msra.mxu0 %v4245_v52  ;;  %1059 = vmatpush.bf16.msra.mxu2 %v4249_v54  ;;  %v4353_v52 = vor.u32 %v6079_v43, %v4350_v44  ;;  %v6075_v54 = vld [vmem:[#allocation2 + $0x1b4] sm:$0xf0]  ;;  %v4478_v35 = vld [vmem:[#allocation2 + $0x2f8] sm:$0xf0]  ;;  %v4221_v36 = vor.u32 %v6051_v28, %v4220_v27  ;;  %v4225_v38 = vor.u32 %v6047_v32, %v4222_v33  ;;  %v4820_v28 = vld [vmem:[#allocation4 + $0x1a0] sm:$0xf] }
  0x68   :  { %v4188_v39 = vld [vmem:[#allocation2 + $0x98] sm:$0xf]  ;;  %v6039_v44 = vld [vmem:[#allocation2 + $0x9c] sm:$0xf]  ;;  %v6166_v32 = vld [vmem:[#allocation4 + $0x8c] sm:$0xf0] }
  0x69   :  { %1045 = vmatpush.bf16.msra.mxu1 %v4501_v53  ;;  %1073 = vmatpush.bf16.msra.mxu3 %v4505_v59  ;;  %v4316_v53 = vld [vmem:[#allocation2 + $0x198] sm:$0xf]  ;;  %v6071_v59 = vld [vmem:[#allocation2 + $0x19c] sm:$0xf] }
  0x6a   :  { %v4317_v0 = vor.u32 %v6075_v54, %v4316_v53  ;;  %v6043_v40 = vld [vmem:[#allocation2 + $0xb4] sm:$0xf0]  ;;  %v4446_v47 = vld [vmem:[#allocation2 + $0x2b8] sm:$0xf0] }
  0x6b   :  { %1032 = vmatpush.bf16.msra.mxu0 %v4213_v2  ;;  %1060 = vmatpush.bf16.msra.mxu2 %v4217_v4  ;;  %v4321_v2 = vor.u32 %v6071_v59, %v4318_v60  ;;  %v6067_v4 = vld [vmem:[#allocation2 + $0x174] sm:$0xf0]  ;;  %v4189_v48 = vor.u32 %v6043_v40, %v4188_v39  ;;  %v4158_v58 = vld [vmem:[#allocation2 + $0x78] sm:$0xf0]  ;;  %v4788_v40 = vld [vmem:[#allocation4 + $0x160] sm:$0xf] }
  0x6c   :  { %v6107_v43 = vld [vmem:[#allocation2 + $0x2b4] sm:$0xf0]  ;;  %v6095_v59 = vld [vmem:[#allocation2 + $0x25c] sm:$0xf] }
  0x6d   :  { %1046 = vmatpush.bf16.msra.mxu1 %v4469_v3  ;;  %1074 = vmatpush.bf16.msra.mxu3 %v4473_v8  ;;  %v4284_v3 = vld [vmem:[#allocation2 + $0x158] sm:$0xf]  ;;  %v6063_v8 = vld [vmem:[#allocation2 + $0x15c] sm:$0xf] }
  0x6e   :  { %v4285_v12 = vor.u32 %v6067_v4, %v4284_v3  ;;  %v4412_v53 = vld [vmem:[#allocation2 + $0x258] sm:$0xf]  ;;  %v4414_v60 = vld [vmem:[#allocation2 + $0x278] sm:$0xf0] }
  0x6f   :  { %1033 = vmatpush.bf16.msra.mxu0 %v4181_v14  ;;  %1061 = vmatpush.bf16.msra.mxu2 %v4185_v16  ;;  %v4289_v14 = vor.u32 %v6063_v8, %v4286_v9  ;;  %v6059_v16 = vld [vmem:[#allocation2 + $0x134] sm:$0xf0]  ;;  %v4417_v5 = vor.u32 %v6095_v59, %v4414_v60  ;;  %v4126_v7 = vld [vmem:[#allocation2 + $0x38] sm:$0xf0]  ;;  %v4756_v59 = vld [vmem:[#allocation4 + $0x120] sm:$0xf] }
  0x70   :  { %v6099_v55 = vld [vmem:[#allocation2 + $0x274] sm:$0xf0]  ;;  %v6087_v8 = vld [vmem:[#allocation2 + $0x21c] sm:$0xf]  ;;  %v6186_v60 = vld [vmem:[#allocation4 + $0x12c] sm:$0xf0] }
  0x71   :  { %1047 = vmatpush.bf16.msra.mxu1 %v4437_v15  ;;  %1075 = vmatpush.bf16.msra.mxu3 %v4441_v20  ;;  %v4252_v15 = vld [vmem:[#allocation2 + $0x118] sm:$0xf]  ;;  %v6055_v20 = vld [vmem:[#allocation2 + $0x11c] sm:$0xf] }
  0x72   :  { %v4253_v24 = vor.u32 %v6059_v16, %v4252_v15  ;;  %v4124_v62 = vld [vmem:[#allocation2 + $0x18] sm:$0xf]  ;;  %v4382_v9 = vld [vmem:[#allocation2 + $0x238] sm:$0xf0] }
  0x73   :  { %1034 = vmatpush.bf16.msra.mxu0 %v4149_v26  ;;  %1062 = vmatpush.bf16.msra.mxu2 %v4153_v30  ;;  %v4257_v26 = vor.u32 %v6055_v20, %v4254_v21  ;;  %v4513_v30 = vor.u32 %v6119_v22, %v4510_v23  ;;  %v4380_v3 = vld [vmem:[#allocation2 + $0x218] sm:$0xf]  ;;  %v4385_v17 = vor.u32 %v6087_v8, %v4382_v9  ;;  %v6174_v20 = vld [vmem:[#allocation4 + $0xcc] sm:$0xf0]  ;;  %v4836_v22 = vld [vmem:[#allocation4 + $0x1c0] sm:$0xf] }
  0x74   :  { %v6091_v4 = vld [vmem:[#allocation2 + $0x234] sm:$0xf0]  ;;  %v6206_v23 = vld [vmem:[#allocation4 + $0x1cc] sm:$0xf0] }
  0x75   :  { %1048 = vmatpush.bf16.msra.mxu1 %v4405_v29  ;;  %1076 = vmatpush.bf16.msra.mxu3 %v4409_v34  ;;  %v4476_v29 = vld [vmem:[#allocation2 + $0x2d8] sm:$0xf]  ;;  %v6111_v34 = vld [vmem:[#allocation2 + $0x2dc] sm:$0xf]  ;;  %v4381_v15 = vor.u32 %v6091_v4, %v4380_v3  ;;  %v4837_v27 = vor.u32 %v6206_v23, %v4836_v22  ;;  %v6306_v3 = vld [vmem:[#allocation4 + $0x4ec] sm:$0xf0]  ;;  %v4757_v4 = vor.u32 %v6186_v60, %v4756_v59 }
  0x76   :  { %v4477_v37 = vor.u32 %v6115_v31, %v4476_v29  ;;  %v4481_v42 = vor.u32 %v6111_v34, %v4478_v35  ;;  %v6202_v29 = vld [vmem:[#allocation4 + $0x1ac] sm:$0xf0]  ;;  %v4676_v31 = vld [vmem:[#allocation4 + $0x80] sm:$0xf] }
  0x77   :  { %1035 = vmatpush.bf16.msra.mxu0 %v4117_v41  ;;  %1063 = vmatpush.bf16.msra.mxu2 %v4121_v46  ;;  %v4444_v41 = vld [vmem:[#allocation2 + $0x298] sm:$0xf]  ;;  %v6103_v46 = vld [vmem:[#allocation2 + $0x29c] sm:$0xf]  ;;  %v4821_v33 = vor.u32 %v6202_v29, %v4820_v28  ;;  %v4804_v34 = vld [vmem:[#allocation4 + $0x180] sm:$0xf] }
  0x78   :  { %v4449_v54 = vor.u32 %v6103_v46, %v4446_v47  ;;  %v6198_v35 = vld [vmem:[#allocation4 + $0x18c] sm:$0xf0]  ;;  %v4772_v47 = vld [vmem:[#allocation4 + $0x140] sm:$0xf] }
  0x79   :  { %1049 = vmatpush.bf16.msra.mxu1 %v4373_v45  ;;  %1077 = vmatpush.bf16.msra.mxu3 %v4377_v49  ;;  %v4190_v45 = vld [vmem:[#allocation2 + $0xb8] sm:$0xf0]  ;;  %v4445_v49 = vor.u32 %v6107_v43, %v4444_v41  ;;  %v4805_v39 = vor.u32 %v6198_v35, %v4804_v34  ;;  %v4980_v41 = vld [vmem:[#allocation4 + $0x2e0] sm:$0xf]  ;;  %v6182_v8 = vld [vmem:[#allocation4 + $0x10c] sm:$0xf0] }
  0x7a   :  { %1036 = vmatmul.bf16.vlgmr.msra.gmra.mxu0 %v6739_v56  ;;  %1064 = vmatmul.bf16.vlgmr.msra.gmra.mxu2 %v6739_v56  ;;  %v6230_v22 = vld [vmem:[#allocation4 + $0x28c] sm:$0xf0]  ;;  %v5188_v34 = vld [vmem:[#allocation4 + $0x480] sm:$0xf] }
  0x7b   :  { %1084 = vmatpush.bf16.msrb.mxu0 %v4349_v50  ;;  %1112 = vmatpush.bf16.msrb.mxu2 %v4353_v52  ;;  %v4193_v50 = vor.u32 %v6039_v44, %v4190_v45  ;;  %v6035_v52 = vld [vmem:[#allocation2 + $0x74] sm:$0xf0]  ;;  %v4644_v44 = vld [vmem:[#allocation4 + $0x40] sm:$0xf]  ;;  %v6158_v45 = vld [vmem:[#allocation4 + $0x4c] sm:$0xf0] }
  0x7c   :  { %1050 = vmatmul.bf16.vlgmr.msra.gmra.mxu1 %v6744_v63  ;;  %1078 = vmatmul.bf16.vlgmr.msra.gmra.mxu3 %v6744_v63  ;;  %v6298_v28 = vld [vmem:[#allocation4 + $0x4ac] sm:$0xf0] }
  0x7d   :  { %1098 = vmatpush.bf16.msrb.mxu1 %v4605_v51  ;;  %1126 = vmatpush.bf16.msrb.mxu3 %v4609_v57  ;;  %v4156_v51 = vld [vmem:[#allocation2 + $0x58] sm:$0xf]  ;;  %v6031_v57 = vld [vmem:[#allocation2 + $0x5c] sm:$0xf] }
  0x7e   :  { %v4157_v61 = vor.u32 %v6035_v52, %v4156_v51  ;;  %v6238_v51 = vld [vmem:[#allocation4 + $0x2cc] sm:$0xf0]  ;;  %v5108_v52 = vld [vmem:[#allocation4 + $0x3e0] sm:$0xf] }
  0x7f   :  { %1085 = vmatpush.bf16.msrb.mxu0 %v4317_v0  ;;  %1113 = vmatpush.bf16.msrb.mxu2 %v4321_v2  ;;  %v4413_v0 = vor.u32 %v6099_v55, %v4412_v53  ;;  %v6027_v2 = vld [vmem:[#allocation2 + $0x34] sm:$0xf0]  ;;  %v4628_v53 = vld [vmem:[#allocation4 + $0x20] sm:$0xf] }
  0x81   :  { %1099 = vmatpush.bf16.msrb.mxu1 %v4573_v1  ;;  %1127 = vmatpush.bf16.msrb.mxu3 %v4577_v6  ;;  %v4161_v1 = vor.u32 %v6031_v57, %v4158_v58  ;;  %v6023_v6 = vld [vmem:[#allocation2 + $0x1c] sm:$0xf]  ;;  %v6274_v58 = vld [vmem:[#allocation4 + $0x3ec] sm:$0xf0] }
  0x82   :  { %v4129_v16 = vor.u32 %v6023_v6, %v4126_v7  ;;  %v4948_v6 = vld [vmem:[#allocation4 + $0x2a0] sm:$0xf]  ;;  %v6234_v7 = vld [vmem:[#allocation4 + $0x2ac] sm:$0xf0] }
  0x83   :  { %1086 = vmatpush.bf16.msrb.mxu0 %v4285_v12  ;;  %1114 = vmatpush.bf16.msrb.mxu2 %v4289_v14  ;;  %v4125_v12 = vor.u32 %v6027_v2, %v4124_v62  ;;  %v6210_v14 = vld [vmem:[#allocation4 + $0x1ec] sm:$0xf0]  ;;  %v4612_v62 = vld [vmem:[#allocation4] sm:$0xf]  ;;  %v4949_v9 = vor.u32 %v6234_v7, %v4948_v6 }
  0x84   :  { %v5236_v2 = vld [vmem:[#allocation4 + $0x4e0] sm:$0xf]  ;;  %v6218_v7 = vld [vmem:[#allocation4 + $0x22c] sm:$0xf0] }
  0x85   :  { %1100 = vmatpush.bf16.msrb.mxu1 %v4541_v13  ;;  %1128 = vmatpush.bf16.msrb.mxu3 %v4545_v18  ;;  %v4852_v13 = vld [vmem:[#allocation4 + $0x1e0] sm:$0xf]  ;;  %v4725_v18 = vor.u32 %v6178_v11, %v4724_v10  ;;  %v6270_v11 = vld [vmem:[#allocation4 + $0x3cc] sm:$0xf0] }
  0x86   :  { %v4853_v21 = vor.u32 %v6210_v14, %v4852_v13  ;;  %v5092_v10 = vld [vmem:[#allocation4 + $0x3c0] sm:$0xf]  ;;  %v6338_v13 = vld [vmem:[#allocation4 + $0x5ec] sm:$0xf0] }
  0x87   :  { %1087 = vmatpush.bf16.msrb.mxu0 %v4253_v24  ;;  %1115 = vmatpush.bf16.msrb.mxu2 %v4257_v26  ;;  %v4709_v24 = vor.u32 %v6174_v20, %v4708_v19  ;;  %v6170_v26 = vld [vmem:[#allocation4 + $0xac] sm:$0xf0]  ;;  %v5093_v14 = vor.u32 %v6270_v11, %v5092_v10  ;;  %v4884_v6 = vld [vmem:[#allocation4 + $0x220] sm:$0xf] }
  0x88   :  { %v6302_v19 = vld [vmem:[#allocation4 + $0x4cc] sm:$0xf0]  ;;  %v4885_v11 = vor.u32 %v6218_v7, %v4884_v6  ;;  %v6208_v7 = vld [vmem:[#allocation4 + $0x1e4] sm:$0xf] }
  0x89   :  { %1101 = vmatpush.bf16.msrb.mxu1 %v4509_v25  ;;  %1129 = vmatpush.bf16.msrb.mxu3 %v4513_v30  ;;  %v4692_v25 = vld [vmem:[#allocation4 + $0xa0] sm:$0xf] }
  0x8a   :  { %v4693_v30 = vor.u32 %v6170_v26, %v4692_v25  ;;  %v6334_v25 = vld [vmem:[#allocation4 + $0x5cc] sm:$0xf0] }
  0x8b   :  { %1088 = vmatpush.bf16.msrb.mxu0 %v4221_v36  ;;  %1116 = vmatpush.bf16.msrb.mxu2 %v4225_v38  ;;  %v4677_v36 = vor.u32 %v6166_v32, %v4676_v31  ;;  %v6162_v38 = vld [vmem:[#allocation4 + $0x6c] sm:$0xf0]  ;;  %v5076_v32 = vld [vmem:[#allocation4 + $0x3a0] sm:$0xf] }
  0x8d   :  { %1102 = vmatpush.bf16.msrb.mxu1 %v4477_v37  ;;  %1130 = vmatpush.bf16.msrb.mxu3 %v4481_v42  ;;  %v4660_v37 = vld [vmem:[#allocation4 + $0x60] sm:$0xf]  ;;  %v6242_v42 = vld [vmem:[#allocation4 + $0x2ec] sm:$0xf0] }
  0x8e   :  { %v4981_v43 = vor.u32 %v6242_v42, %v4980_v41 }
  0x8f   :  { %1089 = vmatpush.bf16.msrb.mxu0 %v4189_v48  ;;  %1117 = vmatpush.bf16.msrb.mxu2 %v4193_v50  ;;  %v6190_v48 = vld [vmem:[#allocation4 + $0x14c] sm:$0xf0]  ;;  %v4964_v50 = vld [vmem:[#allocation4 + $0x2c0] sm:$0xf] }
  0x90   :  { %v4773_v55 = vor.u32 %v6190_v48, %v4772_v47  ;;  %v4965_v57 = vor.u32 %v6238_v51, %v4964_v50  ;;  %v5172_v47 = vld [vmem:[#allocation4 + $0x460] sm:$0xf]  ;;  %v6290_v50 = vld [vmem:[#allocation4 + $0x46c] sm:$0xf0] }
  0x91   :  { %1103 = vmatpush.bf16.msrb.mxu1 %v4445_v49  ;;  %1131 = vmatpush.bf16.msrb.mxu3 %v4449_v54  ;;  %v4645_v49 = vor.u32 %v6158_v45, %v4644_v44  ;;  %v6154_v54 = vld [vmem:[#allocation4 + $0x2c] sm:$0xf0]  ;;  %v5060_v45 = vld [vmem:[#allocation4 + $0x380] sm:$0xf]  ;;  %v5173_v51 = vor.u32 %v6290_v50, %v5172_v47 }
  0x92   :  { %v6314_v50 = vld [vmem:[#allocation4 + $0x52c] sm:$0xf0] }
  0x93   :  { %1090 = vmatpush.bf16.msrb.mxu0 %v4157_v61  ;;  %1118 = vmatpush.bf16.msrb.mxu2 %v4161_v1  ;;  %v5109_v61 = vor.u32 %v6274_v58, %v5108_v52  ;;  %v6150_v1 = vld [vmem:[#allocation4 + $0xc] sm:$0xf0]  ;;  %v4900_v52 = vld [vmem:[#allocation4 + $0x240] sm:$0xf] }
  0x94   :  { %v6326_v58 = vld [vmem:[#allocation4 + $0x58c] sm:$0xf0] }
  0x95   :  { %1104 = vmatpush.bf16.msrb.mxu1 %v4413_v0  ;;  %1132 = vmatpush.bf16.msrb.mxu3 %v4417_v5  ;;  %v4629_v0 = vor.u32 %v6154_v54, %v4628_v53  ;;  %v4740_v5 = vld [vmem:[#allocation4 + $0x100] sm:$0xf]  ;;  %v6222_v53 = vld [vmem:[#allocation4 + $0x24c] sm:$0xf0] }
  0x96   :  { %v5316_v54 = vld [vmem:[#allocation4 + $0x580] sm:$0xf] }
  0x97   :  { %1091 = vmatpush.bf16.msrb.mxu0 %v4125_v12  ;;  %1119 = vmatpush.bf16.msrb.mxu2 %v4129_v16  ;;  %v5364_v12 = vld [vmem:[#allocation4 + $0x5e0] sm:$0xf]  ;;  %v5237_v16 = vor.u32 %v6306_v3, %v5236_v2  ;;  %v5317_v60 = vor.u32 %v6326_v58, %v5316_v54  ;;  %v6366_v58 = vld [vmem:[#allocation4 + $0x6cc] sm:$0xf0] }
  0x98   :  { %v5365_v20 = vor.u32 %v6338_v13, %v5364_v12  ;;  %v5156_v3 = vld [vmem:[#allocation4 + $0x440] sm:$0xf]  ;;  %v6322_v12 = vld [vmem:[#allocation4 + $0x56c] sm:$0xf0] }
  0x99   :  { %1105 = vmatpush.bf16.msrb.mxu1 %v4381_v15  ;;  %1133 = vmatpush.bf16.msrb.mxu3 %v4385_v17  ;;  %v4613_v15 = vor.u32 %v6150_v1, %v4612_v62  ;;  %v5220_v17 = vld [vmem:[#allocation4 + $0x4c0] sm:$0xf]  ;;  %v6258_v62 = vld [vmem:[#allocation4 + $0x36c] sm:$0xf0] }
  0x9a   :  { %1092 = vmatmul.bf16.vlgmr.msrb.gmra.mxu0 %v6739_v56  ;;  %1120 = vmatmul.bf16.vlgmr.msrb.gmra.mxu2 %v6739_v56  ;;  %v6194_v56 = vld [vmem:[#allocation4 + $0x16c] sm:$0xf0]  ;;  %v5221_v26 = vor.u32 %v6302_v19, %v5220_v17  ;;  %v5140_v17 = vld [vmem:[#allocation4 + $0x420] sm:$0xf] }
  0x9b   :  { %2710 = vmatpush.bf16.msra.mxu0 %v4725_v18  ;;  %v4789_v46 = vor.u32 %v6194_v56, %v4788_v40  ;;  %2738 = vmatpush.bf16.msra.mxu2 %v4981_v43  ;;  %v4741_v18 = vor.u32 %v6182_v8, %v4740_v5  ;;  %v6226_v40 = vld [vmem:[#allocation4 + $0x26c] sm:$0xf0]  ;;  %v5332_v56 = vld [vmem:[#allocation4 + $0x5a0] sm:$0xf] }
  0x9c   :  { %1106 = vmatmul.bf16.vlgmr.msrb.gmra.mxu1 %v6744_v63  ;;  %1134 = vmatmul.bf16.vlgmr.msrb.gmra.mxu3 %v6744_v63  ;;  %v4661_v63 = vor.u32 %v6162_v38, %v4660_v37  ;;  %v6294_v37 = vld [vmem:[#allocation4 + $0x48c] sm:$0xf0]  ;;  %v5300_v8 = vld [vmem:[#allocation4 + $0x560] sm:$0xf] }
  0x9d   :  { %2724 = vmatpush.bf16.msra.mxu1 %v4853_v21  ;;  %2752 = vmatpush.bf16.msra.mxu3 %v5109_v61  ;;  %v4932_v21 = vld [vmem:[#allocation4 + $0x280] sm:$0xf]  ;;  %v5189_v38 = vor.u32 %v6294_v37, %v5188_v34 }
  0x9e   :  { %v4933_v23 = vor.u32 %v6230_v22, %v4932_v21  ;;  %v5044_v61 = vld [vmem:[#allocation4 + $0x360] sm:$0xf]  ;;  %v6282_v21 = vld [vmem:[#allocation4 + $0x42c] sm:$0xf0] }
  0x9f   :  { %2711 = vmatpush.bf16.msra.mxu0 %v4709_v24  ;;  %2739 = vmatpush.bf16.msra.mxu2 %v4965_v57  ;;  %v5348_v24 = vld [vmem:[#allocation4 + $0x5c0] sm:$0xf]  ;;  %v4901_v57 = vor.u32 %v6222_v53, %v4900_v52  ;;  %v5045_v2 = vor.u32 %v6258_v62, %v5044_v61  ;;  %v6246_v53 = vld [vmem:[#allocation4 + $0x30c] sm:$0xf0]  ;;  %v4710_v61 = vld [vmem:[#allocation4 + $0xd0] sm:$0xf0] }
  0xa0   :  { %v5349_v29 = vor.u32 %v6334_v25, %v5348_v24  ;;  %v4868_v24 = vld [vmem:[#allocation4 + $0x200] sm:$0xf]  ;;  %v6214_v25 = vld [vmem:[#allocation4 + $0x20c] sm:$0xf0] }
  0xa1   :  { %2725 = vmatpush.bf16.msra.mxu1 %v4837_v27  ;;  %2753 = vmatpush.bf16.msra.mxu3 %v5093_v14  ;;  %v5204_v27 = vld [vmem:[#allocation4 + $0x4a0] sm:$0xf]  ;;  %v5301_v14 = vor.u32 %v6322_v12, %v5300_v8  ;;  %v4854_v8 = vld [vmem:[#allocation4 + $0x1f0] sm:$0xf0]  ;;  %v6168_v12 = vld [vmem:[#allocation4 + $0xa4] sm:$0xf] }
  0xa2   :  { %v5205_v31 = vor.u32 %v6298_v28, %v5204_v27  ;;  %v4869_v28 = vor.u32 %v6214_v25, %v4868_v24  ;;  %v5012_v34 = vld [vmem:[#allocation4 + $0x320] sm:$0xf]  ;;  %v6164_v24 = vld [vmem:[#allocation4 + $0x84] sm:$0xf] }
  0xa3   :  { %2712 = vmatpush.bf16.msra.mxu0 %v4693_v30  ;;  %2740 = vmatpush.bf16.msra.mxu2 %v4949_v9  ;;  %v6765_v30 = vld [vmem:[%s6879_s2] sm:$0xff] }
  0xa4   :  { %v250_v35 = vperm.slane %v6765_v30, 0  ;;  %v4996_v52 = vld [vmem:[#allocation4 + $0x300] sm:$0xf]  ;;  %v252_v25 = vperm.slane %v6765_v30, 2 }
  0xa5   :  { %2726 = vmatpush.bf16.msra.mxu1 %v4821_v33  ;;  %v6266_v33 = vld [vmem:[#allocation4 + $0x3ac] sm:$0xf0]  ;;  %v5252_v62 = vld [vmem:[#allocation4 + $0x500] sm:$0xf] }
  0xa7   :  { %2713 = vmatpush.bf16.msra.mxu0 %v4677_v36  ;;  %2741 = vmatpush.bf16.msra.mxu2 %v4933_v23  ;;  %v5077_v36 = vor.u32 %v6266_v33, %v5076_v32  ;;  %v5141_v23 = vor.u32 %v6282_v21, %v5140_v17  ;;  %v6204_v17 = vld [vmem:[#allocation4 + $0x1c4] sm:$0xf] }
  0xa9   :  { %2727 = vmatpush.bf16.msra.mxu1 %v4805_v39  ;;  %v4916_v39 = vld [vmem:[#allocation4 + $0x260] sm:$0xf]  ;;  %2754 = vmatpush.bf16.msra.mxu3 %v5077_v36 }
  0xaa   :  { %v4917_v42 = vor.u32 %v6226_v40, %v4916_v39  ;;  %v5124_v39 = vld [vmem:[#allocation4 + $0x400] sm:$0xf]  ;;  %v6278_v40 = vld [vmem:[#allocation4 + $0x40c] sm:$0xf0] }
  0xab   :  { %2714 = vmatpush.bf16.msra.mxu0 %v4661_v63  ;;  %v6330_v63 = vld [vmem:[#allocation4 + $0x5ac] sm:$0xf0] }
  0xac   :  { %v5333_v44 = vor.u32 %v6330_v63, %v5332_v56  ;;  %2742 = vmatpush.bf16.msra.mxu2 %v4917_v42  ;;  %v5492_v56 = vld [vmem:[#allocation4 + $0x6e0] sm:$0xf]  ;;  %v5125_v42 = vor.u32 %v6278_v40, %v5124_v39  ;;  %v6370_v63 = vld [vmem:[#allocation4 + $0x6ec] sm:$0xf0]  ;;  %v6160_v40 = vld [vmem:[#allocation4 + $0x64] sm:$0xf] }
  0xad   :  { %2728 = vmatpush.bf16.msra.mxu1 %v4789_v46  ;;  %v6262_v46 = vld [vmem:[#allocation4 + $0x38c] sm:$0xf0]  ;;  %v5493_v47 = vor.u32 %v6370_v63, %v5492_v56  ;;  %v4662_v63 = vld [vmem:[#allocation4 + $0x70] sm:$0xf0] }
  0xae   :  { %v6354_v39 = vld [vmem:[#allocation4 + $0x66c] sm:$0xf0] }
  0xaf   :  { %2715 = vmatpush.bf16.msra.mxu0 %v4645_v49  ;;  %v5061_v49 = vor.u32 %v6262_v46, %v5060_v45 }
  0xb0   :  { %2743 = vmatpush.bf16.msra.mxu2 %v4901_v57  ;;  %v5476_v57 = vld [vmem:[#allocation4 + $0x6c0] sm:$0xf] }
  0xb1   :  { %2729 = vmatpush.bf16.msra.mxu1 %v4773_v55  ;;  %v251_v55 = vperm.slane %v6765_v30, 1  ;;  %2755 = vmatpush.bf16.msra.mxu3 %v5061_v49  ;;  %v5268_v49 = vld [vmem:[#allocation4 + $0x520] sm:$0xf] }
  0xb3   :  { %2716 = vmatpush.bf16.msra.mxu0 %v4629_v0 }
  0xb4   :  { %2744 = vmatpush.bf16.msra.mxu2 %v4885_v11  ;;  %v6362_v11 = vld [vmem:[#allocation4 + $0x6ac] sm:$0xf0] }
  0xb5   :  { %2730 = vmatpush.bf16.msra.mxu1 %v4757_v4  ;;  %v6286_v4 = vld [vmem:[#allocation4 + $0x44c] sm:$0xf0]  ;;  %2756 = vmatpush.bf16.msra.mxu3 %v5045_v2 }
  0xb6   :  { %v5157_v5 = vor.u32 %v6286_v4, %v5156_v3  ;;  %v6310_v2 = vld [vmem:[#allocation4 + $0x50c] sm:$0xf0]  ;;  %v5620_v3 = vld [vmem:[#allocation4 + $0x7e0] sm:$0xf] }
  0xb7   :  { %2717 = vmatpush.bf16.msra.mxu0 %v4613_v15  ;;  %v925_v41 = vpop.f32.mrf.mxu0  ;;  %v5028_v15 = vld [vmem:[#allocation4 + $0x340] sm:$0xf]  ;;  %v6402_v4 = vld [vmem:[#allocation4 + $0x7ec] sm:$0xf0] }
  0xb8   :  { %v926_v48 = vadd.f32 %v925_v41, %v250_v35  ;;  %2745 = vmatpush.bf16.msra.mxu2 %v4869_v28  ;;  %v5621_v6 = vor.u32 %v6402_v4, %v5620_v3  ;;  %v4790_v4 = vld [vmem:[#allocation4 + $0x170] sm:$0xf0] }
  0xb9   :  { %2731 = vmatpush.bf16.msra.mxu1 %v4741_v18  ;;  %v939_v43 = vpop.f32.mrf.mxu1 }
  0xba   :  { %v940_v0 = vadd.f32 %v939_v43, %v926_v48  ;;  %v6176_v43 = vld [vmem:[#allocation4 + $0xe4] sm:$0xf] }
  0xbb   :  { %2766 = vmatpush.bf16.msrb.mxu0 %v5237_v16  ;;  %v6254_v16 = vld [vmem:[#allocation4 + $0x34c] sm:$0xf0] }
  0xbc   :  { %v1140_v18 = vmax.f32 %v940_v0, 0.0  ;;  %2794 = vmatpush.bf16.msrb.mxu2 %v5493_v47  ;;  %v6196_v47 = vld [vmem:[#allocation4 + $0x184] sm:$0xf] }
  0xbd   :  { %2780 = vmatpush.bf16.msrb.mxu1 %v5365_v20  ;;  %v953_v59 = vpop.f32.mrf.mxu2  ;;  %v5029_v20 = vor.u32 %v6254_v16, %v5028_v15  ;;  %v5604_v15 = vld [vmem:[#allocation4 + $0x7c0] sm:$0xf]  ;;  %v6398_v16 = vld [vmem:[#allocation4 + $0x7cc] sm:$0xf0] }
  0xbe   :  { %v954_v9 = vadd.f32 %v953_v59, %v251_v55  ;;  %v5477_v59 = vor.u32 %v6366_v58, %v5476_v57  ;;  %v4646_v57 = vld [vmem:[#allocation4 + $0x50] sm:$0xf0] }
  0xbf   :  { %2767 = vmatpush.bf16.msrb.mxu0 %v5221_v26  ;;  %v967_v1 = vpop.f32.mrf.mxu3  ;;  %v927_v10 = vpop.f32.mrf.mxu0  ;;  %v5284_v26 = vld [vmem:[#allocation4 + $0x540] sm:$0xf]  ;;  %2757 = vmatpush.bf16.msra.mxu3 %v5029_v20  ;;  %v4838_v20 = vld [vmem:[#allocation4 + $0x1d0] sm:$0xf0] }
  0xc0   :  { %v928_v13 = vadd.f32 %v927_v10, %v250_v35  ;;  %v968_v27 = vadd.f32 %v967_v1, %v954_v9  ;;  %v6250_v35 = vld [vmem:[#allocation4 + $0x32c] sm:$0xf0]  ;;  %v5460_v9 = vld [vmem:[#allocation4 + $0x6a0] sm:$0xf]  ;;  %2795 = vmatpush.bf16.msrb.mxu2 %v5477_v59  ;;  %v4857_v10 = vor.u32 %v6208_v7, %v4854_v8  ;;  %v4841_v21 = vor.u32 %v6204_v17, %v4838_v20 }
  0xc1   :  { %2781 = vmatpush.bf16.msrb.mxu1 %v5349_v29  ;;  %v941_v19 = vpop.f32.mrf.mxu1  ;;  %v6318_v29 = vld [vmem:[#allocation4 + $0x54c] sm:$0xf0]  ;;  %v5396_v8 = vld [vmem:[#allocation4 + $0x620] sm:$0xf] }
  0xc2   :  { %v942_v22 = vadd.f32 %v941_v19, %v928_v13  ;;  %v5285_v33 = vor.u32 %v6318_v29, %v5284_v26  ;;  %v1141_v45 = vmax.f32 %v968_v27, 0.0  ;;  %v4694_v13 = vld [vmem:[#allocation4 + $0xb0] sm:$0xf0]  ;;  %v5605_v19 = vor.u32 %v6398_v16, %v5604_v15  ;;  %v5588_v29 = vld [vmem:[#allocation4 + $0x7a0] sm:$0xf] }
  0xc3   :  { %2768 = vmatpush.bf16.msrb.mxu0 %v5205_v31  ;;  %v4678_v27 = vld [vmem:[#allocation4 + $0x90] sm:$0xf0]  ;;  %v5540_v17 = vld [vmem:[#allocation4 + $0x740] sm:$0xf] }
  0xc4   :  { %v1148_v31 = vmax.f32 %v942_v22, 0.0  ;;  %v5444_v22 = vld [vmem:[#allocation4 + $0x680] sm:$0xf]  ;;  %v4681_v28 = vor.u32 %v6164_v24, %v4678_v27 }
  0xc5   :  { %2782 = vmatpush.bf16.msrb.mxu1 %v5333_v44  ;;  %v955_v32 = vpop.f32.mrf.mxu2  ;;  %v4726_v44 = vld [vmem:[#allocation4 + $0xf0] sm:$0xf0]  ;;  %v5380_v24 = vld [vmem:[#allocation4 + $0x600] sm:$0xf] }
  0xc6   :  { %v956_v36 = vadd.f32 %v955_v32, %v251_v55  ;;  %v6769_v41 = vpack.c.bf16 %v1148_v31, %v1140_v18  ;;  %v4729_v48 = vor.u32 %v6176_v43, %v4726_v44  ;;  %v4997_v55 = vor.u32 %v6246_v53, %v4996_v52  ;;  %v6394_v31 = vld [vmem:[#allocation4 + $0x7ac] sm:$0xf0]  ;;  %v6200_v32 = vld [vmem:[#allocation4 + $0x1a4] sm:$0xf]  ;;  %v5572_v44 = vld [vmem:[#allocation4 + $0x780] sm:$0xf] }
  0xc7   :  { %2769 = vmatpush.bf16.msrb.mxu0 %v5189_v38  ;;  %v969_v37 = vpop.f32.mrf.mxu3  ;;  %v5013_v38 = vor.u32 %v6250_v35, %v5012_v34  ;;  %v4697_v18 = vor.u32 %v6168_v12, %v4694_v13  ;;  %v5589_v34 = vor.u32 %v6394_v31, %v5588_v29  ;;  %v4822_v35 = vld [vmem:[#allocation4 + $0x1b0] sm:$0xf0]  ;;  %v4665_v43 = vor.u32 %v6160_v40, %v4662_v63  ;;  %v6240_v31 = vld [vmem:[#allocation4 + $0x2e4] sm:$0xf]  ;;  %v6378_v40 = vld [vmem:[#allocation4 + $0x72c] sm:$0xf0] }
  0xc8   :  { %v970_v46 = vadd.f32 %v969_v37, %v956_v36  ;;  %2718 = vmatmul.bf16.vlgmr.msra.gmra.mxu0 %v6769_v41  ;;  %v4825_v37 = vor.u32 %v6200_v32, %v4822_v35  ;;  %v253_v53 = vperm.slane %v6765_v30, 3  ;;  %v4614_v29 = vld [vmem:[#allocation4 + $0x10] sm:$0xf0] }
  0xc9   :  { %2783 = vmatpush.bf16.msrb.mxu1 %v5317_v60  ;;  %2758 = vmatpush.bf16.msra.mxu3 %v5013_v38  ;;  %v6172_v60 = vld [vmem:[#allocation4 + $0xc4] sm:$0xf]  ;;  %v5428_v38 = vld [vmem:[#allocation4 + $0x660] sm:$0xf]  ;;  %v4982_v35 = vld [vmem:[#allocation4 + $0x2f0] sm:$0xf0] }
  0xca   :  { %v1149_v54 = vmax.f32 %v970_v46, 0.0  ;;  %v4713_v1 = vor.u32 %v6172_v60, %v4710_v61  ;;  %v5556_v60 = vld [vmem:[#allocation4 + $0x760] sm:$0xf]  ;;  %v6386_v61 = vld [vmem:[#allocation4 + $0x76c] sm:$0xf0] }
  0xcb   :  { %2770 = vmatpush.bf16.msrb.mxu0 %v5173_v51  ;;  %v5269_v51 = vor.u32 %v6314_v50, %v5268_v49  ;;  %v5412_v50 = vld [vmem:[#allocation4 + $0x640] sm:$0xf]  ;;  %v5557_v3 = vor.u32 %v6386_v61, %v5556_v60  ;;  %v4758_v63 = vld [vmem:[#allocation4 + $0x130] sm:$0xf0]  ;;  %v6232_v61 = vld [vmem:[#allocation4 + $0x2a4] sm:$0xf] }
  0xcc   :  { %v6772_v0 = vpack.c.bf16 %v1149_v54, %v1141_v45  ;;  %v6390_v45 = vld [vmem:[#allocation4 + $0x78c] sm:$0xf0] }
  0xcd   :  { %2784 = vmatpush.bf16.msrb.mxu1 %v5301_v14  ;;  %2759 = vmatpush.bf16.msra.mxu3 %v4997_v55  ;;  %v5461_v14 = vor.u32 %v6362_v11, %v5460_v9  ;;  %v5573_v46 = vor.u32 %v6390_v45, %v5572_v44  ;;  %v6156_v55 = vld [vmem:[#allocation4 + $0x44] sm:$0xf]  ;;  %v6346_v9 = vld [vmem:[#allocation4 + $0x62c] sm:$0xf0] }
  0xce   :  { %2732 = vmatmul.bf16.vlgmr.msra.gmra.mxu1 %v6772_v0  ;;  %v4649_v59 = vor.u32 %v6156_v55, %v4646_v57  ;;  %v5397_v13 = vor.u32 %v6346_v9, %v5396_v8  ;;  %v6272_v57 = vld [vmem:[#allocation4 + $0x3e4] sm:$0xf]  ;;  %v5078_v9 = vld [vmem:[#allocation4 + $0x3b0] sm:$0xf0] }
  0xcf   :  { %2771 = vmatpush.bf16.msrb.mxu0 %v5157_v5  ;;  %v5253_v5 = vor.u32 %v6310_v2, %v5252_v62  ;;  %2796 = vmatpush.bf16.msrb.mxu2 %v5461_v14  ;;  %v6192_v62 = vld [vmem:[#allocation4 + $0x164] sm:$0xf]  ;;  %v4630_v14 = vld [vmem:[#allocation4 + $0x30] sm:$0xf0] }
  0xd0   :  { %v4793_v7 = vor.u32 %v6192_v62, %v4790_v4  ;;  %v4950_v62 = vld [vmem:[#allocation4 + $0x2b0] sm:$0xf0]  ;;  %v6264_v8 = vld [vmem:[#allocation4 + $0x3a4] sm:$0xf] }
  0xd1   :  { %2785 = vmatpush.bf16.msrb.mxu1 %v5285_v33  ;;  %2808 = vmatpush.bf16.msrb.mxu3 %v5621_v6 }
  0xd3   :  { %2772 = vmatpush.bf16.msrb.mxu0 %v5141_v23  ;;  %v6358_v23 = vld [vmem:[#allocation4 + $0x68c] sm:$0xf0] }
  0xd4   :  { %v5445_v26 = vor.u32 %v6358_v23, %v5444_v22 }
  0xd5   :  { %2786 = vmatpush.bf16.msrb.mxu1 %v5269_v51  ;;  %2809 = vmatpush.bf16.msrb.mxu3 %v5605_v19  ;;  %v6350_v51 = vld [vmem:[#allocation4 + $0x64c] sm:$0xf0]  ;;  %v6188_v19 = vld [vmem:[#allocation4 + $0x144] sm:$0xf] }
  0xd6   :  { %2797 = vmatpush.bf16.msrb.mxu2 %v5445_v26  ;;  %v5413_v54 = vor.u32 %v6350_v51, %v5412_v50  ;;  %v6374_v50 = vld [vmem:[#allocation4 + $0x70c] sm:$0xf0] }
  0xd7   :  { %2773 = vmatpush.bf16.msrb.mxu0 %v5125_v42  ;;  %v981_v33 = vpop.f32.mrf.mxu0  ;;  %v5429_v42 = vor.u32 %v6354_v39, %v5428_v38  ;;  %v4985_v38 = vor.u32 %v6240_v31, %v4982_v35  ;;  %v5524_v39 = vld [vmem:[#allocation4 + $0x720] sm:$0xf]  ;;  %v4886_v35 = vld [vmem:[#allocation4 + $0x230] sm:$0xf0] }
  0xd8   :  { %v982_v56 = vadd.f32 %v981_v33, %v252_v25 }
  0xd9   :  { %2787 = vmatpush.bf16.msrb.mxu1 %v5253_v5  ;;  %v995_v36 = vpop.f32.mrf.mxu1  ;;  %2810 = vmatpush.bf16.msrb.mxu3 %v5589_v34 }
  0xda   :  { %2798 = vmatpush.bf16.msrb.mxu2 %v5429_v42  ;;  %v996_v52 = vadd.f32 %v995_v36, %v982_v56  ;;  %v6184_v56 = vld [vmem:[#allocation4 + $0x124] sm:$0xf]  ;;  %v5525_v42 = vor.u32 %v6378_v40, %v5524_v39 }
  0xdb   :  { %2822 = vmatpush.bf16.msra.mxu0 %v4729_v48  ;;  %v4806_v48 = vld [vmem:[#allocation4 + $0x190] sm:$0xf0]  ;;  %v4761_v45 = vor.u32 %v6184_v56, %v4758_v63  ;;  %v6252_v40 = vld [vmem:[#allocation4 + $0x344] sm:$0xf] }
  0xdc   :  { %v4809_v49 = vor.u32 %v6196_v47, %v4806_v48  ;;  %v1142_v11 = vmax.f32 %v996_v52, 0.0  ;;  %v4966_v47 = vld [vmem:[#allocation4 + $0x2d0] sm:$0xf0]  ;;  %v6180_v52 = vld [vmem:[#allocation4 + $0x104] sm:$0xf] }
  0xdd   :  { %2836 = vmatpush.bf16.msra.mxu1 %v4857_v10  ;;  %2811 = vmatpush.bf16.msrb.mxu3 %v5573_v46  ;;  %v1009_v58 = vpop.f32.mrf.mxu2  ;;  %v6152_v10 = vld [vmem:[#allocation4 + $0x24] sm:$0xf]  ;;  %v5030_v56 = vld [vmem:[#allocation4 + $0x350] sm:$0xf0] }
  0xde   :  { %2799 = vmatpush.bf16.msrb.mxu2 %v5413_v54  ;;  %v1010_v12 = vadd.f32 %v1009_v58, %v253_v53  ;;  %v4633_v16 = vor.u32 %v6152_v10, %v4630_v14  ;;  %v6236_v46 = vld [vmem:[#allocation4 + $0x2c4] sm:$0xf]  ;;  %v5110_v58 = vld [vmem:[#allocation4 + $0x3f0] sm:$0xf0]  ;;  %v254_v10 = vperm.slane %v6765_v30, 4 }
  0xdf   :  { %2823 = vmatpush.bf16.msra.mxu0 %v4713_v1  ;;  %v983_v1 = vpop.f32.mrf.mxu0  ;;  %v1023_v2 = vpop.f32.mrf.mxu3  ;;  %v4969_v48 = vor.u32 %v6236_v46, %v4966_v47  ;;  %v5113_v60 = vor.u32 %v6272_v57, %v5110_v58  ;;  %v4918_v14 = vld [vmem:[#allocation4 + $0x270] sm:$0xf0]  ;;  %v6212_v46 = vld [vmem:[#allocation4 + $0x204] sm:$0xf] }
  0xe0   :  { %v984_v5 = vadd.f32 %v983_v1, %v252_v25  ;;  %v6342_v25 = vld [vmem:[#allocation4 + $0x60c] sm:$0xf0]  ;;  %v1024_v26 = vadd.f32 %v1023_v2, %v1010_v12  ;;  %v4953_v1 = vor.u32 %v6232_v61, %v4950_v62  ;;  %v6268_v2 = vld [vmem:[#allocation4 + $0x3c4] sm:$0xf]  ;;  %v5081_v12 = vor.u32 %v6264_v8, %v5078_v9  ;;  %v4870_v47 = vld [vmem:[#allocation4 + $0x210] sm:$0xf0] }
  0xe1   :  { %2837 = vmatpush.bf16.msra.mxu1 %v4841_v21  ;;  %v997_v6 = vpop.f32.mrf.mxu1  ;;  %2812 = vmatpush.bf16.msrb.mxu3 %v5557_v3  ;;  %v4774_v21 = vld [vmem:[#allocation4 + $0x150] sm:$0xf0]  ;;  %v5381_v27 = vor.u32 %v6342_v25, %v5380_v24  ;;  %v255_v24 = vperm.slane %v6765_v30, 5  ;;  %v6256_v25 = vld [vmem:[#allocation4 + $0x364] sm:$0xf] }
  0xe2   :  { %v998_v15 = vadd.f32 %v997_v6, %v984_v5  ;;  %2800 = vmatpush.bf16.msrb.mxu2 %v5397_v13  ;;  %v4777_v23 = vor.u32 %v6188_v19, %v4774_v21  ;;  %v5094_v3 = vld [vmem:[#allocation4 + $0x3d0] sm:$0xf0]  ;;  %v6228_v5 = vld [vmem:[#allocation4 + $0x284] sm:$0xf] }
  0xe3   :  { %2824 = vmatpush.bf16.msra.mxu0 %v4697_v18  ;;  %v6382_v18 = vld [vmem:[#allocation4 + $0x74c] sm:$0xf0]  ;;  %v5097_v4 = vor.u32 %v6268_v2, %v5094_v3  ;;  %v4934_v6 = vld [vmem:[#allocation4 + $0x290] sm:$0xf0]  ;;  %v6224_v13 = vld [vmem:[#allocation4 + $0x264] sm:$0xf] }
  0xe4   :  { %v5541_v20 = vor.u32 %v6382_v18, %v5540_v17  ;;  %v1150_v22 = vmax.f32 %v998_v15, 0.0  ;;  %v6260_v17 = vld [vmem:[#allocation4 + $0x384] sm:$0xf]  ;;  %v5062_v18 = vld [vmem:[#allocation4 + $0x390] sm:$0xf0] }
  0xe5   :  { %2838 = vmatpush.bf16.msra.mxu1 %v4825_v37  ;;  %v1011_v33 = vpop.f32.mrf.mxu2  ;;  %v6220_v21 = vld [vmem:[#allocation4 + $0x244] sm:$0xf]  ;;  %v5014_v58 = vld [vmem:[#allocation4 + $0x330] sm:$0xf0] }
  0xe6   :  { %2813 = vmatpush.bf16.msrb.mxu3 %v5541_v20  ;;  %v6777_v32 = vpack.c.bf16 %v1150_v22, %v1142_v11  ;;  %v1012_v36 = vadd.f32 %v1011_v33, %v253_v53  ;;  %2801 = vmatpush.bf16.msrb.mxu2 %v5381_v27  ;;  %v4742_v53 = vld [vmem:[#allocation4 + $0x110] sm:$0xf0]  ;;  %v5065_v20 = vor.u32 %v6260_v17, %v5062_v18  ;;  %v6248_v57 = vld [vmem:[#allocation4 + $0x324] sm:$0xf] }
  0xe7   :  { %2825 = vmatpush.bf16.msra.mxu0 %v4681_v28  ;;  %v6148_v28 = vld [vmem:[#allocation4 + $0x4] sm:$0xf]  ;;  %v1025_v37 = vpop.f32.mrf.mxu3  ;;  %v4745_v55 = vor.u32 %v6180_v52, %v4742_v53  ;;  %v4902_v22 = vld [vmem:[#allocation4 + $0x250] sm:$0xf0]  ;;  %v5017_v62 = vor.u32 %v6248_v57, %v5014_v58 }
  0xe8   :  { %v4617_v34 = vor.u32 %v6148_v28, %v4614_v29  ;;  %2746 = vmatmul.bf16.vlgmr.msra.gmra.mxu2 %v6777_v32  ;;  %v1026_v44 = vadd.f32 %v1025_v37, %v1012_v36  ;;  %v6300_v52 = vld [vmem:[#allocation4 + $0x4c4] sm:$0xf]  ;;  %v5366_v2 = vld [vmem:[#allocation4 + $0x5f0] sm:$0xf0] }
  0xe9   :  { %2839 = vmatpush.bf16.msra.mxu1 %v4809_v49  ;;  %v5508_v49 = vld [vmem:[#allocation4 + $0x700] sm:$0xf]  ;;  %v6296_v8 = vld [vmem:[#allocation4 + $0x4a4] sm:$0xf]  ;;  %v5206_v9 = vld [vmem:[#allocation4 + $0x4b0] sm:$0xf0] }
  0xea   :  { %2850 = vmatpush.bf16.msra.mxu2 %v4985_v38  ;;  %v1151_v51 = vmax.f32 %v1026_v44, 0.0  ;;  %2814 = vmatpush.bf16.msrb.mxu3 %v5525_v42  ;;  %v5509_v54 = vor.u32 %v6374_v50, %v5508_v49  ;;  %v5238_v44 = vld [vmem:[#allocation4 + $0x4f0] sm:$0xf0]  ;;  %v4873_v49 = vor.u32 %v6212_v46, %v4870_v47  ;;  %v6292_v17 = vld [vmem:[#allocation4 + $0x484] sm:$0xf] }
  0xeb   :  { %2826 = vmatpush.bf16.msra.mxu0 %v4665_v43  ;;  %v1143_v43 = vmax.f32 %v1024_v26, 0.0  ;;  %v5046_v26 = vld [vmem:[#allocation4 + $0x370] sm:$0xf0]  ;;  %v6368_v57 = vld [vmem:[#allocation4 + $0x6e4] sm:$0xf] }
  0xec   :  { %v5049_v33 = vor.u32 %v6256_v25, %v5046_v26  ;;  %v5190_v18 = vld [vmem:[#allocation4 + $0x490] sm:$0xf0] }
  0xed   :  { %2840 = vmatpush.bf16.msra.mxu1 %v4793_v7  ;;  %v4937_v7 = vor.u32 %v6228_v5, %v4934_v6  ;;  %v6244_v6 = vld [vmem:[#allocation4 + $0x304] sm:$0xf] }
  0xee   :  { %2851 = vmatpush.bf16.msra.mxu2 %v4969_v48  ;;  %2815 = vmatpush.bf16.msrb.mxu3 %v5509_v54 }
  0xef   :  { %2827 = vmatpush.bf16.msra.mxu0 %v4649_v59  ;;  %v6780_v59 = vpack.c.bf16 %v1151_v51, %v1143_v43  ;;  %v6304_v43 = vld [vmem:[#allocation4 + $0x4e4] sm:$0xf] }
  0xf0   :  { %v5241_v51 = vor.u32 %v6304_v43, %v5238_v44  ;;  %v257_v43 = vperm.slane %v6765_v30, 7 }
  0xf1   :  { %2841 = vmatpush.bf16.msra.mxu1 %v4777_v23  ;;  %2760 = vmatmul.bf16.vlgmr.msra.gmra.mxu3 %v6780_v59  ;;  %v4905_v23 = vor.u32 %v6220_v21, %v4902_v22  ;;  %v6328_v21 = vld [vmem:[#allocation4 + $0x5a4] sm:$0xf]  ;;  %v5334_v22 = vld [vmem:[#allocation4 + $0x5b0] sm:$0xf0] }
  0xf2   :  { %2864 = vmatpush.bf16.msra.mxu3 %v5113_v60  ;;  %2852 = vmatpush.bf16.msra.mxu2 %v4953_v1  ;;  %v6336_v1 = vld [vmem:[#allocation4 + $0x5e4] sm:$0xf]  ;;  %v5337_v26 = vor.u32 %v6328_v21, %v5334_v22  ;;  %v5254_v21 = vld [vmem:[#allocation4 + $0x510] sm:$0xf0] }
  0xf3   :  { %2828 = vmatpush.bf16.msra.mxu0 %v4633_v16  ;;  %v4921_v16 = vor.u32 %v6224_v13, %v4918_v14  ;;  %v5209_v14 = vor.u32 %v6296_v8, %v5206_v9  ;;  %v6364_v9 = vld [vmem:[#allocation4 + $0x6c4] sm:$0xf] }
  0xf4   :  { %v6400_v22 = vld [vmem:[#allocation4 + $0x7e4] sm:$0xf] }
  0xf5   :  { %2842 = vmatpush.bf16.msra.mxu1 %v4761_v45  ;;  %v5033_v45 = vor.u32 %v6252_v40, %v5030_v56  ;;  %v5302_v40 = vld [vmem:[#allocation4 + $0x570] sm:$0xf0]  ;;  %v6280_v56 = vld [vmem:[#allocation4 + $0x424] sm:$0xf] }
  0xf6   :  { %2865 = vmatpush.bf16.msra.mxu3 %v5097_v4  ;;  %2853 = vmatpush.bf16.msra.mxu2 %v4937_v7  ;;  %v4998_v7 = vld [vmem:[#allocation4 + $0x310] sm:$0xf0] }
  0xf7   :  { %2829 = vmatpush.bf16.msra.mxu0 %v4617_v34  ;;  %v1037_v11 = vpop.f32.mrf.mxu0  ;;  %v6216_v34 = vld [vmem:[#allocation4 + $0x224] sm:$0xf] }
  0xf8   :  { %v1038_v19 = vadd.f32 %v1037_v11, %v254_v10  ;;  %v4889_v38 = vor.u32 %v6216_v34, %v4886_v35  ;;  %v5001_v11 = vor.u32 %v6244_v6, %v4998_v7  ;;  %v6284_v34 = vld [vmem:[#allocation4 + $0x444] sm:$0xf]  ;;  %v5158_v35 = vld [vmem:[#allocation4 + $0x450] sm:$0xf0] }
  0xf9   :  { %2843 = vmatpush.bf16.msra.mxu1 %v4745_v55  ;;  %v1051_v15 = vpop.f32.mrf.mxu1  ;;  %v5222_v55 = vld [vmem:[#allocation4 + $0x4d0] sm:$0xf0] }
  0xfa   :  { %2866 = vmatpush.bf16.msra.mxu3 %v5081_v12  ;;  %2854 = vmatpush.bf16.msra.mxu2 %v4921_v16  ;;  %v1052_v27 = vadd.f32 %v1051_v15, %v1038_v19  ;;  %v5225_v5 = vor.u32 %v6300_v52, %v5222_v55  ;;  %v5369_v12 = vor.u32 %v6336_v1, %v5366_v2  ;;  %v6332_v15 = vld [vmem:[#allocation4 + $0x5c4] sm:$0xf]  ;;  %v5350_v16 = vld [vmem:[#allocation4 + $0x5d0] sm:$0xf0] }
  0xfb   :  { %v5353_v19 = vor.u32 %v6332_v15, %v5350_v16  ;;  %v5126_v55 = vld [vmem:[#allocation4 + $0x410] sm:$0xf0]  ;;  %v6175_v15 = vld [vmem:[#allocation4 + $0xd4] sm:$0xf0] }
  0xfc   :  { %v1144_v42 = vmax.f32 %v1052_v27, 0.0  ;;  %v256_v27 = vperm.slane %v6765_v30, 6  ;;  %v6179_v30 = vld [vmem:[#allocation4 + $0xf4] sm:$0xf0]  ;;  %v5270_v6 = vld [vmem:[#allocation4 + $0x530] sm:$0xf0] }
  0xfd   :  { %v1065_v28 = vpop.f32.mrf.mxu2 }
  0xfe   :  { %2867 = vmatpush.bf16.msra.mxu3 %v5065_v20  ;;  %2855 = vmatpush.bf16.msra.mxu2 %v4905_v23  ;;  %v1066_v39 = vadd.f32 %v1065_v28, %v255_v24  ;;  %v5193_v20 = vor.u32 %v6292_v17, %v5190_v18  ;;  %v6288_v23 = vld [vmem:[#allocation4 + $0x464] sm:$0xf] }
  0xff   :  { %v1039_v29 = vpop.f32.mrf.mxu0  ;;  %v1079_v31 = vpop.f32.mrf.mxu3 }
 0x100   :  { %v1040_v36 = vadd.f32 %v1039_v29, %v254_v10  ;;  %v1080_v50 = vadd.f32 %v1079_v31, %v1066_v39  ;;  %v6324_v31 = vld [vmem:[#allocation4 + $0x584] sm:$0xf] }
 0x101   :  { %v1053_v37 = vpop.f32.mrf.mxu1  ;;  %v6320_v39 = vld [vmem:[#allocation4 + $0x564] sm:$0xf] }
 0x102   :  { %v1054_v63 = vadd.f32 %v1053_v37, %v1040_v36  ;;  %2868 = vmatpush.bf16.msra.mxu3 %v5049_v33  ;;  %2856 = vmatpush.bf16.msra.mxu2 %v4889_v38  ;;  %v1145_v3 = vmax.f32 %v1080_v50, 0.0  ;;  %v5318_v33 = vld [vmem:[#allocation4 + $0x590] sm:$0xf0]  ;;  %v5161_v38 = vor.u32 %v6284_v34, %v5158_v35  ;;  %v5305_v46 = vor.u32 %v6320_v39, %v5302_v40  ;;  %v6316_v50 = vld [vmem:[#allocation4 + $0x544] sm:$0xf] }
 0x103   :  { %v5321_v36 = vor.u32 %v6324_v31, %v5318_v33  ;;  %v5462_v31 = vld [vmem:[#allocation4 + $0x6b0] sm:$0xf0]  ;;  %v4700_v33 = vld [vmem:[#allocation4 + $0xa8] sm:$0xf]  ;;  %v6171_v34 = vld [vmem:[#allocation4 + $0xb4] sm:$0xf0] }
 0x104   :  { %v1152_v48 = vmax.f32 %v1054_v63, 0.0  ;;  %v6396_v40 = vld [vmem:[#allocation4 + $0x7c4] sm:$0xf] }
 0x105   :  { %v1067_v54 = vpop.f32.mrf.mxu2 }
 0x106   :  { %v6785_v53 = vpack.c.bf16 %v1152_v48, %v1144_v42  ;;  %v1068_v60 = vadd.f32 %v1067_v54, %v255_v24  ;;  %2869 = vmatpush.bf16.msra.mxu3 %v5033_v45  ;;  %2857 = vmatpush.bf16.msra.mxu2 %v4873_v49  ;;  %v5174_v24 = vld [vmem:[#allocation4 + $0x470] sm:$0xf0]  ;;  %v6276_v54 = vld [vmem:[#allocation4 + $0x404] sm:$0xf] }
 0x107   :  { %v1081_v61 = vpop.f32.mrf.mxu3  ;;  %v5177_v29 = vor.u32 %v6288_v23, %v5174_v24  ;;  %v5142_v42 = vld [vmem:[#allocation4 + $0x430] sm:$0xf0] }
 0x108   :  { %2774 = vmatmul.bf16.vlgmr.msrb.gmra.mxu0 %v6785_v53  ;;  %v1082_v4 = vadd.f32 %v1081_v61, %v1068_v60  ;;  %v5145_v49 = vor.u32 %v6280_v56, %v5142_v42  ;;  %v5494_v60 = vld [vmem:[#allocation4 + $0x6f0] sm:$0xf0]  ;;  %v4732_v61 = vld [vmem:[#allocation4 + $0xe8] sm:$0xf] }
 0x109   :  { %2878 = vmatpush.bf16.msrb.mxu0 %v5241_v51  ;;  %v5286_v51 = vld [vmem:[#allocation4 + $0x550] sm:$0xf0]  ;;  %v5497_v7 = vor.u32 %v6368_v57, %v5494_v60  ;;  %v4733_v8 = vor.u32 %v6179_v30, %v4732_v61  ;;  %v6203_v60 = vld [vmem:[#allocation4 + $0x1b4] sm:$0xf0]  ;;  %v4668_v61 = vld [vmem:[#allocation4 + $0x68] sm:$0xf] }
 0x10a   :  { %v1153_v10 = vmax.f32 %v1082_v4, 0.0  ;;  %2870 = vmatpush.bf16.msra.mxu3 %v5017_v62  ;;  %v5289_v1 = vor.u32 %v6316_v50, %v5286_v51  ;;  %v5129_v4 = vor.u32 %v6276_v54, %v5126_v55  ;;  %v5622_v23 = vld [vmem:[#allocation4 + $0x7f0] sm:$0xf0]  ;;  %v6163_v30 = vld [vmem:[#allocation4 + $0x74] sm:$0xf0] }
 0x10b   :  { %v5606_v56 = vld [vmem:[#allocation4 + $0x7d0] sm:$0xf0] }
 0x10c   :  { %v6788_v13 = vpack.c.bf16 %v1153_v10, %v1145_v3  ;;  %v5609_v50 = vor.u32 %v6396_v40, %v5606_v56  ;;  %v5590_v57 = vld [vmem:[#allocation4 + $0x7b0] sm:$0xf0]  ;;  %v6151_v40 = vld [vmem:[#allocation4 + $0x14] sm:$0xf0] }
 0x10d   :  { %2879 = vmatpush.bf16.msrb.mxu0 %v5225_v5  ;;  %v6312_v5 = vld [vmem:[#allocation4 + $0x524] sm:$0xf]  ;;  %v5382_v56 = vld [vmem:[#allocation4 + $0x610] sm:$0xf0] }
 0x10e   :  { %2788 = vmatmul.bf16.vlgmr.msrb.gmra.mxu1 %v6788_v13  ;;  %2871 = vmatpush.bf16.msra.mxu3 %v5001_v11  ;;  %v5273_v18 = vor.u32 %v6312_v5, %v5270_v6  ;;  %v4669_v5 = vor.u32 %v6163_v30, %v4668_v61  ;;  %v5574_v6 = vld [vmem:[#allocation4 + $0x790] sm:$0xf0]  ;;  %v6303_v61 = vld [vmem:[#allocation4 + $0x4d4] sm:$0xf0] }
 0x10f   :  { %2892 = vmatpush.bf16.msrb.mxu1 %v5369_v12  ;;  %v5478_v12 = vld [vmem:[#allocation4 + $0x6d0] sm:$0xf0] }
 0x111   :  { %2880 = vmatpush.bf16.msrb.mxu0 %v5209_v14  ;;  %v4716_v14 = vld [vmem:[#allocation4 + $0xc8] sm:$0xf] }
 0x113   :  { %2893 = vmatpush.bf16.msrb.mxu1 %v5353_v19  ;;  %v6308_v19 = vld [vmem:[#allocation4 + $0x504] sm:$0xf] }
 0x115   :  { %2881 = vmatpush.bf16.msrb.mxu0 %v5193_v20 }
 0x117   :  { %v1093_v25 = vpop.f32.mrf.mxu0  ;;  %2894 = vmatpush.bf16.msrb.mxu1 %v5337_v26  ;;  %v4717_v26 = vor.u32 %v6175_v15, %v4716_v14  ;;  %v6348_v14 = vld [vmem:[#allocation4 + $0x644] sm:$0xf]  ;;  %v5414_v15 = vld [vmem:[#allocation4 + $0x650] sm:$0xf0] }
 0x118   :  { %2830 = vmatmul.bf16.vlgmr.msra.gmra.mxu0 %v6769_v41  ;;  %v1094_v37 = vadd.f32 %v1093_v25, %v256_v27  ;;  %v5481_v25 = vor.u32 %v6364_v9, %v5478_v12  ;;  %v6159_v12 = vld [vmem:[#allocation4 + $0x54] sm:$0xf0] }
 0x119   :  { %v1107_v28 = vpop.f32.mrf.mxu1  ;;  %2882 = vmatpush.bf16.msrb.mxu0 %v5177_v29  ;;  %v6360_v29 = vld [vmem:[#allocation4 + $0x6a4] sm:$0xf] }
 0x11a   :  { %v1108_v47 = vadd.f32 %v1107_v28, %v1094_v37  ;;  %v6211_v28 = vld [vmem:[#allocation4 + $0x1f4] sm:$0xf0]  ;;  %v5257_v37 = vor.u32 %v6308_v19, %v5254_v21  ;;  %v4796_v21 = vld [vmem:[#allocation4 + $0x168] sm:$0xf] }
 0x11b   :  { %2895 = vmatpush.bf16.msrb.mxu1 %v5321_v36 }
 0x11c   :  { %v1146_v2 = vmax.f32 %v1108_v47, 0.0  ;;  %v5446_v47 = vld [vmem:[#allocation4 + $0x690] sm:$0xf0] }
 0x11d   :  { %v1121_v63 = vpop.f32.mrf.mxu2  ;;  %2883 = vmatpush.bf16.msrb.mxu0 %v5161_v38  ;;  %v5625_v38 = vor.u32 %v6400_v22, %v5622_v23  ;;  %v6195_v22 = vld [vmem:[#allocation4 + $0x174] sm:$0xf0]  ;;  %v5417_v23 = vor.u32 %v6348_v14, %v5414_v15  ;;  %v5212_v14 = vld [vmem:[#allocation4 + $0x4a8] sm:$0xf] }
 0x11e   :  { %2844 = vmatmul.bf16.vlgmr.msra.gmra.mxu1 %v6772_v0  ;;  %v1122_v62 = vadd.f32 %v1121_v63, %v257_v43  ;;  %v5465_v63 = vor.u32 %v6360_v29, %v5462_v31  ;;  %v4797_v29 = vor.u32 %v6195_v22, %v4796_v21  ;;  %v6380_v31 = vld [vmem:[#allocation4 + $0x744] sm:$0xf]  ;;  %v6299_v15 = vld [vmem:[#allocation4 + $0x4b4] sm:$0xf0]  ;;  %v5100_v22 = vld [vmem:[#allocation4 + $0x3c8] sm:$0xf] }
 0x11f   :  { %v1135_v44 = vpop.f32.mrf.mxu3  ;;  %v1095_v45 = vpop.f32.mrf.mxu0  ;;  %2896 = vmatpush.bf16.msrb.mxu1 %v5305_v46  ;;  %v6356_v46 = vld [vmem:[#allocation4 + $0x684] sm:$0xf] }
 0x120   :  { %v1096_v48 = vadd.f32 %v1095_v45, %v256_v27  ;;  %v1136_v16 = vadd.f32 %v1135_v44, %v1122_v62  ;;  %v4860_v27 = vld [vmem:[#allocation4 + $0x1e8] sm:$0xf]  ;;  %v6207_v45 = vld [vmem:[#allocation4 + $0x1d4] sm:$0xf0]  ;;  %v5449_v54 = vor.u32 %v6356_v46, %v5446_v47  ;;  %v6352_v62 = vld [vmem:[#allocation4 + $0x664] sm:$0xf] }
 0x121   :  { %v1109_v52 = vpop.f32.mrf.mxu1  ;;  %2884 = vmatpush.bf16.msrb.mxu0 %v5145_v49  ;;  %v4861_v39 = vor.u32 %v6211_v28, %v4860_v27  ;;  %v4844_v44 = vld [vmem:[#allocation4 + $0x1c8] sm:$0xf]  ;;  %v6167_v49 = vld [vmem:[#allocation4 + $0x94] sm:$0xf0]  ;;  %v5398_v27 = vld [vmem:[#allocation4 + $0x630] sm:$0xf0] }
 0x122   :  { %v1110_v58 = vadd.f32 %v1109_v52, %v1096_v48  ;;  %v1147_v35 = vmax.f32 %v1136_v16, 0.0  ;;  %v4684_v48 = vld [vmem:[#allocation4 + $0x88] sm:$0xf]  ;;  %v4845_v51 = vor.u32 %v6207_v45, %v4844_v44  ;;  %v6392_v52 = vld [vmem:[#allocation4 + $0x7a4] sm:$0xf] }
 0x123   :  { %2897 = vmatpush.bf16.msrb.mxu1 %v5289_v1  ;;  %v4685_v55 = vor.u32 %v6167_v49, %v4684_v48  ;;  %v5430_v1 = vld [vmem:[#allocation4 + $0x670] sm:$0xf0]  ;;  %v4988_v46 = vld [vmem:[#allocation4 + $0x2e8] sm:$0xf]  ;;  %v6243_v47 = vld [vmem:[#allocation4 + $0x2f4] sm:$0xf0] }
 0x124   :  { %v1154_v3 = vmax.f32 %v1110_v58, 0.0  ;;  %v4828_v58 = vld [vmem:[#allocation4 + $0x1a8] sm:$0xf]  ;;  %v5433_v9 = vor.u32 %v6352_v62, %v5430_v1  ;;  %v6376_v48 = vld [vmem:[#allocation4 + $0x724] sm:$0xf] }
 0x125   :  { %v1123_v11 = vpop.f32.mrf.mxu2  ;;  %2885 = vmatpush.bf16.msrb.mxu0 %v5129_v4  ;;  %v6388_v4 = vld [vmem:[#allocation4 + $0x784] sm:$0xf]  ;;  %v6239_v1 = vld [vmem:[#allocation4 + $0x2d4] sm:$0xf0] }
 0x126   :  { %v6795_v10 = vpack.c.bf16 %v1154_v3, %v1146_v2  ;;  %v1124_v17 = vadd.f32 %v1123_v11, %v257_v43  ;;  %v4701_v43 = vor.u32 %v6171_v34, %v4700_v33  ;;  %v5593_v2 = vor.u32 %v6392_v52, %v5590_v57  ;;  %v4652_v11 = vld [vmem:[#allocation4 + $0x48] sm:$0xf]  ;;  %v5542_v34 = vld [vmem:[#allocation4 + $0x750] sm:$0xf0]  ;;  %v6187_v52 = vld [vmem:[#allocation4 + $0x134] sm:$0xf0] }
 0x127   :  { %v1137_v20 = vpop.f32.mrf.mxu3  ;;  %2898 = vmatpush.bf16.msrb.mxu1 %v5273_v18  ;;  %v4829_v3 = vor.u32 %v6203_v60, %v4828_v58  ;;  %v5577_v16 = vor.u32 %v6388_v4, %v5574_v6  ;;  %v6384_v18 = vld [vmem:[#allocation4 + $0x764] sm:$0xf]  ;;  %v4653_v19 = vor.u32 %v6159_v12, %v4652_v11  ;;  %v5545_v44 = vor.u32 %v6380_v31, %v5542_v34  ;;  %v4972_v58 = vld [vmem:[#allocation4 + $0x2c8] sm:$0xf]  ;;  %v6339_v11 = vld [vmem:[#allocation4 + $0x5f4] sm:$0xf0] }
 0x128   :  { %2802 = vmatmul.bf16.vlgmr.msrb.gmra.mxu2 %v6795_v10  ;;  %v1138_v24 = vadd.f32 %v1137_v20, %v1124_v17  ;;  %2886 = vmatmul.bf16.vlgmr.msrb.gmra.mxu0 %v6785_v53  ;;  %v5558_v20 = vld [vmem:[#allocation4 + $0x770] sm:$0xf0]  ;;  %v4989_v57 = vor.u32 %v6243_v47, %v4988_v46  ;;  %v5228_v60 = vld [vmem:[#allocation4 + $0x4c8] sm:$0xf]  ;;  %v4973_v12 = vor.u32 %v6239_v1, %v4972_v58 }
 0x129   :  { %2906 = vmatpush.bf16.msrb.mxu2 %v5497_v7  ;;  %2934 = vmatpush.bf16.msra.mxu0 %v4733_v8  ;;  %v4812_v7 = vld [vmem:[#allocation4 + $0x188] sm:$0xf]  ;;  %v6199_v8 = vld [vmem:[#allocation4 + $0x194] sm:$0xf0]  ;;  %v5561_v28 = vor.u32 %v6384_v18, %v5558_v20 }
 0x12a   :  { %v1155_v36 = vmax.f32 %v1138_v24, 0.0  ;;  %v4813_v17 = vor.u32 %v6199_v8, %v4812_v7  ;;  %v4636_v24 = vld [vmem:[#allocation4 + $0x28] sm:$0xf]  ;;  %v5229_v7 = vor.u32 %v6303_v61, %v5228_v60  ;;  %v6275_v8 = vld [vmem:[#allocation4 + $0x3f4] sm:$0xf0] }
 0x12b   :  { %2899 = vmatpush.bf16.msrb.mxu1 %v5257_v37  ;;  %v4748_v4 = vld [vmem:[#allocation4 + $0x108] sm:$0xf]  ;;  %v6223_v60 = vld [vmem:[#allocation4 + $0x254] sm:$0xf0] }
 0x12c   :  { %v6799_v42 = vpack.c.bf16 %v1155_v36, %v1147_v35  ;;  %v4780_v35 = vld [vmem:[#allocation4 + $0x148] sm:$0xf]  ;;  %v6191_v36 = vld [vmem:[#allocation4 + $0x154] sm:$0xf0] }
 0x12d   :  { %2907 = vmatpush.bf16.msrb.mxu2 %v5481_v25  ;;  %2935 = vmatpush.bf16.msra.mxu0 %v4717_v26  ;;  %v6155_v25 = vld [vmem:[#allocation4 + $0x34] sm:$0xf0]  ;;  %v6344_v26 = vld [vmem:[#allocation4 + $0x624] sm:$0xf]  ;;  %v4781_v45 = vor.u32 %v6191_v36, %v4780_v35  ;;  %v5116_v6 = vld [vmem:[#allocation4 + $0x3e8] sm:$0xf] }
 0x12e   :  { %2816 = vmatmul.bf16.vlgmr.msrb.gmra.mxu3 %v6799_v42  ;;  %2900 = vmatmul.bf16.vlgmr.msrb.gmra.mxu1 %v6788_v13  ;;  %v4637_v33 = vor.u32 %v6155_v25, %v4636_v24  ;;  %v5401_v37 = vor.u32 %v6344_v26, %v5398_v27  ;;  %v4956_v18 = vld [vmem:[#allocation4 + $0x2a8] sm:$0xf]  ;;  %v5117_v20 = vor.u32 %v6275_v8, %v5116_v6  ;;  %v6271_v24 = vld [vmem:[#allocation4 + $0x3d4] sm:$0xf0] }
 0x12f   :  { %2920 = vmatpush.bf16.msrb.mxu3 %v5625_v38  ;;  %2948 = vmatpush.bf16.msra.mxu1 %v4861_v39  ;;  %v6340_v38 = vld [vmem:[#allocation4 + $0x604] sm:$0xf]  ;;  %v4620_v39 = vld [vmem:[#allocation4 + $0x8] sm:$0xf]  ;;  %v6335_v26 = vld [vmem:[#allocation4 + $0x5d4] sm:$0xf0]  ;;  %v5101_v34 = vor.u32 %v6271_v24, %v5100_v22 }
 0x130   :  { %v4621_v49 = vor.u32 %v6151_v40, %v4620_v39  ;;  %v5356_v25 = vld [vmem:[#allocation4 + $0x5c8] sm:$0xf]  ;;  %v6331_v40 = vld [vmem:[#allocation4 + $0x5b4] sm:$0xf0]  ;;  %v6177_v24 = vld [vmem:[#allocation4 + $0xec] sm:$0xf] }
 0x131   :  { %2908 = vmatpush.bf16.msrb.mxu2 %v5465_v63  ;;  %2936 = vmatpush.bf16.msra.mxu0 %v4701_v43  ;;  %v5244_v63 = vld [vmem:[#allocation4 + $0x4e8] sm:$0xf]  ;;  %v6307_v43 = vld [vmem:[#allocation4 + $0x4f4] sm:$0xf0]  ;;  %v5357_v35 = vor.u32 %v6335_v26, %v5356_v25  ;;  %v4734_v25 = vld [vmem:[#allocation4 + $0xf8] sm:$0xf0] }
 0x132   :  { %v4940_v31 = vld [vmem:[#allocation4 + $0x288] sm:$0xf]  ;;  %v6279_v22 = vld [vmem:[#allocation4 + $0x414] sm:$0xf0] }
 0x133   :  { %2921 = vmatpush.bf16.msrb.mxu3 %v5609_v50  ;;  %2949 = vmatpush.bf16.msra.mxu1 %v4845_v51  ;;  %v5526_v50 = vld [vmem:[#allocation4 + $0x730] sm:$0xf0]  ;;  %v4764_v51 = vld [vmem:[#allocation4 + $0x128] sm:$0xf] }
 0x134   :  { %v5529_v30 = vor.u32 %v6376_v48, %v5526_v50  ;;  %v4765_v62 = vor.u32 %v6187_v52, %v4764_v51  ;;  %v5084_v36 = vld [vmem:[#allocation4 + $0x3a8] sm:$0xf]  ;;  %v6263_v50 = vld [vmem:[#allocation4 + $0x394] sm:$0xf0] }
 0x135   :  { %2909 = vmatpush.bf16.msrb.mxu2 %v5449_v54  ;;  %2937 = vmatpush.bf16.msra.mxu0 %v4685_v55  ;;  %v5385_v54 = vor.u32 %v6340_v38, %v5382_v56  ;;  %v5245_v55 = vor.u32 %v6307_v43, %v5244_v63  ;;  %v6267_v38 = vld [vmem:[#allocation4 + $0x3b4] sm:$0xf0]  ;;  %v5340_v39 = vld [vmem:[#allocation4 + $0x5a8] sm:$0xf] }
 0x136   :  { %v5180_v63 = vld [vmem:[#allocation4 + $0x468] sm:$0xf]  ;;  %v6291_v43 = vld [vmem:[#allocation4 + $0x474] sm:$0xf0]  ;;  %v5085_v46 = vor.u32 %v6267_v38, %v5084_v36  ;;  %v5341_v47 = vor.u32 %v6331_v40, %v5340_v39  ;;  %v4737_v38 = vor.u32 %v6177_v24, %v4734_v25  ;;  %v4670_v24 = vld [vmem:[#allocation4 + $0x78] sm:$0xf0] }
 0x137   :  { %2922 = vmatpush.bf16.msrb.mxu3 %v5593_v2  ;;  %2950 = vmatpush.bf16.msra.mxu1 %v4829_v3  ;;  %v6372_v2 = vld [vmem:[#allocation4 + $0x704] sm:$0xf]  ;;  %v5510_v3 = vld [vmem:[#allocation4 + $0x710] sm:$0xf0]  ;;  %v5068_v48 = vld [vmem:[#allocation4 + $0x388] sm:$0xf] }
 0x138   :  { %2858 = vmatmul.bf16.vlgmr.msra.gmra.mxu2 %v6777_v32  ;;  %v5324_v51 = vld [vmem:[#allocation4 + $0x588] sm:$0xf]  ;;  %v6327_v52 = vld [vmem:[#allocation4 + $0x594] sm:$0xf0]  ;;  %v5069_v61 = vor.u32 %v6263_v50, %v5068_v48 }
 0x139   :  { %2938 = vmatpush.bf16.msra.mxu0 %v4669_v5  ;;  %2910 = vmatpush.bf16.msrb.mxu2 %v5433_v9  ;;  %v6183_v5 = vld [vmem:[#allocation4 + $0x114] sm:$0xf0]  ;;  %v5372_v9 = vld [vmem:[#allocation4 + $0x5e8] sm:$0xf] }
 0x13a   :  { %v5373_v21 = vor.u32 %v6339_v11, %v5372_v9  ;;  %v4908_v58 = vld [vmem:[#allocation4 + $0x248] sm:$0xf]  ;;  %v6219_v9 = vld [vmem:[#allocation4 + $0x234] sm:$0xf0] }
 0x13b   :  { %2923 = vmatpush.bf16.msrb.mxu3 %v5577_v16  ;;  %2951 = vmatpush.bf16.msra.mxu1 %v4813_v17  ;;  %v5513_v16 = vor.u32 %v6372_v2, %v5510_v3  ;;  %v4749_v17 = vor.u32 %v6183_v5, %v4748_v4  ;;  %v6259_v2 = vld [vmem:[#allocation4 + $0x374] sm:$0xf0]  ;;  %v5308_v3 = vld [vmem:[#allocation4 + $0x568] sm:$0xf]  ;;  %v4909_v5 = vor.u32 %v6223_v60, %v4908_v58  ;;  %v6169_v58 = vld [vmem:[#allocation4 + $0xac] sm:$0xf] }
 0x13c   :  { %v6323_v4 = vld [vmem:[#allocation4 + $0x574] sm:$0xf0]  ;;  %v5148_v6 = vld [vmem:[#allocation4 + $0x428] sm:$0xf]  ;;  %v4702_v60 = vld [vmem:[#allocation4 + $0xb8] sm:$0xf0] }
 0x13d   :  { %2939 = vmatpush.bf16.msra.mxu0 %v4653_v19  ;;  %2911 = vmatpush.bf16.msrb.mxu2 %v5417_v23  ;;  %v6235_v19 = vld [vmem:[#allocation4 + $0x2b4] sm:$0xf0]  ;;  %v5213_v23 = vor.u32 %v6299_v15, %v5212_v14  ;;  %v4892_v8 = vld [vmem:[#allocation4 + $0x228] sm:$0xf] }
 0x13e   :  { %2872 = vmatmul.bf16.vlgmr.msra.gmra.mxu3 %v6780_v59  ;;  %v4957_v27 = vor.u32 %v6235_v19, %v4956_v18  ;;  %v5036_v14 = vld [vmem:[#allocation4 + $0x348] sm:$0xf]  ;;  %v6319_v18 = vld [vmem:[#allocation4 + $0x554] sm:$0xf0]  ;;  %v4893_v19 = vor.u32 %v6219_v9, %v4892_v8  ;;  %v4846_v8 = vld [vmem:[#allocation4 + $0x1d8] sm:$0xf0] }
 0x13f   :  { %2924 = vmatpush.bf16.msrb.mxu3 %v5561_v28  ;;  %2952 = vmatpush.bf16.msra.mxu1 %v4797_v29  ;;  %v5196_v28 = vld [vmem:[#allocation4 + $0x488] sm:$0xf]  ;;  %v6295_v29 = vld [vmem:[#allocation4 + $0x494] sm:$0xf0]  ;;  %v6165_v9 = vld [vmem:[#allocation4 + $0x8c] sm:$0xf] }
 0x140   :  { %v6315_v36 = vld [vmem:[#allocation4 + $0x534] sm:$0xf0]  ;;  %v5484_v40 = vld [vmem:[#allocation4 + $0x6c8] sm:$0xf] }
 0x141   :  { %2940 = vmatpush.bf16.msra.mxu0 %v4637_v33  ;;  %2912 = vmatpush.bf16.msrb.mxu2 %v5401_v37  ;;  %v6231_v33 = vld [vmem:[#allocation4 + $0x294] sm:$0xf0]  ;;  %v5197_v37 = vor.u32 %v6295_v29, %v5196_v28  ;;  %v5500_v28 = vld [vmem:[#allocation4 + $0x6e8] sm:$0xf] }
 0x142   :  { %v4941_v56 = vor.u32 %v6231_v33, %v4940_v31  ;;  %v6371_v29 = vld [vmem:[#allocation4 + $0x6f4] sm:$0xf0]  ;;  %v5020_v31 = vld [vmem:[#allocation4 + $0x328] sm:$0xf] }
 0x143   :  { %2925 = vmatpush.bf16.msrb.mxu3 %v5545_v44  ;;  %2953 = vmatpush.bf16.msra.mxu1 %v4781_v45  ;;  %v4924_v44 = vld [vmem:[#allocation4 + $0x268] sm:$0xf]  ;;  %v6227_v45 = vld [vmem:[#allocation4 + $0x274] sm:$0xf0]  ;;  %v5501_v39 = vor.u32 %v6371_v29, %v5500_v28 }
 0x144   :  { %v5260_v48 = vld [vmem:[#allocation4 + $0x508] sm:$0xf]  ;;  %v6355_v29 = vld [vmem:[#allocation4 + $0x674] sm:$0xf0] }
 0x145   :  { %2941 = vmatpush.bf16.msra.mxu0 %v4621_v49  ;;  %2913 = vmatpush.bf16.msrb.mxu2 %v5385_v54  ;;  %v5181_v49 = vor.u32 %v6291_v43, %v5180_v63  ;;  %v4925_v54 = vor.u32 %v6227_v45, %v4924_v44  ;;  %v4718_v63 = vld [vmem:[#allocation4 + $0xd8] sm:$0xf0]  ;;  %v6367_v45 = vld [vmem:[#allocation4 + $0x6d4] sm:$0xf0]  ;;  %v5628_v50 = vld [vmem:[#allocation4 + $0x7e8] sm:$0xf] }
 0x146   :  { %v5436_v28 = vld [vmem:[#allocation4 + $0x668] sm:$0xf] }
 0x147   :  { %2926 = vmatpush.bf16.msrb.mxu3 %v5529_v30  ;;  %2954 = vmatpush.bf16.msra.mxu1 %v4765_v62  ;;  %v5325_v30 = vor.u32 %v6327_v52, %v5324_v51  ;;  %v5052_v62 = vld [vmem:[#allocation4 + $0x368] sm:$0xf]  ;;  %v6403_v52 = vld [vmem:[#allocation4 + $0x7f4] sm:$0xf0] }
 0x148   :  { %2942 = vmatmul.bf16.vlgmr.msra.gmra.mxu0 %v6769_v41  ;;  %2914 = vmatmul.bf16.vlgmr.msrb.gmra.mxu2 %v6795_v10  ;;  %v5053_v11 = vor.u32 %v6259_v2, %v5052_v62  ;;  %v5629_v62 = vor.u32 %v6403_v52, %v5628_v50  ;;  %v5468_v2 = vld [vmem:[#allocation4 + $0x6a8] sm:$0xf]  ;;  %v4638_v50 = vld [vmem:[#allocation4 + $0x38] sm:$0xf0] }
 0x149   :  { %2990 = vmatpush.bf16.msrb.mxu0 %v5245_v55  ;;  %2962 = vmatpush.bf16.msra.mxu2 %v4989_v57  ;;  %v5164_v55 = vld [vmem:[#allocation4 + $0x448] sm:$0xf]  ;;  %v6287_v57 = vld [vmem:[#allocation4 + $0x454] sm:$0xf0] }
 0x14a   :  { %v5165_v1 = vor.u32 %v6287_v57, %v5164_v55  ;;  %v4862_v55 = vld [vmem:[#allocation4 + $0x1f8] sm:$0xf0]  ;;  %v5485_v57 = vor.u32 %v6367_v45, %v5484_v40 }
 0x14b   :  { %2927 = vmatpush.bf16.msrb.mxu3 %v5513_v16  ;;  %2955 = vmatpush.bf16.msra.mxu1 %v4749_v17  ;;  %v6255_v16 = vld [vmem:[#allocation4 + $0x354] sm:$0xf0]  ;;  %v5292_v17 = vld [vmem:[#allocation4 + $0x548] sm:$0xf] }
 0x14c   :  { %v5037_v26 = vor.u32 %v6255_v16, %v5036_v14  ;;  %v5452_v16 = vld [vmem:[#allocation4 + $0x688] sm:$0xf] }
 0x14d   :  { %2991 = vmatpush.bf16.msrb.mxu0 %v5229_v7  ;;  %2963 = vmatpush.bf16.msra.mxu2 %v4973_v12  ;;  %v6283_v7 = vld [vmem:[#allocation4 + $0x434] sm:$0xf0]  ;;  %v5309_v12 = vor.u32 %v6323_v4, %v5308_v3  ;;  %v5612_v4 = vld [vmem:[#allocation4 + $0x7c8] sm:$0xf] }
 0x14e   :  { %2956 = vmatmul.bf16.vlgmr.msra.gmra.mxu1 %v6772_v0  ;;  %2928 = vmatmul.bf16.vlgmr.msrb.gmra.mxu3 %v6799_v42  ;;  %v5149_v15 = vor.u32 %v6283_v7, %v5148_v6  ;;  %v6363_v3 = vld [vmem:[#allocation4 + $0x6b4] sm:$0xf0]  ;;  %v6205_v7 = vld [vmem:[#allocation4 + $0x1cc] sm:$0xf] }
 0x14f   :  { %2976 = vmatpush.bf16.msra.mxu3 %v5117_v20  ;;  %3004 = vmatpush.bf16.msrb.mxu1 %v5373_v21  ;;  %v4876_v20 = vld [vmem:[#allocation4 + $0x208] sm:$0xf]  ;;  %v6399_v6 = vld [vmem:[#allocation4 + $0x7d4] sm:$0xf0] }
 0x150   :  { %v5132_v21 = vld [vmem:[#allocation4 + $0x408] sm:$0xf]  ;;  %v5613_v14 = vor.u32 %v6399_v6, %v5612_v4  ;;  %v6305_v4 = vld [vmem:[#allocation4 + $0x4ec] sm:$0xf] }
 0x151   :  { %2992 = vmatpush.bf16.msrb.mxu0 %v5213_v23  ;;  %2964 = vmatpush.bf16.msra.mxu2 %v4957_v27  ;;  %v6215_v23 = vld [vmem:[#allocation4 + $0x214] sm:$0xf0]  ;;  %v5293_v27 = vor.u32 %v6319_v18, %v5292_v17  ;;  %v5133_v33 = vor.u32 %v6279_v22, %v5132_v21  ;;  %v5596_v18 = vld [vmem:[#allocation4 + $0x7a8] sm:$0xf]  ;;  %v6201_v21 = vld [vmem:[#allocation4 + $0x1ac] sm:$0xf] }
 0x152   :  { %v6359_v17 = vld [vmem:[#allocation4 + $0x694] sm:$0xf0]  ;;  %v4830_v22 = vld [vmem:[#allocation4 + $0x1b8] sm:$0xf0] }
 0x153   :  { %2977 = vmatpush.bf16.msra.mxu3 %v5101_v34  ;;  %3005 = vmatpush.bf16.msrb.mxu1 %v5357_v35  ;;  %v6251_v34 = vld [vmem:[#allocation4 + $0x334] sm:$0xf0]  ;;  %v5276_v35 = vld [vmem:[#allocation4 + $0x528] sm:$0xf]  ;;  %v5453_v25 = vor.u32 %v6359_v17, %v5452_v16 }
 0x154   :  { %v5021_v43 = vor.u32 %v6251_v34, %v5020_v31  ;;  %v5277_v44 = vor.u32 %v6315_v36, %v5276_v35  ;;  %v5580_v31 = vld [vmem:[#allocation4 + $0x788] sm:$0xf]  ;;  %v6391_v34 = vld [vmem:[#allocation4 + $0x794] sm:$0xf0]  ;;  %v6197_v35 = vld [vmem:[#allocation4 + $0x18c] sm:$0xf] }
 0x155   :  { %2993 = vmatpush.bf16.msrb.mxu0 %v5197_v37  ;;  %2965 = vmatpush.bf16.msra.mxu2 %v4941_v56  ;;  %v4877_v37 = vor.u32 %v6215_v23, %v4876_v20  ;;  %v6173_v56 = vld [vmem:[#allocation4 + $0xcc] sm:$0xf]  ;;  %v6395_v20 = vld [vmem:[#allocation4 + $0x7b4] sm:$0xf0]  ;;  %v4814_v36 = vld [vmem:[#allocation4 + $0x198] sm:$0xf0]  ;;  %v5581_v40 = vor.u32 %v6391_v34, %v5580_v31 }
 0x156   :  { %v4721_v51 = vor.u32 %v6173_v56, %v4718_v63  ;;  %v6161_v23 = vld [vmem:[#allocation4 + $0x6c] sm:$0xf]  ;;  %v4817_v56 = vor.u32 %v6197_v35, %v4814_v36  ;;  %v5420_v63 = vld [vmem:[#allocation4 + $0x648] sm:$0xf]  ;;  %v6379_v16 = vld [vmem:[#allocation4 + $0x734] sm:$0xf0] }
 0x157   :  { %2978 = vmatpush.bf16.msra.mxu3 %v5085_v46  ;;  %3006 = vmatpush.bf16.msrb.mxu1 %v5341_v47  ;;  %v5004_v46 = vld [vmem:[#allocation4 + $0x308] sm:$0xf]  ;;  %v6247_v47 = vld [vmem:[#allocation4 + $0x314] sm:$0xf0]  ;;  %v6181_v31 = vld [vmem:[#allocation4 + $0x10c] sm:$0xf] }
 0x158   :  { %v6273_v35 = vld [vmem:[#allocation4 + $0x3ec] sm:$0xf]  ;;  %v5118_v36 = vld [vmem:[#allocation4 + $0x3f8] sm:$0xf0] }
 0x159   :  { %2994 = vmatpush.bf16.msrb.mxu0 %v5181_v49  ;;  %2966 = vmatpush.bf16.msra.mxu2 %v4925_v54  ;;  %v6311_v49 = vld [vmem:[#allocation4 + $0x514] sm:$0xf0]  ;;  %v6209_v54 = vld [vmem:[#allocation4 + $0x1ec] sm:$0xf] }
 0x15b   :  { %2979 = vmatpush.bf16.msra.mxu3 %v5069_v61  ;;  %3007 = vmatpush.bf16.msrb.mxu1 %v5325_v30  ;;  %v5005_v61 = vor.u32 %v6247_v47, %v5004_v46  ;;  %v5261_v30 = vor.u32 %v6311_v49, %v5260_v48  ;;  %v6387_v46 = vld [vmem:[#allocation4 + $0x774] sm:$0xf0]  ;;  %v6193_v47 = vld [vmem:[#allocation4 + $0x16c] sm:$0xf]  ;;  %v4798_v48 = vld [vmem:[#allocation4 + $0x178] sm:$0xf0] }
 0x15c   :  { %v6153_v49 = vld [vmem:[#allocation4 + $0x2c] sm:$0xf] }
 0x15d   :  { %2995 = vmatpush.bf16.msrb.mxu0 %v5165_v1  ;;  %2967 = vmatpush.bf16.msra.mxu2 %v4909_v5  ;;  %v4865_v1 = vor.u32 %v6209_v54, %v4862_v55  ;;  %v4705_v5 = vor.u32 %v6169_v58, %v4702_v60  ;;  %v4801_v54 = vor.u32 %v6193_v47, %v4798_v48  ;;  %v5404_v55 = vld [vmem:[#allocation4 + $0x628] sm:$0xf] }
 0x15e   :  { %v5548_v58 = vld [vmem:[#allocation4 + $0x748] sm:$0xf]  ;;  %v4641_v60 = vor.u32 %v6153_v49, %v4638_v50  ;;  %v6269_v49 = vld [vmem:[#allocation4 + $0x3cc] sm:$0xf]  ;;  %v5102_v50 = vld [vmem:[#allocation4 + $0x3d8] sm:$0xf0] }
 0x15f   :  { %2980 = vmatpush.bf16.msra.mxu3 %v5053_v11  ;;  %3008 = vmatpush.bf16.msrb.mxu1 %v5309_v12  ;;  %v4686_v11 = vld [vmem:[#allocation4 + $0x98] sm:$0xf0]  ;;  %v5469_v12 = vor.u32 %v6363_v3, %v5468_v2 }
 0x160   :  { %v4622_v2 = vld [vmem:[#allocation4 + $0x18] sm:$0xf0] }
 0x161   :  { %2996 = vmatpush.bf16.msrb.mxu0 %v5149_v15  ;;  %2968 = vmatpush.bf16.msra.mxu2 %v4893_v19  ;;  %v4849_v15 = vor.u32 %v6205_v7, %v4846_v8  ;;  %v4689_v19 = vor.u32 %v6165_v9, %v4686_v11  ;;  %v5388_v8 = vld [vmem:[#allocation4 + $0x608] sm:$0xf]  ;;  %v6343_v9 = vld [vmem:[#allocation4 + $0x614] sm:$0xf0]  ;;  %v6241_v11 = vld [vmem:[#allocation4 + $0x2ec] sm:$0xf] }
 0x163   :  { %2981 = vmatpush.bf16.msra.mxu3 %v5037_v26  ;;  %3009 = vmatpush.bf16.msrb.mxu1 %v5293_v27  ;;  %v5597_v26 = vor.u32 %v6395_v20, %v5596_v18  ;;  %v4833_v27 = vor.u32 %v6201_v21, %v4830_v22  ;;  %v6185_v18 = vld [vmem:[#allocation4 + $0x12c] sm:$0xf]  ;;  %v5389_v20 = vor.u32 %v6343_v9, %v5388_v8  ;;  %v5230_v22 = vld [vmem:[#allocation4 + $0x4d8] sm:$0xf0] }
 0x164   :  { %v6301_v21 = vld [vmem:[#allocation4 + $0x4cc] sm:$0xf]  ;;  %v4926_v9 = vld [vmem:[#allocation4 + $0x278] sm:$0xf0] }
 0x165   :  { %2997 = vmatpush.bf16.msrb.mxu0 %v5133_v33  ;;  %2969 = vmatpush.bf16.msra.mxu2 %v4877_v37  ;;  %v4673_v33 = vor.u32 %v6161_v23, %v4670_v24  ;;  %v6157_v37 = vld [vmem:[#allocation4 + $0x4c] sm:$0xf]  ;;  %v5233_v34 = vor.u32 %v6301_v21, %v5230_v22  ;;  %v6817_v21 = vpop.f32.mrf.mxu0 }
 0x166   :  { %v6225_v8 = vld [vmem:[#allocation4 + $0x26c] sm:$0xf] }
 0x167   :  { %2982 = vmatpush.bf16.msra.mxu3 %v5021_v43  ;;  %3010 = vmatpush.bf16.msrb.mxu1 %v5277_v44  ;;  %v6351_v43 = vld [vmem:[#allocation4 + $0x654] sm:$0xf0]  ;;  %v5564_v44 = vld [vmem:[#allocation4 + $0x768] sm:$0xf]  ;;  %v6221_v22 = vld [vmem:[#allocation4 + $0x24c] sm:$0xf] }
 0x168   :  { %2970 = vmatmul.bf16.vlgmr.msra.gmra.mxu2 %v6777_v32  ;;  %2998 = vmatmul.bf16.vlgmr.msrb.gmra.mxu0 %v6785_v53  ;;  %v5565_v52 = vor.u32 %v6387_v46, %v5564_v44  ;;  %v5121_v44 = vor.u32 %v6273_v35, %v5118_v36  ;;  %v4958_v46 = vld [vmem:[#allocation4 + $0x2b8] sm:$0xf0]  ;;  %v6819_v35 = vpop.f32.mrf.mxu1 }
 0x169   :  { %3046 = vmatpush.bf16.msra.mxu0 %v4737_v38  ;;  %3018 = vmatpush.bf16.msrb.mxu2 %v5501_v39  ;;  %v4654_v38 = vld [vmem:[#allocation4 + $0x58] sm:$0xf0]  ;;  %v5437_v39 = vor.u32 %v6355_v29, %v5436_v28  ;;  %v6375_v29 = vld [vmem:[#allocation4 + $0x714] sm:$0xf0] }
 0x16a   :  { %v4657_v45 = vor.u32 %v6157_v37, %v4654_v38  ;;  %v6337_v37 = vld [vmem:[#allocation4 + $0x5ec] sm:$0xf]  ;;  %v5374_v38 = vld [vmem:[#allocation4 + $0x5f8] sm:$0xf0] }
 0x16b   :  { %2983 = vmatpush.bf16.msra.mxu3 %v5005_v61  ;;  %3011 = vmatpush.bf16.msrb.mxu1 %v5261_v30  ;;  %v6383_v61 = vld [vmem:[#allocation4 + $0x754] sm:$0xf0]  ;;  %v6189_v30 = vld [vmem:[#allocation4 + $0x14c] sm:$0xf]  ;;  %v5377_v47 = vor.u32 %v6337_v37, %v5374_v38  ;;  %v4894_v38 = vld [vmem:[#allocation4 + $0x238] sm:$0xf0] }
 0x16c   :  { %v5549_v6 = vor.u32 %v6383_v61, %v5548_v58  ;;  %v6229_v58 = vld [vmem:[#allocation4 + $0x28c] sm:$0xf] }
 0x16d   :  { %3047 = vmatpush.bf16.msra.mxu0 %v4721_v51  ;;  %3019 = vmatpush.bf16.msrb.mxu2 %v5485_v57  ;;  %v5421_v51 = vor.u32 %v6351_v43, %v5420_v63  ;;  %v6347_v57 = vld [vmem:[#allocation4 + $0x634] sm:$0xf0]  ;;  %v6217_v37 = vld [vmem:[#allocation4 + $0x22c] sm:$0xf] }
 0x16e   :  { %2984 = vmatmul.bf16.vlgmr.msra.gmra.mxu3 %v6780_v59  ;;  %3012 = vmatmul.bf16.vlgmr.msrb.gmra.mxu1 %v6788_v13  ;;  %v5405_v3 = vor.u32 %v6347_v57, %v5404_v55  ;;  %v5198_v55 = vld [vmem:[#allocation4 + $0x498] sm:$0xf0] }
 0x16f   :  { %3032 = vmatpush.bf16.msrb.mxu3 %v5629_v62  ;;  %3060 = vmatpush.bf16.msra.mxu1 %v4865_v1  ;;  %v4782_v62 = vld [vmem:[#allocation4 + $0x158] sm:$0xf0]  ;;  %v6149_v1 = vld [vmem:[#allocation4 + $0xc] sm:$0xf] }
 0x170   :  { %v4785_v7 = vor.u32 %v6189_v30, %v4782_v62  ;;  %v6265_v62 = vld [vmem:[#allocation4 + $0x3ac] sm:$0xf] }
 0x171   :  { %3048 = vmatpush.bf16.msra.mxu0 %v4705_v5  ;;  %3020 = vmatpush.bf16.msrb.mxu2 %v5469_v12  ;;  %v5246_v5 = vld [vmem:[#allocation4 + $0x4f8] sm:$0xf0]  ;;  %v4625_v12 = vor.u32 %v6149_v1, %v4622_v2  ;;  %v6329_v2 = vld [vmem:[#allocation4 + $0x5ac] sm:$0xf] }
 0x172   :  { %v5249_v17 = vor.u32 %v6305_v4, %v5246_v5  ;;  %v5086_v1 = vld [vmem:[#allocation4 + $0x3b8] sm:$0xf0]  ;;  %v6289_v4 = vld [vmem:[#allocation4 + $0x46c] sm:$0xf] }
 0x173   :  { %3033 = vmatpush.bf16.msrb.mxu3 %v5613_v14  ;;  %3061 = vmatpush.bf16.msra.mxu1 %v4849_v15  ;;  %v4990_v14 = vld [vmem:[#allocation4 + $0x2f8] sm:$0xf0]  ;;  %v5532_v15 = vld [vmem:[#allocation4 + $0x728] sm:$0xf] }
 0x174   :  { %v4993_v23 = vor.u32 %v6241_v11, %v4990_v14  ;;  %v5533_v24 = vor.u32 %v6379_v16, %v5532_v15  ;;  %v5182_v5 = vld [vmem:[#allocation4 + $0x478] sm:$0xf0]  ;;  %v6261_v14 = vld [vmem:[#allocation4 + $0x38c] sm:$0xf] }
 0x175   :  { %3049 = vmatpush.bf16.msra.mxu0 %v4689_v19  ;;  %3021 = vmatpush.bf16.msrb.mxu2 %v5453_v25  ;;  %v4766_v19 = vld [vmem:[#allocation4 + $0x138] sm:$0xf0]  ;;  %v6237_v25 = vld [vmem:[#allocation4 + $0x2cc] sm:$0xf] }
 0x176   :  { %v4769_v28 = vor.u32 %v6185_v18, %v4766_v19  ;;  %v5070_v15 = vld [vmem:[#allocation4 + $0x398] sm:$0xf0]  ;;  %v6325_v16 = vld [vmem:[#allocation4 + $0x58c] sm:$0xf] }
 0x177   :  { %3034 = vmatpush.bf16.msrb.mxu3 %v5597_v26  ;;  %3062 = vmatpush.bf16.msra.mxu1 %v4833_v27  ;;  %v4974_v26 = vld [vmem:[#allocation4 + $0x2d8] sm:$0xf0]  ;;  %v5516_v27 = vld [vmem:[#allocation4 + $0x708] sm:$0xf]  ;;  %v6285_v18 = vld [vmem:[#allocation4 + $0x44c] sm:$0xf] }
 0x178   :  { %v5517_v63 = vor.u32 %v6375_v29, %v5516_v27  ;;  %v5166_v19 = vld [vmem:[#allocation4 + $0x458] sm:$0xf0] }
 0x179   :  { %3050 = vmatpush.bf16.msra.mxu0 %v4673_v33  ;;  %3022 = vmatpush.bf16.msrb.mxu2 %v5437_v39  ;;  %v4750_v33 = vld [vmem:[#allocation4 + $0x118] sm:$0xf0]  ;;  %v6297_v39 = vld [vmem:[#allocation4 + $0x4ac] sm:$0xf] }
 0x17a   :  { %v4753_v43 = vor.u32 %v6181_v31, %v4750_v33  ;;  %v5054_v27 = vld [vmem:[#allocation4 + $0x378] sm:$0xf0]  ;;  %v6281_v31 = vld [vmem:[#allocation4 + $0x42c] sm:$0xf] }
 0x17b   :  { %3035 = vmatpush.bf16.msrb.mxu3 %v5581_v40  ;;  %3063 = vmatpush.bf16.msra.mxu1 %v4817_v56  ;;  %v5214_v40 = vld [vmem:[#allocation4 + $0x4b8] sm:$0xf0]  ;;  %v4977_v56 = vor.u32 %v6237_v25, %v4974_v26  ;;  %v5169_v25 = vor.u32 %v6285_v18, %v5166_v19  ;;  %v6257_v26 = vld [vmem:[#allocation4 + $0x36c] sm:$0xf]  ;;  %v6827_v19 = vpop.f32.mrf.mxu3 }
 0x17c   :  { %v5217_v48 = vor.u32 %v6297_v39, %v5214_v40  ;;  %v5310_v29 = vld [vmem:[#allocation4 + $0x578] sm:$0xf0]  ;;  %v5057_v36 = vor.u32 %v6257_v26, %v5054_v27  ;;  %v6409_v27 = vld [vmem:[#allocation6 + $0x28] sm:$0xff] }
 0x17d   :  { %3051 = vmatpush.bf16.msra.mxu0 %v4657_v45  ;;  %3023 = vmatpush.bf16.msrb.mxu2 %v5421_v51  ;;  %v6233_v45 = vld [vmem:[#allocation4 + $0x2ac] sm:$0xf]  ;;  %v5150_v33 = vld [vmem:[#allocation4 + $0x438] sm:$0xf0] }
 0x17e   :  { %v6333_v51 = vld [vmem:[#allocation4 + $0x5cc] sm:$0xf]  ;;  %v4961_v57 = vor.u32 %v6233_v45, %v4958_v46  ;;  %v5153_v40 = vor.u32 %v6281_v31, %v5150_v33  ;;  %v5134_v46 = vld [vmem:[#allocation4 + $0x418] sm:$0xf0] }
 0x17f   :  { %3036 = vmatpush.bf16.msrb.mxu3 %v5565_v52  ;;  %3064 = vmatpush.bf16.msra.mxu1 %v4801_v54  ;;  %v5358_v52 = vld [vmem:[#allocation4 + $0x5d8] sm:$0xf0]  ;;  %v6293_v54 = vld [vmem:[#allocation4 + $0x48c] sm:$0xf] }
 0x180   :  { %v5361_v61 = vor.u32 %v6333_v51, %v5358_v52  ;;  %v5201_v30 = vor.u32 %v6293_v54, %v5198_v55  ;;  %v6277_v45 = vld [vmem:[#allocation4 + $0x40c] sm:$0xf]  ;;  %v5502_v55 = vld [vmem:[#allocation4 + $0x6f8] sm:$0xf0] }
 0x181   :  { %3052 = vmatpush.bf16.msra.mxu0 %v4641_v60  ;;  %3024 = vmatpush.bf16.msrb.mxu2 %v5405_v3  ;;  %v4942_v60 = vld [vmem:[#allocation4 + $0x298] sm:$0xf0]  ;;  %v6369_v51 = vld [vmem:[#allocation4 + $0x6ec] sm:$0xf]  ;;  %v5137_v54 = vor.u32 %v6277_v45, %v5134_v46 }
 0x182   :  { %v5342_v3 = vld [vmem:[#allocation4 + $0x5b8] sm:$0xf0] }
 0x183   :  { %3037 = vmatpush.bf16.msrb.mxu3 %v5549_v6  ;;  %3065 = vmatpush.bf16.msra.mxu1 %v4785_v7  ;;  %v4945_v6 = vor.u32 %v6229_v58, %v4942_v60  ;;  %v5089_v7 = vor.u32 %v6265_v62, %v5086_v1  ;;  %v5345_v11 = vor.u32 %v6329_v2, %v5342_v3  ;;  %v6821_v58 = vpop.f32.mrf.mxu0  ;;  %v6823_v60 = vpop.f32.mrf.mxu2  ;;  %v6411_v62 = vld [vmem:[#allocation6 + $0x38] sm:$0xff] }
 0x184   :  { %v5505_v2 = vor.u32 %v6369_v51, %v5502_v55  ;;  %v5614_v26 = vld [vmem:[#allocation4 + $0x7d8] sm:$0xf0]  ;;  %v6417_v51 = vld [vmem:[#allocation6 + $0x68] sm:$0xff] }
 0x185   :  { %3053 = vmatpush.bf16.msra.mxu0 %v4625_v12  ;;  %3025 = vmatpush.bf16.msrb.mxu2 %v5389_v20  ;;  %v5185_v12 = vor.u32 %v6289_v4, %v5182_v5  ;;  %v4929_v20 = vor.u32 %v6225_v8, %v4926_v9  ;;  %v6365_v4 = vld [vmem:[#allocation4 + $0x6cc] sm:$0xf]  ;;  %v5486_v5 = vld [vmem:[#allocation4 + $0x6d8] sm:$0xf0] }
 0x186   :  { %v5006_v8 = vld [vmem:[#allocation4 + $0x318] sm:$0xf0]  ;;  %v6309_v9 = vld [vmem:[#allocation4 + $0x50c] sm:$0xf] }
 0x187   :  { %3038 = vmatpush.bf16.msrb.mxu3 %v5533_v24  ;;  %3066 = vmatpush.bf16.msra.mxu1 %v4769_v28  ;;  %v6321_v28 = vld [vmem:[#allocation4 + $0x56c] sm:$0xf]  ;;  %v5438_v45 = vld [vmem:[#allocation4 + $0x678] sm:$0xf0] }
 0x188   :  { %3054 = vmatmul.bf16.vlgmr.msra.gmra.mxu0 %v6769_v41  ;;  %3026 = vmatmul.bf16.vlgmr.msrb.gmra.mxu2 %v6795_v10  ;;  %v5105_v41 = vor.u32 %v6269_v49, %v5102_v50  ;;  %v5313_v39 = vor.u32 %v6321_v28, %v5310_v29  ;;  %v6213_v49 = vld [vmem:[#allocation4 + $0x20c] sm:$0xf]  ;;  %v4878_v50 = vld [vmem:[#allocation4 + $0x218] sm:$0xf0]  ;;  %v6836_v28 = vld [vmem:[%s6881_s4] sm:$0xf] }
 0x189   :  { %3102 = vmatpush.bf16.msrb.mxu0 %v5249_v17  ;;  %3074 = vmatpush.bf16.msra.mxu2 %v4993_v23  ;;  %v5326_v17 = vld [vmem:[#allocation4 + $0x598] sm:$0xf0]  ;;  %v4881_v1 = vor.u32 %v6213_v49, %v4878_v50  ;;  %v2763_v50 = vpop.f32.mrf.mxu3 }
 0x18a   :  { %v4910_v23 = vld [vmem:[#allocation4 + $0x258] sm:$0xf0]  ;;  %v5329_v24 = vor.u32 %v6325_v16, %v5326_v17  ;;  %v6410_v16 = vld [vmem:[#allocation6 + $0x30] sm:$0xff]  ;;  %v5489_v17 = vor.u32 %v6365_v4, %v5486_v5 }
 0x18b   :  { %3039 = vmatpush.bf16.msrb.mxu3 %v5517_v63  ;;  %3067 = vmatpush.bf16.msra.mxu1 %v4753_v43  ;;  %v5038_v63 = vld [vmem:[#allocation4 + $0x358] sm:$0xf0]  ;;  %v6317_v43 = vld [vmem:[#allocation4 + $0x54c] sm:$0xf]  ;;  %v2749_v31 = vpop.f32.mrf.mxu2 }
 0x18c   :  { %v6419_v29 = vld [vmem:[#allocation6 + $0x78] sm:$0xff] }
 0x18d   :  { %3103 = vmatpush.bf16.msrb.mxu0 %v5233_v34  ;;  %3075 = vmatpush.bf16.msra.mxu2 %v4977_v56  ;;  %v4913_v34 = vor.u32 %v6221_v22, %v4910_v23  ;;  %v6253_v56 = vld [vmem:[#allocation4 + $0x34c] sm:$0xf]  ;;  %v5470_v23 = vld [vmem:[#allocation4 + $0x6b8] sm:$0xf0] }
 0x18e   :  { %3040 = vmatmul.bf16.vlgmr.msrb.gmra.mxu3 %v6799_v42  ;;  %3068 = vmatmul.bf16.vlgmr.msra.gmra.mxu1 %v6772_v0  ;;  %v5073_v0 = vor.u32 %v6261_v14, %v5070_v15  ;;  %v6401_v14 = vld [vmem:[#allocation4 + $0x7ec] sm:$0xf]  ;;  %v5630_v15 = vld [vmem:[#allocation4 + $0x7f8] sm:$0xf0] }
 0x18f   :  { %3088 = vmatpush.bf16.msra.mxu3 %v5121_v44  ;;  %3116 = vmatpush.bf16.msrb.mxu1 %v5377_v47  ;;  %v5294_v44 = vld [vmem:[#allocation4 + $0x558] sm:$0xf0]  ;;  %v4897_v47 = vor.u32 %v6217_v37, %v4894_v38  ;;  %v6361_v22 = vld [vmem:[#allocation4 + $0x6ac] sm:$0xf] }
 0x190   :  { %v5297_v52 = vor.u32 %v6317_v43, %v5294_v44  ;;  %v6393_v38 = vld [vmem:[#allocation4 + $0x7ac] sm:$0xf]  ;;  %v6407_v49 = vld [vmem:[#allocation6 + $0x18] sm:$0xff] }
 0x191   :  { %3104 = vmatpush.bf16.msrb.mxu0 %v5217_v48  ;;  %3076 = vmatpush.bf16.msra.mxu2 %v4961_v57  ;;  %v5041_v48 = vor.u32 %v6253_v56, %v5038_v63  ;;  %v6249_v57 = vld [vmem:[#allocation4 + $0x32c] sm:$0xf]  ;;  %v6418_v56 = vld [vmem:[#allocation6 + $0x70] sm:$0xff] }
 0x192   :  { %v6353_v44 = vld [vmem:[#allocation4 + $0x66c] sm:$0xf] }
 0x193   :  { %3089 = vmatpush.bf16.msra.mxu3 %v5105_v41  ;;  %3117 = vmatpush.bf16.msrb.mxu1 %v5361_v61  ;;  %v5022_v41 = vld [vmem:[#allocation4 + $0x338] sm:$0xf0]  ;;  %v6313_v61 = vld [vmem:[#allocation4 + $0x52c] sm:$0xf] }
 0x194   :  { %v5025_v3 = vor.u32 %v6249_v57, %v5022_v41  ;;  %v6349_v57 = vld [vmem:[#allocation4 + $0x64c] sm:$0xf]  ;;  %v5422_v41 = vld [vmem:[#allocation4 + $0x658] sm:$0xf0] }
 0x195   :  { %3105 = vmatpush.bf16.msrb.mxu0 %v5201_v30  ;;  %3077 = vmatpush.bf16.msra.mxu2 %v4945_v6  ;;  %v5278_v30 = vld [vmem:[#allocation4 + $0x538] sm:$0xf0]  ;;  %v6245_v6 = vld [vmem:[#allocation4 + $0x30c] sm:$0xf]  ;;  %v5425_v4 = vor.u32 %v6349_v57, %v5422_v41 }
 0x196   :  { %v5009_v18 = vor.u32 %v6245_v6, %v5006_v8  ;;  %v6345_v6 = vld [vmem:[#allocation4 + $0x62c] sm:$0xf] }
 0x197   :  { %3090 = vmatpush.bf16.msra.mxu3 %v5089_v7  ;;  %3118 = vmatpush.bf16.msrb.mxu1 %v5345_v11  ;;  %v5281_v7 = vor.u32 %v6313_v61, %v5278_v30  ;;  %v5262_v11 = vld [vmem:[#allocation4 + $0x518] sm:$0xf0] }
 0x198   :  { %v5566_v30 = vld [vmem:[#allocation4 + $0x778] sm:$0xf0] }
 0x199   :  { %3106 = vmatpush.bf16.msrb.mxu0 %v5185_v12  ;;  %3078 = vmatpush.bf16.msra.mxu2 %v4929_v20  ;;  %v6825_v12 = vpop.f32.mrf.mxu1  ;;  %v5265_v20 = vor.u32 %v6309_v9, %v5262_v11  ;;  %v6381_v9 = vld [vmem:[#allocation4 + $0x74c] sm:$0xf]  ;;  %v5550_v11 = vld [vmem:[#allocation4 + $0x758] sm:$0xf0] }
 0x19b   :  { %3091 = vmatpush.bf16.msra.mxu3 %v5073_v0  ;;  %3119 = vmatpush.bf16.msrb.mxu1 %v5329_v24  ;;  %v5633_v0 = vor.u32 %v6401_v14, %v5630_v15  ;;  %v6830_v24 = vpop.f32.mrf.mxu0  ;;  %v6405_v14 = vld [vmem:[#allocation6 + $0x8] sm:$0xff] }
 0x19d   :  { %3107 = vmatpush.bf16.msrb.mxu0 %v5169_v25  ;;  %3079 = vmatpush.bf16.msra.mxu2 %v4913_v34  ;;  %v6397_v25 = vld [vmem:[#allocation4 + $0x7cc] sm:$0xf] }
 0x19e   :  { %v5617_v33 = vor.u32 %v6397_v25, %v5614_v26  ;;  %v6357_v34 = vld [vmem:[#allocation4 + $0x68c] sm:$0xf] }
 0x19f   :  { %3092 = vmatpush.bf16.msra.mxu3 %v5057_v36  ;;  %3120 = vmatpush.bf16.msrb.mxu1 %v5313_v39  ;;  %v5454_v36 = vld [vmem:[#allocation4 + $0x698] sm:$0xf0]  ;;  %v6377_v26 = vld [vmem:[#allocation4 + $0x72c] sm:$0xf] }
 0x1a0   :  { %v5598_v39 = vld [vmem:[#allocation4 + $0x7b8] sm:$0xf0]  ;;  %v5457_v63 = vor.u32 %v6357_v34, %v5454_v36 }
 0x1a1   :  { %3108 = vmatpush.bf16.msrb.mxu0 %v5153_v40  ;;  %3080 = vmatpush.bf16.msra.mxu2 %v4897_v47  ;;  %v6839_v37 = vpop.f32.mrf.mxu1  ;;  %v6408_v40 = vld [vmem:[#allocation6 + $0x20] sm:$0xff]  ;;  %v5601_v43 = vor.u32 %v6393_v38, %v5598_v39  ;;  %v6389_v47 = vld [vmem:[#allocation4 + $0x78c] sm:$0xf] }
 0x1a2   :  { %v6373_v39 = vld [vmem:[#allocation4 + $0x70c] sm:$0xf] }
 0x1a3   :  { %3093 = vmatpush.bf16.msra.mxu3 %v5041_v48  ;;  %3121 = vmatpush.bf16.msrb.mxu1 %v5297_v52  ;;  %v5582_v48 = vld [vmem:[#allocation4 + $0x798] sm:$0xf0]  ;;  %v2777_v52 = vpop.f32.mrf.mxu0 }
 0x1a4   :  { %v5585_v55 = vor.u32 %v6389_v47, %v5582_v48  ;;  %v6412_v47 = vld [vmem:[#allocation6 + $0x40] sm:$0xff] }
 0x1a5   :  { %3109 = vmatpush.bf16.msrb.mxu0 %v5137_v54  ;;  %3081 = vmatpush.bf16.msra.mxu2 %v4881_v1  ;;  %v5441_v54 = vor.u32 %v6353_v44, %v5438_v45  ;;  %v6416_v1 = vld [vmem:[#allocation6 + $0x60] sm:$0xff] }
 0x1a7   :  { %3094 = vmatpush.bf16.msra.mxu3 %v5025_v3  ;;  %3122 = vmatpush.bf16.msrb.mxu1 %v5281_v7  ;;  %v5406_v7 = vld [vmem:[#allocation4 + $0x638] sm:$0xf0] }
 0x1a8   :  { %3110 = vmatmul.bf16.vlgmr.msrb.gmra.mxu0 %v6785_v53  ;;  %3082 = vmatmul.bf16.vlgmr.msra.gmra.mxu2 %v6777_v32  ;;  %v5473_v53 = vor.u32 %v6361_v22, %v5470_v23  ;;  %v1422_v32 = vperm.slane %v6836_v28, 0  ;;  %v5390_v22 = vld [vmem:[#allocation4 + $0x618] sm:$0xf0] }
 0x1a9   :  { %3430 = vmatpush.bf16.msra.mxu0 %v6411_v62  ;;  %3130 = vmatpush.bf16.msrb.mxu2 %v5505_v2  ;;  %v6406_v62 = vld [vmem:[#allocation6 + $0x10] sm:$0xff]  ;;  %v2791_v3 = vpop.f32.mrf.mxu1 }
 0x1aa   :  { %v2720_v46 = vadd.f32 %v6817_v21, %v1422_v32  ;;  %v6385_v21 = vld [vmem:[#allocation4 + $0x76c] sm:$0xf] }
 0x1ab   :  { %3095 = vmatpush.bf16.msra.mxu3 %v5009_v18  ;;  %3123 = vmatpush.bf16.msrb.mxu1 %v5265_v20  ;;  %v5569_v5 = vor.u32 %v6385_v21, %v5566_v30  ;;  %v5409_v18 = vor.u32 %v6345_v6, %v5406_v7  ;;  %v5553_v20 = vor.u32 %v6381_v9, %v5550_v11  ;;  %v2831_v25 = vpop.f32.mrf.mxu0 }
 0x1ac   :  { %v2734_v61 = vadd.f32 %v6819_v35, %v2720_v46 }
 0x1ad   :  { %3431 = vmatpush.bf16.msra.mxu0 %v6410_v16  ;;  %3131 = vmatpush.bf16.msrb.mxu2 %v5489_v17  ;;  %v6415_v16 = vld [vmem:[#allocation6 + $0x58] sm:$0xff] }
 0x1ae   :  { %3096 = vmatmul.bf16.vlgmr.msra.gmra.mxu3 %v6780_v59  ;;  %3124 = vmatmul.bf16.vlgmr.msrb.gmra.mxu1 %v6788_v13  ;;  %v2722_v59 = vadd.f32 %v6821_v58, %v1422_v32  ;;  %v2803_v13 = vpop.f32.mrf.mxu2  ;;  %v2748_v58 = vadd.f32 %v6823_v60, %v2734_v61 }
 0x1af   :  { %3144 = vmatpush.bf16.msrb.mxu3 %v5633_v0  ;;  %3444 = vmatpush.bf16.msra.mxu1 %v6419_v29  ;;  %v6341_v0 = vld [vmem:[#allocation4 + $0x60c] sm:$0xf]  ;;  %v6404_v29 = vld [vmem:[#allocation6] sm:$0xff] }
 0x1b0   :  { %v2736_v2 = vadd.f32 %v6825_v12, %v2722_v59  ;;  %v2762_v8 = vadd.f32 %v6827_v19, %v2748_v58  ;;  %v1423_v59 = vperm.slane %v6836_v28, 1 }
 0x1b1   :  { %3432 = vmatpush.bf16.msra.mxu0 %v6409_v27  ;;  %3132 = vmatpush.bf16.msrb.mxu2 %v5473_v53  ;;  %v2817_v15 = vpop.f32.mrf.mxu3  ;;  %v5534_v27 = vld [vmem:[#allocation4 + $0x738] sm:$0xf0]  ;;  %v2845_v36 = vpop.f32.mrf.mxu1 }
 0x1b2   :  { %v2750_v35 = vadd.f32 %v2749_v31, %v2736_v2  ;;  %v2776_v60 = vadd.f32 %v6830_v24, %v2762_v8  ;;  %v6414_v31 = vld [vmem:[#allocation6 + $0x50] sm:$0xff]  ;;  %v5393_v24 = vor.u32 %v6341_v0, %v5390_v22  ;;  %v5537_v34 = vor.u32 %v6377_v26, %v5534_v27  ;;  %v6424_v0 = vld [vmem:[#allocation6 + $0xa0] sm:$0xff]  ;;  %v6423_v22 = vld [vmem:[#allocation6 + $0x98] sm:$0xff] }
 0x1b3   :  { %3145 = vmatpush.bf16.msrb.mxu3 %v5617_v33  ;;  %3445 = vmatpush.bf16.msra.mxu1 %v6418_v56  ;;  %v6413_v56 = vld [vmem:[#allocation6 + $0x48] sm:$0xff]  ;;  %v2833_v48 = vpop.f32.mrf.mxu0 }
 0x1b4   :  { %v2764_v12 = vadd.f32 %v2763_v50, %v2750_v35  ;;  %v2790_v19 = vadd.f32 %v6839_v37, %v2776_v60  ;;  %v5518_v37 = vld [vmem:[#allocation4 + $0x718] sm:$0xf0]  ;;  %v2834_v57 = vadd.f32 %v2833_v48, %v1423_v59 }
 0x1b5   :  { %3433 = vmatpush.bf16.msra.mxu0 %v6408_v40  ;;  %3133 = vmatpush.bf16.msrb.mxu2 %v5457_v63  ;;  %v5521_v44 = vor.u32 %v6373_v39, %v5518_v37 }
 0x1b6   :  { %v2805_v17 = vpop.f32.mrf.mxu2  ;;  %v2778_v23 = vadd.f32 %v2777_v52, %v2764_v12  ;;  %v2804_v33 = vadd.f32 %v2803_v13, %v2790_v19  ;;  %v2832_v13 = vadd.f32 %v2831_v25, %v1423_v59  ;;  %v6422_v19 = vld [vmem:[#allocation6 + $0x90] sm:$0xff]  ;;  %v6421_v25 = vld [vmem:[#allocation6 + $0x88] sm:$0xff] }
 0x1b7   :  { %3146 = vmatpush.bf16.msrb.mxu3 %v5601_v43  ;;  %3446 = vmatpush.bf16.msra.mxu1 %v6417_v51 }
 0x1b8   :  { %v2792_v53 = vadd.f32 %v2791_v3, %v2778_v23  ;;  %v2818_v32 = vadd.f32 %v2817_v15, %v2804_v33  ;;  %v1424_v33 = vperm.slane %v6836_v28, 2 }
 0x1b9   :  { %3434 = vmatpush.bf16.msra.mxu0 %v6407_v49  ;;  %3134 = vmatpush.bf16.msrb.mxu2 %v5441_v54  ;;  %v2819_v40 = vpop.f32.mrf.mxu3  ;;  %v2847_v51 = vpop.f32.mrf.mxu1 }
 0x1ba   :  { %v2806_v38 = vadd.f32 %v2805_v17, %v2792_v53  ;;  %v3158_v45 = vmax.f32 %v2818_v32, 0.0  ;;  %v2848_v61 = vadd.f32 %v2847_v51, %v2834_v57  ;;  %v6426_v17 = vld [vmem:[#allocation6 + $0xb0] sm:$0xff] }
 0x1bb   :  { %3147 = vmatpush.bf16.msrb.mxu3 %v5585_v55  ;;  %3447 = vmatpush.bf16.msra.mxu1 %v6416_v1  ;;  %v2887_v54 = vpop.f32.mrf.mxu0  ;;  %v2846_v55 = vadd.f32 %v2845_v36, %v2832_v13 }
 0x1bc   :  { %v2820_v63 = vadd.f32 %v2819_v40, %v2806_v38 }
 0x1bd   :  { %3435 = vmatpush.bf16.msra.mxu0 %v6406_v62  ;;  %3135 = vmatpush.bf16.msrb.mxu2 %v5425_v4 }
 0x1be   :  { %v2859_v43 = vpop.f32.mrf.mxu2  ;;  %v3162_v46 = vmax.f32 %v2820_v63, 0.0 }
 0x1bf   :  { %3148 = vmatpush.bf16.msrb.mxu3 %v5569_v5  ;;  %3448 = vmatpush.bf16.msra.mxu1 %v6415_v16 }
 0x1c0   :  { %v3166_v49 = vpack.c.bf16 %v3162_v46, %v3158_v45 }
 0x1c1   :  { %3436 = vmatpush.bf16.msra.mxu0 %v6405_v14  ;;  %3136 = vmatpush.bf16.msrb.mxu2 %v5409_v18  ;;  %v2873_v50 = vpop.f32.mrf.mxu3  ;;  %v2901_v21 = vpop.f32.mrf.mxu1  ;;  %v6427_v14 = vld [vmem:[#allocation6 + $0xb8] sm:$0xff] }
 0x1c3   :  { %3149 = vmatpush.bf16.msrb.mxu3 %v5553_v20  ;;  %3449 = vmatpush.bf16.msra.mxu1 %v6414_v31  ;;  %v2889_v3 = vpop.f32.mrf.mxu0  ;;  %v6425_v20 = vld [vmem:[#allocation6 + $0xa8] sm:$0xff] }
 0x1c5   :  { %3437 = vmatpush.bf16.msra.mxu0 %v6404_v29  ;;  %3137 = vmatpush.bf16.msrb.mxu2 %v5393_v24  ;;  %v6420_v29 = vld [vmem:[#allocation6 + $0x80] sm:$0xff] }
 0x1c6   :  { %v2861_v52 = vpop.f32.mrf.mxu2 }
 0x1c7   :  { %3150 = vmatpush.bf16.msrb.mxu3 %v5537_v34  ;;  %3450 = vmatpush.bf16.msra.mxu1 %v6413_v56  ;;  %v2862_v1 = vadd.f32 %v2861_v52, %v2848_v61  ;;  %v6435_v61 = vld [vmem:[#allocation6 + $0xf8] sm:$0xff] }
 0x1c8   :  { %3138 = vmatmul.bf16.vlgmr.msrb.gmra.mxu2 %v6795_v10  ;;  %3438 = vmatmul.bf16.vlgmr.msra.gmra.mxu0 %v3166_v49  ;;  %v2860_v10 = vadd.f32 %v2859_v43, %v2846_v55 }
 0x1c9   :  { %v2875_v41 = vpop.f32.mrf.mxu3  ;;  %v2903_v6 = vpop.f32.mrf.mxu1  ;;  %3458 = vmatpush.bf16.msra.mxu2 %v6427_v14 }
 0x1ca   :  { %v2874_v62 = vadd.f32 %v2873_v50, %v2860_v10  ;;  %v2876_v2 = vadd.f32 %v2875_v41, %v2862_v1 }
 0x1cb   :  { %3151 = vmatpush.bf16.msrb.mxu3 %v5521_v44  ;;  %3451 = vmatpush.bf16.msra.mxu1 %v6412_v47  ;;  %v2943_v23 = vpop.f32.mrf.mxu0 }
 0x1cc   :  { %v2888_v58 = vadd.f32 %v2887_v54, %v2874_v62  ;;  %v2890_v5 = vadd.f32 %v2889_v3, %v2876_v2  ;;  %v2944_v36 = vadd.f32 %v2943_v23, %v1424_v33  ;;  %v6433_v2 = vld [vmem:[#allocation6 + $0xe8] sm:$0xff]  ;;  %v6431_v3 = vld [vmem:[#allocation6 + $0xd8] sm:$0xff] }
 0x1cd   :  { %3459 = vmatpush.bf16.msra.mxu2 %v6426_v17 }
 0x1ce   :  { %3152 = vmatmul.bf16.vlgmr.msrb.gmra.mxu3 %v6799_v42  ;;  %v2915_v30 = vpop.f32.mrf.mxu2  ;;  %v2902_v42 = vadd.f32 %v2901_v21, %v2888_v58  ;;  %v2904_v35 = vadd.f32 %v2903_v6, %v2890_v5  ;;  %v6434_v21 = vld [vmem:[#allocation6 + $0xf0] sm:$0xff]  ;;  %v6432_v58 = vld [vmem:[#allocation6 + $0xe0] sm:$0xff] }
 0x1cf   :  { %3472 = vmatpush.bf16.msra.mxu3 %v6435_v61 }
 0x1d0   :  { %v2916_v8 = vadd.f32 %v2915_v30, %v2902_v42  ;;  %v6429_v42 = vld [vmem:[#allocation6 + $0xc8] sm:$0xff] }
 0x1d1   :  { %v2929_v4 = vpop.f32.mrf.mxu3  ;;  %3460 = vmatpush.bf16.msra.mxu2 %v6425_v20  ;;  %v2957_v26 = vpop.f32.mrf.mxu1 }
 0x1d2   :  { %v2930_v9 = vadd.f32 %v2929_v4, %v2916_v8  ;;  %v2958_v38 = vadd.f32 %v2957_v26, %v2944_v36  ;;  %v6430_v4 = vld [vmem:[#allocation6 + $0xd0] sm:$0xff]  ;;  %v6428_v8 = vld [vmem:[#allocation6 + $0xc0] sm:$0xff] }
 0x1d3   :  { %v2945_v31 = vpop.f32.mrf.mxu0  ;;  %3473 = vmatpush.bf16.msra.mxu3 %v6434_v21  ;;  %v5868_v21 = vld [vmem:[#allocation7 + $0xc8] sm:$0xf] }
 0x1d4   :  { %v3159_v12 = vmax.f32 %v2930_v9, 0.0  ;;  %v2946_v39 = vadd.f32 %v2945_v31, %v1424_v33 }
 0x1d5   :  { %3461 = vmatpush.bf16.msra.mxu2 %v6424_v0 }
 0x1d6   :  { %v2917_v7 = vpop.f32.mrf.mxu2 }
 0x1d7   :  { %v2918_v11 = vadd.f32 %v2917_v7, %v2904_v35  ;;  %3474 = vmatpush.bf16.msra.mxu3 %v6433_v2  ;;  %v5870_v2 = vld [vmem:[#allocation7 + $0xd8] sm:$0xf0] }
 0x1d9   :  { %v2931_v15 = vpop.f32.mrf.mxu3  ;;  %3462 = vmatpush.bf16.msra.mxu2 %v6423_v22  ;;  %v2959_v24 = vpop.f32.mrf.mxu1 }
 0x1da   :  { %v2932_v16 = vadd.f32 %v2931_v15, %v2918_v11  ;;  %v2960_v40 = vadd.f32 %v2959_v24, %v2946_v39  ;;  %v1425_v11 = vperm.slane %v6836_v28, 3 }
 0x1db   :  { %3475 = vmatpush.bf16.msra.mxu3 %v6432_v58  ;;  %v5844_v58 = vld [vmem:[#allocation7 + $0xa0] sm:$0xf] }
 0x1dc   :  { %v3163_v60 = vmax.f32 %v2932_v16, 0.0 }
 0x1dd   :  { %3463 = vmatpush.bf16.msra.mxu2 %v6422_v19 }
 0x1de   :  { %v3167_v18 = vpack.c.bf16 %v3163_v60, %v3159_v12 }
 0x1df   :  { %3476 = vmatpush.bf16.msra.mxu3 %v6431_v3  ;;  %v6458_v3 = vld [vmem:[#allocation7 + $0xac] sm:$0xf0] }
 0x1e0   :  { %3452 = vmatmul.bf16.vlgmr.msra.gmra.mxu1 %v3167_v18 }
 0x1e1   :  { %3464 = vmatpush.bf16.msra.mxu2 %v6421_v25 }
 0x1e3   :  { %3477 = vmatpush.bf16.msra.mxu3 %v6430_v4 }
 0x1e5   :  { %3465 = vmatpush.bf16.msra.mxu2 %v6420_v29  ;;  %v2999_v32 = vpop.f32.mrf.mxu0 }
 0x1e7   :  { %3478 = vmatpush.bf16.msra.mxu3 %v6429_v42  ;;  %v5846_v42 = vld [vmem:[#allocation7 + $0xb0] sm:$0xf0] }
 0x1eb   :  { %v2971_v27 = vpop.f32.mrf.mxu2  ;;  %v3013_v63 = vpop.f32.mrf.mxu1  ;;  %3479 = vmatpush.bf16.msra.mxu3 %v6428_v8  ;;  %v6459_v8 = vld [vmem:[#allocation7 + $0xb4] sm:$0xf0] }
 0x1ec   :  { %v2972_v56 = vadd.f32 %v2971_v27, %v2958_v38 }
 0x1ed   :  { %v3001_v48 = vpop.f32.mrf.mxu0 }
 0x1f1   :  { %v2985_v53 = vpop.f32.mrf.mxu3 }
 0x1f2   :  { %v2986_v43 = vadd.f32 %v2985_v53, %v2972_v56 }
 0x1f3   :  { %v2973_v34 = vpop.f32.mrf.mxu2  ;;  %v3015_v59 = vpop.f32.mrf.mxu1 }
 0x1f4   :  { %v2974_v44 = vadd.f32 %v2973_v34, %v2960_v40  ;;  %v3000_v47 = vadd.f32 %v2999_v32, %v2986_v43  ;;  %v5876_v43 = vld [vmem:[#allocation7 + $0xe0] sm:$0xf] }
 0x1f6   :  { %v3014_v51 = vadd.f32 %v3013_v63, %v3000_v47  ;;  %v5878_v47 = vld [vmem:[#allocation7 + $0xf0] sm:$0xf0] }
 0x1f9   :  { %v2987_v37 = vpop.f32.mrf.mxu3 }
 0x1fa   :  { %v2988_v46 = vadd.f32 %v2987_v37, %v2974_v44  ;;  %v6466_v44 = vld [vmem:[#allocation7 + $0xec] sm:$0xf0] }
 0x1fc   :  { %v3002_v50 = vadd.f32 %v3001_v48, %v2988_v46  ;;  %v5877_v46 = vor.u32 %v6466_v44, %v5876_v43  ;;  %v5884_v48 = vld [vmem:[#allocation7 + $0xe8] sm:$0xf]  ;;  %v5798_v43 = vld [vmem:[#allocation7 + $0x50] sm:$0xf0] }
 0x1fd   :  { %v5804_v44 = vld [vmem:[#allocation7 + $0x48] sm:$0xf] }
 0x1fe   :  { %v3016_v54 = vadd.f32 %v3015_v59, %v3002_v50  ;;  %v6465_v59 = vld [vmem:[#allocation7 + $0xec] sm:$0xf]  ;;  %3693 = vmatpush.bf16.msrb.mxu0 %v5877_v46 }
 0x205   :  { %v3055_v5 = vpop.f32.mrf.mxu0 }
 0x206   :  { %v3056_v16 = vadd.f32 %v3055_v5, %v1425_v11  ;;  %v6456_v5 = vld [vmem:[#allocation7 + $0xa4] sm:$0xf] }
 0x20b   :  { %v3027_v45 = vpop.f32.mrf.mxu2  ;;  %v3069_v6 = vpop.f32.mrf.mxu1 }
 0x20c   :  { %v3028_v13 = vadd.f32 %v3027_v45, %v3014_v51  ;;  %v3070_v60 = vadd.f32 %v3069_v6, %v3056_v16  ;;  %v6464_v45 = vld [vmem:[#allocation7 + $0xe4] sm:$0xf]  ;;  %v5852_v6 = vld [vmem:[#allocation7 + $0xa8] sm:$0xf]  ;;  %v6454_v16 = vld [vmem:[#allocation7 + $0x8c] sm:$0xf0] }
 0x20d   :  { %v3057_v35 = vpop.f32.mrf.mxu0  ;;  %v5881_v50 = vor.u32 %v6464_v45, %v5878_v47  ;;  %v6447_v45 = vld [vmem:[#allocation7 + $0x54] sm:$0xf0] }
 0x20e   :  { %v3058_v17 = vadd.f32 %v3057_v35, %v1425_v11  ;;  %v6457_v35 = vld [vmem:[#allocation7 + $0xac] sm:$0xf]  ;;  %v5849_v11 = vor.u32 %v6456_v5, %v5846_v42  ;;  %v5805_v47 = vor.u32 %v6447_v45, %v5804_v44  ;;  %v6439_v5 = vld [vmem:[#allocation7 + $0x14] sm:$0xf0] }
 0x20f   :  { %3707 = vmatpush.bf16.msrb.mxu1 %v5881_v50  ;;  %v6471_v45 = vld [vmem:[#allocation9 + $0x18] sm:$0xff] }
 0x211   :  { %v3041_v49 = vpop.f32.mrf.mxu3 }
 0x212   :  { %v3042_v55 = vadd.f32 %v3041_v49, %v3028_v13  ;;  %v6467_v49 = vld [vmem:[#allocation7 + $0xf4] sm:$0xf0]  ;;  %v5860_v13 = vld [vmem:[#allocation7 + $0xc0] sm:$0xf] }
 0x213   :  { %v3029_v52 = vpop.f32.mrf.mxu2  ;;  %v3071_v14 = vpop.f32.mrf.mxu1  ;;  %v5885_v51 = vor.u32 %v6467_v49, %v5884_v48  ;;  %v6445_v48 = vld [vmem:[#allocation7 + $0x4c] sm:$0xf]  ;;  %v5806_v49 = vld [vmem:[#allocation7 + $0x58] sm:$0xf0] }
 0x214   :  { %v3030_v57 = vadd.f32 %v3029_v52, %v3016_v54  ;;  %v3160_v30 = vmax.f32 %v3042_v55, 0.0  ;;  %v3072_v20 = vadd.f32 %v3071_v14, %v3058_v17  ;;  %v5886_v52 = vld [vmem:[#allocation7 + $0xf8] sm:$0xf0]  ;;  %v6462_v55 = vld [vmem:[#allocation7 + $0xcc] sm:$0xf0]  ;;  %v5853_v14 = vor.u32 %v6459_v8, %v5852_v6 }
 0x215   :  { %v5889_v54 = vor.u32 %v6465_v59, %v5886_v52  ;;  %3721 = vmatpush.bf16.msrb.mxu2 %v5885_v51  ;;  %v5861_v61 = vor.u32 %v6462_v55, %v5860_v13  ;;  %v5830_v17 = vld [vmem:[#allocation7 + $0x90] sm:$0xf0]  ;;  %v5809_v50 = vor.u32 %v6445_v48, %v5806_v49  ;;  %v5780_v51 = vld [vmem:[#allocation7 + $0x20] sm:$0xf]  ;;  %v6442_v59 = vld [vmem:[#allocation7 + $0x2c] sm:$0xf0] }
 0x216   :  { %v6440_v52 = vld [vmem:[#allocation7 + $0x24] sm:$0xf]  ;;  %v5781_v13 = vor.u32 %v6442_v59, %v5780_v51  ;;  %v5788_v55 = vld [vmem:[#allocation7 + $0x28] sm:$0xf]  ;;  %v5774_v8 = vld [vmem:[#allocation7 + $0x18] sm:$0xf0] }
 0x217   :  { %3735 = vmatpush.bf16.msrb.mxu3 %v5889_v54  ;;  %3694 = vmatpush.bf16.msrb.mxu0 %v5861_v61  ;;  %v5782_v54 = vld [vmem:[#allocation7 + $0x30] sm:$0xf0]  ;;  %v6496_v48 = vld [vmem:[#allocation9 + $0xe0] sm:$0xff]  ;;  %v6487_v51 = vld [vmem:[#allocation9 + $0x98] sm:$0xff] }
 0x218   :  { %v6470_v49 = vld [vmem:[#allocation9 + $0x10] sm:$0xff]  ;;  %v6495_v59 = vld [vmem:[#allocation9 + $0xd8] sm:$0xff] }
 0x219   :  { %v3043_v41 = vpop.f32.mrf.mxu3 }
 0x21a   :  { %v3044_v10 = vadd.f32 %v3043_v41, %v3030_v57  ;;  %v6460_v57 = vld [vmem:[#allocation7 + $0xc4] sm:$0xf]  ;;  %v5862_v41 = vld [vmem:[#allocation7 + $0xd0] sm:$0xf0] }
 0x21c   :  { %v3164_v62 = vmax.f32 %v3044_v10, 0.0  ;;  %v5865_v10 = vor.u32 %v6460_v57, %v5862_v41  ;;  %v6443_v57 = vld [vmem:[#allocation7 + $0x34] sm:$0xf0]  ;;  %v5785_v41 = vor.u32 %v6440_v52, %v5782_v54  ;;  %v6469_v52 = vld [vmem:[#allocation9 + $0x8] sm:$0xff]  ;;  %v6486_v54 = vld [vmem:[#allocation9 + $0x90] sm:$0xff] }
 0x21d   :  { %v5789_v61 = vor.u32 %v6443_v57, %v5788_v55  ;;  %v6494_v55 = vld [vmem:[#allocation9 + $0xd0] sm:$0xff]  ;;  %v6468_v57 = vld [vmem:[#allocation9] sm:$0xff] }
 0x21e   :  { %v3168_v1 = vpack.c.bf16 %v3164_v62, %v3160_v30  ;;  %v6463_v30 = vld [vmem:[#allocation7 + $0xd4] sm:$0xf0]  ;;  %v6461_v62 = vld [vmem:[#allocation7 + $0xcc] sm:$0xf]  ;;  %3708 = vmatpush.bf16.msrb.mxu1 %v5865_v10 }
 0x21f   :  { %v5873_v4 = vor.u32 %v6461_v62, %v5870_v2  ;;  %v6441_v10 = vld [vmem:[#allocation7 + $0x2c] sm:$0xf]  ;;  %v5764_v62 = vld [vmem:[#allocation7] sm:$0xf]  ;;  %v6436_v2 = vld [vmem:[#allocation7 + $0x4] sm:$0xf] }
 0x220   :  { %3466 = vmatmul.bf16.vlgmr.msra.gmra.mxu2 %v3168_v1  ;;  %v5869_v1 = vor.u32 %v6463_v30, %v5868_v21  ;;  %v5790_v21 = vld [vmem:[#allocation7 + $0x38] sm:$0xf0] }
 0x221   :  { %3736 = vmatpush.bf16.msrb.mxu3 %v5873_v4  ;;  %v5793_v30 = vor.u32 %v6441_v10, %v5790_v21  ;;  %v5772_v4 = vld [vmem:[#allocation7 + $0x8] sm:$0xf]  ;;  %v6484_v21 = vld [vmem:[#allocation9 + $0x80] sm:$0xff] }
 0x222   :  { %3722 = vmatpush.bf16.msrb.mxu2 %v5869_v1  ;;  %3709 = vmatpush.bf16.msrb.mxu1 %v5849_v11  ;;  %v6438_v1 = vld [vmem:[#allocation7 + $0xc] sm:$0xf0]  ;;  %v5773_v6 = vor.u32 %v6439_v5, %v5772_v4  ;;  %v6483_v11 = vld [vmem:[#allocation9 + $0x78] sm:$0xff]  ;;  %v6493_v10 = vld [vmem:[#allocation9 + $0xc8] sm:$0xff] }
 0x225   :  { %v3111_v12 = vpop.f32.mrf.mxu0 }
 0x226   :  { %3723 = vmatpush.bf16.msrb.mxu2 %v5853_v14  ;;  %v6491_v14 = vld [vmem:[#allocation9 + $0xb8] sm:$0xff] }
 0x22b   :  { %v3083_v7 = vpop.f32.mrf.mxu2  ;;  %v3125_v22 = vpop.f32.mrf.mxu1 }
 0x22c   :  { %v3084_v0 = vadd.f32 %v3083_v7, %v3070_v60  ;;  %v5845_v7 = vor.u32 %v6458_v3, %v5844_v58  ;;  %v5765_v58 = vor.u32 %v6438_v1, %v5764_v62  ;;  %v5766_v3 = vld [vmem:[#allocation7 + $0x10] sm:$0xf0]  ;;  %v3523_v62 = vld [vmem:[%s6885_s8] sm:$0xf] }
 0x22d   :  { %v3113_v29 = vpop.f32.mrf.mxu0  ;;  %v5769_v42 = vor.u32 %v6436_v2, %v5766_v3  ;;  %v3526_v3 = vperm.slane %v3523_v62, 1 }
 0x22e   :  { %3695 = vmatpush.bf16.msrb.mxu0 %v5845_v7  ;;  %v6437_v7 = vld [vmem:[#allocation7 + $0xc] sm:$0xf] }
 0x231   :  { %v3097_v9 = vpop.f32.mrf.mxu3 }
 0x232   :  { %v3098_v19 = vadd.f32 %v3097_v9, %v3084_v0  ;;  %v5854_v9 = vld [vmem:[#allocation7 + $0xb8] sm:$0xf0]  ;;  %v6453_v0 = vld [vmem:[#allocation7 + $0x8c] sm:$0xf] }
 0x233   :  { %v3085_v15 = vpop.f32.mrf.mxu2  ;;  %v3127_v28 = vpop.f32.mrf.mxu1  ;;  %v5857_v60 = vor.u32 %v6457_v35, %v5854_v9  ;;  %v5777_v35 = vor.u32 %v6437_v7, %v5774_v8  ;;  %v6475_v9 = vld [vmem:[#allocation9 + $0x38] sm:$0xff] }
 0x234   :  { %v3086_v23 = vadd.f32 %v3085_v15, %v3072_v20  ;;  %v3112_v27 = vadd.f32 %v3111_v12, %v3098_v19  ;;  %v5828_v15 = vld [vmem:[#allocation7 + $0x80] sm:$0xf]  ;;  %v6452_v12 = vld [vmem:[#allocation7 + $0x84] sm:$0xf]  ;;  %v6455_v20 = vld [vmem:[#allocation7 + $0x94] sm:$0xf0] }
 0x235   :  { %v5829_v19 = vor.u32 %v6454_v16, %v5828_v15  ;;  %3737 = vmatpush.bf16.msrb.mxu3 %v5857_v60  ;;  %v6499_v15 = vld [vmem:[#allocation9 + $0xf8] sm:$0xff]  ;;  %v6474_v16 = vld [vmem:[#allocation9 + $0x30] sm:$0xff] }
 0x236   :  { %v3126_v33 = vadd.f32 %v3125_v22, %v3112_v27  ;;  %v5838_v22 = vld [vmem:[#allocation7 + $0x98] sm:$0xf0]  ;;  %v5812_v27 = vld [vmem:[#allocation7 + $0x60] sm:$0xf]  ;;  %v6490_v60 = vld [vmem:[#allocation9 + $0xb0] sm:$0xff] }
 0x237   :  { %3696 = vmatpush.bf16.msrb.mxu0 %v5829_v19  ;;  %v6489_v19 = vld [vmem:[#allocation9 + $0xa8] sm:$0xff] }
 0x239   :  { %v3099_v18 = vpop.f32.mrf.mxu3 }
 0x23a   :  { %v3100_v26 = vadd.f32 %v3099_v18, %v3086_v23  ;;  %v5836_v18 = vld [vmem:[#allocation7 + $0x88] sm:$0xf]  ;;  %v5833_v23 = vor.u32 %v6452_v12, %v5830_v17  ;;  %v6482_v12 = vld [vmem:[#allocation9 + $0x70] sm:$0xff] }
 0x23b   :  { %v6498_v17 = vld [vmem:[#allocation9 + $0xf0] sm:$0xff] }
 0x23c   :  { %v3114_v53 = vadd.f32 %v3113_v29, %v3100_v26  ;;  %v5841_v26 = vor.u32 %v6453_v0, %v5838_v22  ;;  %3710 = vmatpush.bf16.msrb.mxu1 %v5833_v23  ;;  %v6450_v29 = vld [vmem:[#allocation7 + $0x6c] sm:$0xf0]  ;;  %v6481_v0 = vld [vmem:[#allocation9 + $0x68] sm:$0xff]  ;;  %v6511_v22 = vld [vmem:[%s6883_s6] ss:$0 sm:$0xff] }
 0x23d   :  { %v6497_v23 = vld [vmem:[#allocation9 + $0xe8] sm:$0xff] }
 0x23e   :  { %v3128_v36 = vadd.f32 %v3127_v28, %v3114_v53  ;;  %3738 = vmatpush.bf16.msrb.mxu3 %v5841_v26  ;;  %v5813_v53 = vor.u32 %v6450_v29, %v5812_v27  ;;  %v5820_v28 = vld [vmem:[#allocation7 + $0x68] sm:$0xf]  ;;  %v6472_v27 = vld [vmem:[#allocation9 + $0x20] sm:$0xff] }
 0x23f   :  { %v6480_v29 = vld [vmem:[#allocation9 + $0x60] sm:$0xff] }
 0x240   :  { %3697 = vmatpush.bf16.msrb.mxu0 %v5813_v53 }
 0x24b   :  { %v3139_v25 = vpop.f32.mrf.mxu2 }
 0x24c   :  { %v3140_v34 = vadd.f32 %v3139_v25, %v3126_v33  ;;  %v5837_v25 = vor.u32 %v6455_v20, %v5836_v18  ;;  %v5814_v33 = vld [vmem:[#allocation7 + $0x70] sm:$0xf0]  ;;  %v3439_v18 = vpop.f32.mrf.mxu0  ;;  %v6473_v20 = vld [vmem:[#allocation9 + $0x28] sm:$0xff] }
 0x24e   :  { %3724 = vmatpush.bf16.msrb.mxu2 %v5837_v25 }
 0x251   :  { %v3153_v31 = vpop.f32.mrf.mxu3 }
 0x252   :  { %v3154_v32 = vadd.f32 %v3153_v31, %v3140_v34  ;;  %v6448_v31 = vld [vmem:[#allocation7 + $0x64] sm:$0xf] }
 0x253   :  { %v3141_v24 = vpop.f32.mrf.mxu2  ;;  %v5817_v34 = vor.u32 %v6448_v31, %v5814_v33  ;;  %v3440_v31 = vadd.f32 %v6511_v22, %v3439_v18 }
 0x254   :  { %v3142_v38 = vadd.f32 %v3141_v24, %v3128_v36  ;;  %v3161_v40 = vmax.f32 %v3154_v32, 0.0  ;;  %v6451_v24 = vld [vmem:[#allocation7 + $0x74] sm:$0xf0]  ;;  %v6449_v32 = vld [vmem:[#allocation7 + $0x6c] sm:$0xf] }
 0x255   :  { %v5821_v36 = vor.u32 %v6451_v24, %v5820_v28  ;;  %3711 = vmatpush.bf16.msrb.mxu1 %v5817_v34  ;;  %v3441_v28 = vpop.f32.mrf.mxu0 }
 0x257   :  { %3725 = vmatpush.bf16.msrb.mxu2 %v5821_v36 }
 0x259   :  { %v3155_v39 = vpop.f32.mrf.mxu3 }
 0x25a   :  { %v3156_v37 = vadd.f32 %v3155_v39, %v3142_v38  ;;  %v5822_v38 = vld [vmem:[#allocation7 + $0x78] sm:$0xf0] }
 0x25b   :  { %v5825_v39 = vor.u32 %v6449_v32, %v5822_v38  ;;  %3726 = vmatpush.bf16.msrb.mxu2 %v5805_v47  ;;  %v3442_v32 = vadd.f32 %v6511_v22, %v3441_v28  ;;  %v6488_v47 = vld [vmem:[#allocation9 + $0xa0] sm:$0xff] }
 0x25c   :  { %v3165_v56 = vmax.f32 %v3156_v37, 0.0  ;;  %v5796_v37 = vld [vmem:[#allocation7 + $0x40] sm:$0xf] }
 0x25d   :  { %3739 = vmatpush.bf16.msrb.mxu3 %v5825_v39  ;;  %v3453_v25 = vpop.f32.mrf.mxu1 }
 0x25e   :  { %v3169_v63 = vpack.c.bf16 %v3165_v56, %v3161_v40  ;;  %v6446_v40 = vld [vmem:[#allocation7 + $0x4c] sm:$0xf0]  ;;  %v6444_v56 = vld [vmem:[#allocation7 + $0x44] sm:$0xf]  ;;  %v3454_v53 = vadd.f32 %v3453_v25, %v3440_v31 }
 0x25f   :  { %v5801_v46 = vor.u32 %v6444_v56, %v5798_v43  ;;  %3727 = vmatpush.bf16.msrb.mxu2 %v5789_v61  ;;  %v6485_v61 = vld [vmem:[#allocation9 + $0x88] sm:$0xff] }
 0x260   :  { %3480 = vmatmul.bf16.vlgmr.msra.gmra.mxu3 %v3169_v63  ;;  %v5797_v63 = vor.u32 %v6446_v40, %v5796_v37 }
 0x261   :  { %3712 = vmatpush.bf16.msrb.mxu1 %v5801_v46  ;;  %3740 = vmatpush.bf16.msrb.mxu3 %v5809_v50  ;;  %v6479_v46 = vld [vmem:[#allocation9 + $0x58] sm:$0xff]  ;;  %v6478_v50 = vld [vmem:[#allocation9 + $0x50] sm:$0xff] }
 0x262   :  { %3698 = vmatpush.bf16.msrb.mxu0 %v5797_v63 }
 0x263   :  { %3728 = vmatpush.bf16.msrb.mxu2 %v5773_v6 }
 0x265   :  { %3713 = vmatpush.bf16.msrb.mxu1 %v5785_v41  ;;  %3741 = vmatpush.bf16.msrb.mxu3 %v5793_v30  ;;  %v3455_v36 = vpop.f32.mrf.mxu1  ;;  %v6476_v41 = vld [vmem:[#allocation9 + $0x40] sm:$0xff] }
 0x266   :  { %3699 = vmatpush.bf16.msrb.mxu0 %v5781_v13  ;;  %v3456_v37 = vadd.f32 %v3455_v36, %v3442_v32  ;;  %v6477_v13 = vld [vmem:[#allocation9 + $0x48] sm:$0xff]  ;;  %v6492_v30 = vld [vmem:[#allocation9 + $0xc0] sm:$0xff] }
 0x267   :  { %4049 = vmatpush.bf16.msra.mxu2 %v6491_v14  ;;  %v3528_v14 = vperm.slane %v3523_v62, 3 }
 0x269   :  { %3714 = vmatpush.bf16.msrb.mxu1 %v5769_v42  ;;  %3742 = vmatpush.bf16.msrb.mxu3 %v5777_v35 }
 0x26a   :  { %3700 = vmatpush.bf16.msrb.mxu0 %v5765_v58  ;;  %v3525_v58 = vperm.slane %v3523_v62, 0 }
 0x26b   :  { %4050 = vmatpush.bf16.msra.mxu2 %v6490_v60 }
 0x26d   :  { %4035 = vmatpush.bf16.msra.mxu1 %v6483_v11  ;;  %4063 = vmatpush.bf16.msra.mxu3 %v6499_v15  ;;  %v3527_v11 = vperm.slane %v3523_v62, 2 }
 0x26e   :  { %4021 = vmatpush.bf16.msra.mxu0 %v6475_v9 }
 0x26f   :  { %4051 = vmatpush.bf16.msra.mxu2 %v6489_v19 }
 0x271   :  { %4036 = vmatpush.bf16.msra.mxu1 %v6482_v12  ;;  %4064 = vmatpush.bf16.msra.mxu3 %v6498_v17 }
 0x272   :  { %4022 = vmatpush.bf16.msra.mxu0 %v6474_v16 }
 0x273   :  { %4052 = vmatpush.bf16.msra.mxu2 %v6488_v47 }
 0x275   :  { %4037 = vmatpush.bf16.msra.mxu1 %v6481_v0  ;;  %4065 = vmatpush.bf16.msra.mxu3 %v6497_v23 }
 0x276   :  { %4023 = vmatpush.bf16.msra.mxu0 %v6473_v20 }
 0x277   :  { %4053 = vmatpush.bf16.msra.mxu2 %v6487_v51 }
 0x279   :  { %4038 = vmatpush.bf16.msra.mxu1 %v6480_v29  ;;  %4066 = vmatpush.bf16.msra.mxu3 %v6496_v48 }
 0x27a   :  { %4024 = vmatpush.bf16.msra.mxu0 %v6472_v27 }
 0x27b   :  { %4054 = vmatpush.bf16.msra.mxu2 %v6486_v54 }
 0x27d   :  { %4039 = vmatpush.bf16.msra.mxu1 %v6479_v46  ;;  %4067 = vmatpush.bf16.msra.mxu3 %v6495_v59 }
 0x27e   :  { %4025 = vmatpush.bf16.msra.mxu0 %v6471_v45 }
 0x27f   :  { %4055 = vmatpush.bf16.msra.mxu2 %v6485_v61 }
 0x281   :  { %4040 = vmatpush.bf16.msra.mxu1 %v6478_v50  ;;  %4068 = vmatpush.bf16.msra.mxu3 %v6494_v55 }
 0x282   :  { %4026 = vmatpush.bf16.msra.mxu0 %v6470_v49 }
 0x283   :  { %4056 = vmatpush.bf16.msra.mxu2 %v6484_v21 }
 0x285   :  { %4041 = vmatpush.bf16.msra.mxu1 %v6477_v13  ;;  %4069 = vmatpush.bf16.msra.mxu3 %v6493_v10 }
 0x286   :  { %4027 = vmatpush.bf16.msra.mxu0 %v6469_v52 }
 0x289   :  { %4042 = vmatpush.bf16.msra.mxu1 %v6476_v41  ;;  %4070 = vmatpush.bf16.msra.mxu3 %v6492_v30 }
 0x28a   :  { %4028 = vmatpush.bf16.msra.mxu0 %v6468_v57 }
 0x2a3   :  { %v3467_v26 = vpop.f32.mrf.mxu2 }
 0x2a4   :  { %v3468_v33 = vadd.f32 %v3467_v26, %v3454_v53 }
 0x2ab   :  { %v3469_v39 = vpop.f32.mrf.mxu2 }
 0x2ac   :  { %v3470_v40 = vadd.f32 %v3469_v39, %v3456_v37 }
 0x2e3   :  { %v3481_v24 = vpop.f32.mrf.mxu3 }
 0x2e4   :  { %v3482_v34 = vadd.f32 %v3481_v24, %v3468_v33  ;;  %v6512_v24 = vld [vmem:[%s6887_s10] ss:$0 sm:$0xff] }
 0x2e6   :  { %v3486_v38 = vmax.f32 %v3482_v34, 0.0 }
 0x2e8   :  { %3488 = vst [vmem:[%s6888_s11] sm:$0xff] %v3486_v38 }
 0x2eb   :  { %v3483_v56 = vpop.f32.mrf.mxu3 }
 0x2ec   :  { %v3484_v63 = vadd.f32 %v3483_v56, %v3470_v40 }
 0x2ee   :  { %v3487_v43 = vmax.f32 %v3484_v63, 0.0 }
 0x2f0   :  { %3489 = vst [vmem:[%s6888_s11 + $0x8] sm:$0xff] %v3487_v43  ;;  %v3490_v44 = vpack.c.bf16 %v3487_v43, %v3486_v38 }
 0x2f2   :  { %3701 = vmatmul.bf16.vlgmr.msrb.gmra.mxu0 %v3490_v44  ;;  %3715 = vmatmul.bf16.vlgmr.msrb.gmra.mxu1 %v3490_v44 }
 0x2f3   :  { %3729 = vmatmul.bf16.vlgmr.msrb.gmra.mxu2 %v3490_v44  ;;  %3743 = vmatmul.bf16.vlgmr.msrb.gmra.mxu3 %v3490_v44 }
 0x36f   :  { %v3702_v1 = vpop.f32.mrf.mxu0  ;;  %v3716_v2 = vpop.f32.mrf.mxu1 }
 0x370   :  { %v3703_v4 = vadd.f32 %v3702_v1, %v3525_v58  ;;  %v3717_v5 = vadd.f32 %v3716_v2, %v3526_v3 }
 0x372   :  { %v3749_v15 = vmax.f32 %v3703_v4, 0.0  ;;  %v3750_v16 = vmax.f32 %v3717_v5, 0.0 }
 0x376   :  { %v3730_v42 = vpop.f32.mrf.mxu2  ;;  %v3744_v6 = vpop.f32.mrf.mxu3 }
 0x377   :  { %v3704_v7 = vpop.f32.mrf.mxu0  ;;  %v3718_v8 = vpop.f32.mrf.mxu1  ;;  %v3731_v20 = vadd.f32 %v3730_v42, %v3527_v11  ;;  %v3745_v0 = vadd.f32 %v3744_v6, %v3528_v14 }
 0x378   :  { %v3705_v35 = vadd.f32 %v3704_v7, %v3525_v58  ;;  %v3719_v9 = vadd.f32 %v3718_v8, %v3526_v3 }
 0x379   :  { %v3751_v26 = vmax.f32 %v3731_v20, 0.0  ;;  %v3752_v27 = vmax.f32 %v3745_v0, 0.0 }
 0x37a   :  { %v3753_v12 = vmax.f32 %v3705_v35, 0.0  ;;  %v3754_v60 = vmax.f32 %v3719_v9, 0.0 }
 0x37c   :  { %v3757_v17 = vpack.c.bf16 %v3753_v12, %v3749_v15  ;;  %v3758_v18 = vpack.c.bf16 %v3754_v60, %v3750_v16 }
 0x37e   :  { %v3732_v22 = vpop.f32.mrf.mxu2  ;;  %v3746_v19 = vpop.f32.mrf.mxu3  ;;  %4029 = vmatmul.bf16.vlgmr.msra.gmra.mxu0 %v3757_v17  ;;  %4043 = vmatmul.bf16.vlgmr.msra.gmra.mxu1 %v3758_v18 }
 0x37f   :  { %v3733_v23 = vadd.f32 %v3732_v22, %v3527_v11  ;;  %v3747_v25 = vadd.f32 %v3746_v19, %v3528_v14 }
 0x381   :  { %v3755_v29 = vmax.f32 %v3733_v23, 0.0  ;;  %v3756_v31 = vmax.f32 %v3747_v25, 0.0 }
 0x383   :  { %v3759_v53 = vpack.c.bf16 %v3755_v29, %v3751_v26  ;;  %v3760_v33 = vpack.c.bf16 %v3756_v31, %v3752_v27 }
 0x385   :  { %4057 = vmatmul.bf16.vlgmr.msra.gmra.mxu2 %v3759_v53  ;;  %4071 = vmatmul.bf16.vlgmr.msra.gmra.mxu3 %v3760_v33 }
 0x3fb   :  { %v4030_v28 = vpop.f32.mrf.mxu0  ;;  %v4044_v36 = vpop.f32.mrf.mxu1 }
 0x3fc   :  { %v4031_v34 = vadd.f32 %v6512_v24, %v4030_v28 }
 0x3fe   :  { %v4045_v32 = vadd.f32 %v4044_v36, %v4031_v34 }
 0x403   :  { %v4032_v38 = vpop.f32.mrf.mxu0  ;;  %v4046_v43 = vpop.f32.mrf.mxu1 }
 0x404   :  { %v4033_v56 = vadd.f32 %v6512_v24, %v4032_v38 }
 0x406   :  { %v4047_v44 = vadd.f32 %v4046_v43, %v4033_v56 }
 0x408   :  { %v4058_v39 = vpop.f32.mrf.mxu2  ;;  %v4072_v37 = vpop.f32.mrf.mxu3 }
 0x409   :  { %v4059_v40 = vadd.f32 %v4058_v39, %v4045_v32 }
 0x40b   :  { %v4073_v63 = vadd.f32 %v4072_v37, %v4059_v40 }
 0x40d   :  { %4077 = vst [vmem:[%s6889_s12] sm:$0xff] %v4073_v63 }
 0x410   :  { %v4060_v45 = vpop.f32.mrf.mxu2  ;;  %v4074_v47 = vpop.f32.mrf.mxu3 }
 0x411   :  { %v4061_v46 = vadd.f32 %v4060_v45, %v4047_v44 }
 0x413   :  { %v4075_v48 = vadd.f32 %v4074_v47, %v4061_v46 }
 0x415   :  { %4078 = vst [vmem:[%s6889_s12 + $0x8] sm:$0xff] %v4075_v48 }
 0x416   :  { %4087 = vsyncpa [#allocation3], 1 }
 0x417   :  { %4088 = vsyncpa [#allocation5], 1 }
 0x418   :  { %4089 = vsyncpa [#allocation8], 1 }

</bundles_post_ra>
